<compile_context>
chip_gen: v6e
topology: v6e:2x2x1
jax: 0.10.0
libtpu: 0.0.40
codegen_flags: <defaults>
</compile_context>

<pallas_src>
import functools
import math

import jax
import jax.numpy as jnp
from jax import lax
from jax.experimental import pallas as pl
from jax.experimental.pallas import tpu as pltpu

IOU_THRES = 0.45
NEG_TO_POS_RATIO = 3.0
BBOX_XFORM_CLIP = math.log(1000.0 / 16.0)   # torchvision BoxCoder default clip
NEG_SENTINEL = -1e30                        # stands in for -inf when masking padded GT rows
_HI_BITS = 0x7F800000                       # +inf bit pattern: > every finite non-negative f32
_N_VALUE_BISECT = 31                        # ceil(log2(_HI_BITS + 2)): exact convergence


def ssd_loss_kernel(num_gt_ref,        # SMEM (B,) int32   (scalar prefetch; 0 == "boxes is None")
                    cls_logits_ref,    # VMEM (1, A, C)    model layout, no XLA transpose
                    bbox_reg_ref,      # VMEM (1, A, 4)
                    anchors_ref,       # VMEM (1, A, 4)
                    gt_boxes_ref,      # VMEM (1, G, 4)
                    gt_labels_ref,     # VMEM (1, 1, G) float32
                    out_ref,           # VMEM (1, 1, 4)  [bbox_sum, cls_fg, cls_bg, num_fg]
                    *, num_classes, num_anchors, max_gt):
    b = pl.program_id(0)
    ng = num_gt_ref[b]
    A, G, C = num_anchors, max_gt, num_classes
    f32 = jnp.float32

    @pl.when(ng == 0)
    def _():
        # boxes is None: matched_idxs == -1 everywhere -> zero contribution to both losses.
        out_ref[...] = jnp.zeros((1, 1, 4), f32)

    @pl.when(ng > 0)
    def _():
        # ---------- in-VMEM relayout: anchors on the 128-lane axis (cheap vs. an HBM round trip)
        an_t = jnp.transpose(anchors_ref[0]).astype(f32)        # (4, A) rows x1,y1,x2,y2
        reg_t = jnp.transpose(bbox_reg_ref[0]).astype(f32)      # (4, A) rows dx,dy,dw,dh
        logits = jnp.transpose(cls_logits_ref[0]).astype(f32)   # (C, A)
        gb = gt_boxes_ref[0].astype(f32)                        # (G, 4)
        gl = gt_labels_ref[0].astype(f32)                       # (1, G)

        ax1 = an_t[0:1]; ay1 = an_t[1:2]; ax2 = an_t[2:3]; ay2 = an_t[3:4]       # (1, A)
        gx1 = gb[:, 0:1]; gy1 = gb[:, 1:2]; gx2 = gb[:, 2:3]; gy2 = gb[:, 3:4]   # (G, 1)

        wh_a = an_t[2:4] - an_t[0:2]                 # (2, A) anchor (w, h)
        area_a = wh_a[0:1] * wh_a[1:2]               # (1, A)
        area_g = (gx2 - gx1) * (gy2 - gy1)           # (G, 1)

        # ---------- bboxes_iou(gt_boxes, anchors, xyxy=True) -> (G, A)
        tl_x = jnp.maximum(gx1, ax1); tl_y = jnp.maximum(gy1, ay1)
        br_x = jnp.minimum(gx2, ax2); br_y = jnp.minimum(gy2, ay2)
        en = jnp.logical_and(tl_x < br_x, tl_y < br_y).astype(f32)
        area_i = (br_x - tl_x) * (br_y - tl_y) * en
        iou = area_i * pl.reciprocal(jnp.maximum(area_a + area_g - area_i, 1e-12), approx=True)

        g_idx = lax.broadcasted_iota(jnp.int32, (G, A), 0).astype(f32)
        a_idx = lax.broadcasted_iota(jnp.int32, (G, A), 1).astype(f32)
        valid_g = lax.broadcasted_iota(jnp.int32, (G, 1), 0) < ng                # (G, 1)
        iou_m = jnp.where(valid_g, iou, NEG_SENTINEL)

        # ---------- SSDMatcher: per-anchor argmax over GT + threshold; then force-match each
        # GT's best anchor to that GT (arange assignment -> higher GT index wins on collisions),
        # exactly as torchvision SSDMatcher.__call__ does.
        matched_vals = jnp.max(iou_m, axis=0, keepdims=True)                     # (1, A)
        matched_g = jnp.min(jnp.where(iou_m == matched_vals, g_idx, float(G)),
                            axis=0, keepdims=True)                               # first argmax
        matched = jnp.where(matched_vals < IOU_THRES, -1.0, matched_g)

        best_per_gt = jnp.max(iou_m, axis=1, keepdims=True)                      # (G, 1)
        best_a = jnp.min(jnp.where(iou_m == best_per_gt, a_idx, float(A)),
                         axis=1, keepdims=True)                                  # first best anchor
        force = jnp.logical_and(a_idx == best_a, valid_g)                        # (G, A)
        forced_g = jnp.max(jnp.where(force, g_idx, -1.0), axis=0, keepdims=True)
        matched = jnp.where(forced_g >= 0.0, forced_g, matched)                  # (1, A)

        fg_mask = matched >= 0.0                                                 # (1, A)
        num_fg = jnp.sum(fg_mask.astype(f32), axis=1, keepdims=True)             # (1, 1)

        # ---------- matched-GT gather as one MXU matmul: (5, G) @ (G, A) -> (5, A)
        onehot_g = jnp.logical_and(g_idx == matched, fg_mask).astype(f32)        # (G, A)
        gt5 = jnp.concatenate([jnp.transpose(gb), gl], axis=0)                   # (5, G)
        mg = jnp.dot(gt5, onehot_g, preferred_element_type=f32)                  # (5, A)
        m_xy1 = mg[0:2]; m_xy2 = mg[2:4]; matched_label = mg[4:5]

        # ---------- BoxCoder(weights=(1,1,1,1)).decode_single, 2 coords per row
        c_a = an_t[0:2] + 0.5 * wh_a
        d_xy = reg_t[0:2]
        d_wh = jnp.minimum(reg_t[2:4], BBOX_XFORM_CLIP)
        pc = d_xy * wh_a + c_a
        pwh = jnp.exp(d_wh) * wh_a
        p_xy1 = pc - 0.5 * pwh                      # decoded x1, y1   (2, A)
        p_xy2 = pc + 0.5 * pwh                      # decoded x2, y2   (2, A)

        # ---------- IOUloss(loss_type='giou', reduction='sum')
        # NOTE: autocare_dlt's IOUloss uses the YOLOX (cx,cy,w,h) formula and the module applies
        # it literally to xyxy tensors -- replicated verbatim.
        p_tl = p_xy1 - 0.5 * p_xy2; p_br = p_xy1 + 0.5 * p_xy2
        t_tl = m_xy1 - 0.5 * m_xy2; t_br = m_xy1 + 0.5 * m_xy2
        i_tl = jnp.maximum(p_tl, t_tl); i_br = jnp.minimum(p_br, t_br)
        en2 = jnp.logical_and(i_tl[0:1] < i_br[0:1], i_tl[1:2] < i_br[1:2]).astype(f32)
        di = i_br - i_tl
        area_i2 = di[0:1] * di[1:2] * en2
        area_p = p_xy2[0:1] * p_xy2[1:2]
        area_t = m_xy2[0:1] * m_xy2[1:2]
        area_u = area_p + area_t - area_i2
        iou2 = area_i2 * pl.reciprocal(area_u + 1e-16, approx=True)
        c_tl = jnp.minimum(p_tl, t_tl); c_br = jnp.maximum(p_br, t_br)
        dc = c_br - c_tl
        area_c = dc[0:1] * dc[1:2]
        giou = iou2 - (area_c - area_u) * pl.reciprocal(jnp.maximum(area_c, 1e-16), approx=True)
        giou_loss = 1.0 - jnp.clip(giou, -1.0, 1.0)                              # (1, A)
        bbox_sum = jnp.sum(jnp.where(fg_mask, giou_loss, 0.0), axis=1, keepdims=True)

        # ---------- per-anchor cross-entropy on the lane-major (C, A) logits
        cls_target = jnp.where(fg_mask, matched_label, float(C - 1))             # (1, A)
        c_iota = lax.broadcasted_iota(jnp.int32, (C, A), 0).astype(f32)
        mx = jnp.max(logits, axis=0, keepdims=True)
        lse = mx + jnp.log(jnp.sum(jnp.exp(logits - mx), axis=0, keepdims=True))
        tgt_logit = jnp.sum(jnp.where(c_iota == cls_target, logits, 0.0),
                            axis=0, keepdims=True)
        ce = lse - tgt_logit                                                      # (1, A), >= 0

        # NOTE (matches torch): num_fg (matcher) normalizes & gates bbox loss, while the cls-side
        # foreground mask is cls_target < C-1; they differ only if a GT label equals C-1.
        fg_cls_mask = cls_target < float(C - 1)                                   # (1, A)
        nfg = jnp.sum(fg_cls_mask.astype(f32), axis=1, keepdims=True)
        cls_fg_sum = jnp.sum(jnp.where(fg_cls_mask, ce, 0.0), axis=1, keepdims=True)

        # ---------- hard-negative mining: exact top-(3*nfg) background CE sum.
        # Non-negative f32 bit patterns are order-preserving as int32, foreground is forced to
        # -1.0 (negative bits -> sorts below every background value).  31 unrolled bisection
        # steps land exactly on the k-th largest background CE, so the tie correction is exact.
        num_bg = float(A) - nfg
        k_eff = jnp.minimum(NEG_TO_POS_RATIO * nfg, float(A))       # torch rank cutoff
        k_bg = jnp.minimum(k_eff, num_bg)                           # background picks
        extra = jnp.maximum(k_eff - num_bg, 0.0)                    # fg picks (degenerate case)

        neg_bits = pltpu.bitcast(jnp.where(fg_cls_mask, -1.0, ce), jnp.int32)     # (1, A)
        lo0 = jnp.full((1, 1), -1, jnp.int32)
        hi0 = jnp.full((1, 1), _HI_BITS, jnp.int32)

        def value_bisect(_, carry):
            lo, hi = carry
            mid = lo + jnp.right_shift(hi - lo, 1)
            cnt = jnp.sum((neg_bits > mid).astype(f32), axis=1, keepdims=True)
            up = cnt >= k_bg
            return jnp.where(up, mid, lo), jnp.where(up, hi, mid)

        _, thr_bits = lax.fori_loop(0, _N_VALUE_BISECT, value_bisect, (lo0, hi0),
                                    unroll=True)
        thr_val = pltpu.bitcast(thr_bits, f32)                      # exact k-th largest bg CE
        sel_gt = neg_bits > thr_bits
        cnt_gt = jnp.sum(sel_gt.astype(f32), axis=1, keepdims=True)
        tie = jnp.maximum(k_bg - cnt_gt, 0.0)
        bg_part = jnp.sum(jnp.where(sel_gt, ce, 0.0), axis=1, keepdims=True)
        bg_part = jnp.where(k_bg > 0.5,
                            bg_part + jnp.where(tie > 0.0, tie * thr_val, 0.0),
                            0.0)

        # Degenerate case (3*nfg > num_bg): torch's rank < num_negative also selects `extra`
        # foreground anchors (tie order at -inf is unspecified in torch; we take the lowest
        # indices).  Kept unconditional: it contributes exactly 0 when extra == 0.
        a_row = lax.broadcasted_iota(jnp.int32, (1, A), 1).astype(f32)
        fg_f = fg_cls_mask.astype(f32)

        def index_bisect(_, carry):
            lo, hi = carry
            mid = jnp.floor(0.5 * (lo + hi))
            cnt = jnp.sum(jnp.where(a_row < mid, fg_f, 0.0), axis=1, keepdims=True)
            ok = cnt >= extra
            return jnp.where(ok, lo, mid + 1.0), jnp.where(ok, mid, hi)

        n_idx_iter = max(1, int(num_anchors).bit_length()) + 1
        _, m_sel = lax.fori_loop(0, n_idx_iter, index_bisect,
                                 (jnp.zeros((1, 1), f32), jnp.full((1, 1), float(A), f32)),
                                 unroll=True)
        fg_extra = jnp.sum(jnp.where(jnp.logical_and(fg_cls_mask, a_row < m_sel), ce, 0.0),
                           axis=1, keepdims=True)
        cls_bg_sum = bg_part + fg_extra

        # ---------- per-image partial sums: [bbox_sum, cls_fg, cls_bg, num_fg]
        lane = lax.broadcasted_iota(jnp.int32, (1, 4), 1)
        outv = (jnp.where(lane == 0, bbox_sum, 0.0)
                + jnp.where(lane == 1, cls_fg_sum, 0.0)
                + jnp.where(lane == 2, cls_bg_sum, 0.0)
                + jnp.where(lane == 3, num_fg, 0.0))
        out_ref[...] = outv.reshape(1, 1, 4)


def ssd_loss(cls_logits, bbox_regression, anchors, gt_boxes, gt_labels, num_gt):
    B, A, C = cls_logits.shape
    G = gt_boxes.shape[1]

    # Only tiny glue on the host side; the large per-anchor tensors go in untouched (model
    # layout), avoiding an extra HBM read+write pass.  bf16 activations are also accepted
    # (cast to f32 inside the kernel).
    gt_boxes_f = gt_boxes.astype(jnp.float32)                     # (B, G, 4)
    gt_labels_f = gt_labels.astype(jnp.float32).reshape(B, 1, G)  # (B, 1, G)

    kernel = functools.partial(ssd_loss_kernel,
                               num_classes=C, num_anchors=A, max_gt=G)

    parts = pl.pallas_call(
        kernel,
        out_shape=jax.ShapeDtypeStruct((B, 1, 4), jnp.float32),
        grid_spec=pltpu.PrefetchScalarGridSpec(
            num_scalar_prefetch=1,
            grid=(B,),
            in_specs=[
                pl.BlockSpec((1, A, C), lambda b, ng: (b, 0, 0)),
                pl.BlockSpec((1, A, 4), lambda b, ng: (b, 0, 0)),
                pl.BlockSpec((1, A, 4), lambda b, ng: (b, 0, 0)),
                pl.BlockSpec((1, G, 4), lambda b, ng: (b, 0, 0)),
                pl.BlockSpec((1, 1, G), lambda b, ng: (b, 0, 0)),
            ],
            out_specs=pl.BlockSpec((1, 1, 4), lambda b, ng: (b, 0, 0)),
        ),
        compiler_params=pltpu.CompilerParams(
            dimension_semantics=("parallel",),        # per-image partials: megacore-splittable
            vmem_limit_bytes=48 * 1024 * 1024,        # above v6e/v7x scoped default, < physical
        ),
    )(num_gt.astype(jnp.int32),
      cls_logits, bbox_regression, anchors, gt_boxes_f, gt_labels_f)

    sums = jnp.sum(parts[:, 0, :], axis=0)            # [bbox, cls_fg, cls_bg, num_fg]
    n = jnp.maximum(sums[3], 1.0)                     # N = max(1, num_foreground)
    return {"bbox_loss": 2.0 * sums[0] / n,
            "cls_loss": (sums[1] + sums[2]) / n}


if __name__ == "__main__":
    B, A, C, G = 3, 128, 8, 8   # batch, anchors per image, classes (last = background), max GT

    key = jax.random.PRNGKey(0)
    k1, k2, k3, k4, k5, k6, k7 = jax.random.split(key, 7)

    # anchors: random xyxy boxes with positive area in a 128x128 "image"
    a_ctr = jax.random.uniform(k1, (B, A, 2), minval=10.0, maxval=118.0)
    a_sz = jax.random.uniform(k2, (B, A, 2), minval=10.0, maxval=40.0)
    anchors = jnp.concatenate([a_ctr - a_sz / 2.0, a_ctr + a_sz / 2.0], axis=-1)

    # padded ground-truth boxes / labels; num_gt marks the valid prefix (0 == "boxes is None")
    g_ctr = jax.random.uniform(k3, (B, G, 2), minval=20.0, maxval=108.0)
    g_sz = jax.random.uniform(k4, (B, G, 2), minval=15.0, maxval=50.0)
    gt_boxes = jnp.concatenate([g_ctr - g_sz / 2.0, g_ctr + g_sz / 2.0], axis=-1)
    gt_labels = jax.random.randint(k5, (B, G), 0, C - 1)   # foreground classes 0..C-2
    num_gt = jnp.array([5, 3, 0], dtype=jnp.int32)          # last image: boxes is None

    cls_logits = jax.random.normal(k6, (B, A, C), dtype=jnp.float32)
    bbox_regression = 0.1 * jax.random.normal(k7, (B, A, 4), dtype=jnp.float32)

    losses = ssd_loss(cls_logits, bbox_regression, anchors, gt_boxes, gt_labels, num_gt)
    jax.block_until_ready(losses)
    print("KERNEL_OK")
</pallas_src>

<mosaic_0001>
module attributes {stable_mosaic.version = 11 : i64} {
  func.func @ssd_loss_kernel(%arg0: i32, %arg1: memref<3xi32, #tpu.memory_space<smem>>, %arg2: memref<1x128x8xf32, #tpu.memory_space<vmem>>, %arg3: memref<1x128x4xf32, #tpu.memory_space<vmem>>, %arg4: memref<1x128x4xf32, #tpu.memory_space<vmem>>, %arg5: memref<1x8x4xf32, #tpu.memory_space<vmem>>, %arg6: memref<1x1x8xf32, #tpu.memory_space<vmem>>, %arg7: memref<1x1x4xf32, #tpu.memory_space<vmem>>) attributes {dimension_semantics = [#tpu.dimension_semantics<parallel>], iteration_bounds = array<i64: 3>, scalar_prefetch = 1 : i64, scratch_operands = 0 : i64, tpu.core_type = #tpu.core_type<tc>, window_params = [{transform_indices = @transform_0, window_bounds = array<i64: 1, 128, 8>}, {transform_indices = @transform_1, window_bounds = array<i64: 1, 128, 4>}, {transform_indices = @transform_2, window_bounds = array<i64: 1, 128, 4>}, {transform_indices = @transform_3, window_bounds = array<i64: 1, 8, 4>}, {transform_indices = @transform_4, window_bounds = array<i64: 1, 1, 8>}, {transform_indices = @transform_5, window_bounds = array<i64: 1, 1, 4>}]} {
    %0 = arith.index_cast %arg0 : i32 to index
    %1 = memref.load %arg1[%0] : memref<3xi32, #tpu.memory_space<smem>>
    %c0_i32 = arith.constant 0 : i32
    %2 = arith.cmpi eq, %1, %c0_i32 : i32
    %3 = arith.extui %2 : i1 to i32
    %c0_i32_0 = arith.constant 0 : i32
    %4 = arith.cmpi ne, %3, %c0_i32_0 : i32
    scf.if %4 {
      %cst = arith.constant 0.000000e+00 : f32
      %8 = vector.broadcast %cst : f32 to vector<1x1x4xf32>
      %c0 = arith.constant 0 : index
      %c0_3 = arith.constant 0 : index
      %c0_4 = arith.constant 0 : index
      %9 = vector.load %arg7[%c0, %c0_3, %c0_4] : memref<1x1x4xf32, #tpu.memory_space<vmem>>, vector<1x1x4xf32>
      tpu.vector_store %arg7[%c0, %c0_3, %c0_4], %8 {strides = array<i32>} : memref<1x1x4xf32, #tpu.memory_space<vmem>>, vector<1x1x4xf32>,
    } else {
    }
    %c0_i32_1 = arith.constant 0 : i32
    %5 = arith.cmpi sgt, %1, %c0_i32_1 : i32
    %6 = arith.extui %5 : i1 to i32
    %c0_i32_2 = arith.constant 0 : i32
    %7 = arith.cmpi ne, %6, %c0_i32_2 : i32
    scf.if %7 {
      %c0 = arith.constant 0 : index
      %c0_3 = arith.constant 0 : index
      %c0_4 = arith.constant 0 : index
      %8 = vector.load %arg4[%c0, %c0_3, %c0_4] : memref<1x128x4xf32, #tpu.memory_space<vmem>>, vector<1x128x4xf32>
      %9 = vector.shape_cast %8 : vector<1x128x4xf32> to vector<128x4xf32>
      %10 = tpu.transpose %9, [1, 0] : vector<128x4xf32> -> vector<4x128xf32>
      %c0_5 = arith.constant 0 : index
      %c0_6 = arith.constant 0 : index
      %c0_7 = arith.constant 0 : index
      %11 = vector.load %arg3[%c0_5, %c0_6, %c0_7] : memref<1x128x4xf32, #tpu.memory_space<vmem>>, vector<1x128x4xf32>
      %12 = vector.shape_cast %11 : vector<1x128x4xf32> to vector<128x4xf32>
      %13 = tpu.transpose %12, [1, 0] : vector<128x4xf32> -> vector<4x128xf32>
      %c0_8 = arith.constant 0 : index
      %c0_9 = arith.constant 0 : index
      %c0_10 = arith.constant 0 : index
      %14 = vector.load %arg2[%c0_8, %c0_9, %c0_10] : memref<1x128x8xf32, #tpu.memory_space<vmem>>, vector<1x128x8xf32>
      %15 = vector.shape_cast %14 : vector<1x128x8xf32> to vector<128x8xf32>
      %16 = tpu.transpose %15, [1, 0] : vector<128x8xf32> -> vector<8x128xf32>
      %c0_11 = arith.constant 0 : index
      %c0_12 = arith.constant 0 : index
      %c0_13 = arith.constant 0 : index
      %17 = vector.load %arg5[%c0_11, %c0_12, %c0_13] : memref<1x8x4xf32, #tpu.memory_space<vmem>>, vector<1x8x4xf32>
      %18 = vector.shape_cast %17 : vector<1x8x4xf32> to vector<8x4xf32>
      %c0_14 = arith.constant 0 : index
      %c0_15 = arith.constant 0 : index
      %c0_16 = arith.constant 0 : index
      %19 = vector.load %arg6[%c0_14, %c0_15, %c0_16] : memref<1x1x8xf32, #tpu.memory_space<vmem>>, vector<1x1x8xf32>
      %20 = vector.shape_cast %19 : vector<1x1x8xf32> to vector<1x8xf32>
      %21 = vector.extract_strided_slice %10 {offsets = [0, 0], sizes = [1, 128], strides = [1, 1]} : vector<4x128xf32> to vector<1x128xf32>
      %22 = vector.extract_strided_slice %10 {offsets = [1, 0], sizes = [1, 128], strides = [1, 1]} : vector<4x128xf32> to vector<1x128xf32>
      %23 = vector.extract_strided_slice %10 {offsets = [2, 0], sizes = [1, 128], strides = [1, 1]} : vector<4x128xf32> to vector<1x128xf32>
      %24 = vector.extract_strided_slice %10 {offsets = [3, 0], sizes = [1, 128], strides = [1, 1]} : vector<4x128xf32> to vector<1x128xf32>
      %25 = vector.extract_strided_slice %18 {offsets = [0, 0], sizes = [8, 1], strides = [1, 1]} : vector<8x4xf32> to vector<8x1xf32>
      %26 = vector.extract_strided_slice %18 {offsets = [0, 1], sizes = [8, 1], strides = [1, 1]} : vector<8x4xf32> to vector<8x1xf32>
      %27 = vector.extract_strided_slice %18 {offsets = [0, 2], sizes = [8, 1], strides = [1, 1]} : vector<8x4xf32> to vector<8x1xf32>
      %28 = vector.extract_strided_slice %18 {offsets = [0, 3], sizes = [8, 1], strides = [1, 1]} : vector<8x4xf32> to vector<8x1xf32>
      %29 = vector.extract_strided_slice %10 {offsets = [2, 0], sizes = [2, 128], strides = [1, 1]} : vector<4x128xf32> to vector<2x128xf32>
      %30 = vector.extract_strided_slice %10 {offsets = [0, 0], sizes = [2, 128], strides = [1, 1]} : vector<4x128xf32> to vector<2x128xf32>
      %31 = arith.subf %29, %30 : vector<2x128xf32>
      %32 = vector.extract_strided_slice %31 {offsets = [0, 0], sizes = [1, 128], strides = [1, 1]} : vector<2x128xf32> to vector<1x128xf32>
      %33 = vector.extract_strided_slice %31 {offsets = [1, 0], sizes = [1, 128], strides = [1, 1]} : vector<2x128xf32> to vector<1x128xf32>
      %34 = arith.mulf %32, %33 : vector<1x128xf32>
      %35 = arith.subf %27, %25 : vector<8x1xf32>
      %36 = arith.subf %28, %26 : vector<8x1xf32>
      %37 = arith.mulf %35, %36 : vector<8x1xf32>
      %38 = vector.broadcast %25 : vector<8x1xf32> to vector<8x128xf32>
      %39 = vector.broadcast %21 : vector<1x128xf32> to vector<8x128xf32>
      %40 = arith.maximumf %38, %39 : vector<8x128xf32>
      %41 = vector.broadcast %26 : vector<8x1xf32> to vector<8x128xf32>
      %42 = vector.broadcast %22 : vector<1x128xf32> to vector<8x128xf32>
      %43 = arith.maximumf %41, %42 : vector<8x128xf32>
      %44 = vector.broadcast %27 : vector<8x1xf32> to vector<8x128xf32>
      %45 = vector.broadcast %23 : vector<1x128xf32> to vector<8x128xf32>
      %46 = arith.minimumf %44, %45 : vector<8x128xf32>
      %47 = vector.broadcast %28 : vector<8x1xf32> to vector<8x128xf32>
      %48 = vector.broadcast %24 : vector<1x128xf32> to vector<8x128xf32>
      %49 = arith.minimumf %47, %48 : vector<8x128xf32>
      %50 = arith.cmpf olt, %40, %46 : vector<8x128xf32>
      %51 = arith.cmpf olt, %43, %49 : vector<8x128xf32>
      %52 = arith.andi %50, %51 : vector<8x128xi1>
      %53 = arith.extui %52 : vector<8x128xi1> to vector<8x128xi32>
      %54 = arith.sitofp %53 : vector<8x128xi32> to vector<8x128xf32>
      %55 = arith.subf %46, %40 : vector<8x128xf32>
      %56 = arith.subf %49, %43 : vector<8x128xf32>
      %57 = arith.mulf %55, %56 : vector<8x128xf32>
      %58 = arith.mulf %57, %54 : vector<8x128xf32>
      %59 = vector.broadcast %34 : vector<1x128xf32> to vector<8x128xf32>
      %60 = vector.broadcast %37 : vector<8x1xf32> to vector<8x128xf32>
      %61 = arith.addf %59, %60 : vector<8x128xf32>
      %62 = arith.subf %61, %58 : vector<8x128xf32>
      %cst = arith.constant 9.99999996E-13 : f32
      %63 = vector.broadcast %cst : f32 to vector<8x128xf32>
      %64 = arith.maximumf %62, %63 : vector<8x128xf32>
      %65 = tpu.reciprocal %64 {approx = true} : vector<8x128xf32> -> vector<8x128xf32>
      %66 = arith.mulf %58, %65 : vector<8x128xf32>
      %67 = tpu.iota {dimensions = array<i32: 0>} : vector<8x128xi32>
      %68 = arith.sitofp %67 : vector<8x128xi32> to vector<8x128xf32>
      %69 = tpu.iota {dimensions = array<i32: 1>} : vector<8x128xi32>
      %70 = arith.sitofp %69 : vector<8x128xi32> to vector<8x128xf32>
      %71 = tpu.iota {dimensions = array<i32: 0>} : vector<8x1xi32>
      %72 = vector.broadcast %1 : i32 to vector<8x1xi32>
      %73 = arith.cmpi slt, %71, %72 : vector<8x1xi32>
      %cst_17 = arith.constant -1.000000e+30 : f32
      %74 = vector.shape_cast %73 : vector<8x1xi1> to vector<8x1xi1>
      %75 = vector.broadcast %74 : vector<8x1xi1> to vector<8x128xi1>
      %76 = vector.broadcast %cst_17 : f32 to vector<8x128xf32>
      %77 = arith.select %75, %66, %76 : vector<8x128xi1>, vector<8x128xf32>
      %cst_18 = arith.constant dense<0xFF800000> : vector<128xf32>
      %78 = vector.multi_reduction <maximumf>, %77, %cst_18 [0] : vector<8x128xf32> to vector<128xf32>
      %79 = vector.shape_cast %78 : vector<128xf32> to vector<1x128xf32>
      %80 = vector.broadcast %79 : vector<1x128xf32> to vector<8x128xf32>
      %81 = arith.cmpf oeq, %77, %80 : vector<8x128xf32>
      %cst_19 = arith.constant 8.000000e+00 : f32
      %82 = vector.broadcast %cst_19 : f32 to vector<8x128xf32>
      %83 = arith.select %81, %68, %82 : vector<8x128xi1>, vector<8x128xf32>
      %cst_20 = arith.constant dense<0x7F800000> : vector<128xf32>
      %84 = vector.multi_reduction <minimumf>, %83, %cst_20 [0] : vector<8x128xf32> to vector<128xf32>
      %85 = vector.shape_cast %84 : vector<128xf32> to vector<1x128xf32>
      %cst_21 = arith.constant 4.500000e-01 : f32
      %86 = vector.broadcast %cst_21 : f32 to vector<1x128xf32>
      %87 = arith.cmpf olt, %79, %86 : vector<1x128xf32>
      %cst_22 = arith.constant -1.000000e+00 : f32
      %88 = vector.broadcast %cst_22 : f32 to vector<1x128xf32>
      %89 = arith.select %87, %88, %85 : vector<1x128xi1>, vector<1x128xf32>
      %cst_23 = arith.constant dense<0xFF800000> : vector<8xf32>
      %90 = vector.multi_reduction <maximumf>, %77, %cst_23 [1] : vector<8x128xf32> to vector<8xf32>
      %91 = vector.shape_cast %90 : vector<8xf32> to vector<8x1xf32>
      %92 = vector.broadcast %91 : vector<8x1xf32> to vector<8x128xf32>
      %93 = arith.cmpf oeq, %77, %92 : vector<8x128xf32>
      %cst_24 = arith.constant 1.280000e+02 : f32
      %94 = vector.broadcast %cst_24 : f32 to vector<8x128xf32>
      %95 = arith.select %93, %70, %94 : vector<8x128xi1>, vector<8x128xf32>
      %cst_25 = arith.constant dense<0x7F800000> : vector<8xf32>
      %96 = vector.multi_reduction <minimumf>, %95, %cst_25 [1] : vector<8x128xf32> to vector<8xf32>
      %97 = vector.shape_cast %96 : vector<8xf32> to vector<8x1xf32>
      %98 = vector.broadcast %97 : vector<8x1xf32> to vector<8x128xf32>
      %99 = arith.cmpf oeq, %70, %98 : vector<8x128xf32>
      %100 = vector.broadcast %73 : vector<8x1xi1> to vector<8x128xi1>
      %101 = arith.andi %99, %100 : vector<8x128xi1>
      %cst_26 = arith.constant -1.000000e+00 : f32
      %102 = vector.broadcast %cst_26 : f32 to vector<8x128xf32>
      %103 = arith.select %101, %68, %102 : vector<8x128xi1>, vector<8x128xf32>
      %cst_27 = arith.constant dense<0xFF800000> : vector<128xf32>
      %104 = vector.multi_reduction <maximumf>, %103, %cst_27 [0] : vector<8x128xf32> to vector<128xf32>
      %105 = vector.shape_cast %104 : vector<128xf32> to vector<1x128xf32>
      %cst_28 = arith.constant 0.000000e+00 : f32
      %106 = vector.broadcast %cst_28 : f32 to vector<1x128xf32>
      %107 = arith.cmpf oge, %105, %106 : vector<1x128xf32>
      %108 = arith.select %107, %105, %89 : vector<1x128xi1>, vector<1x128xf32>
      %cst_29 = arith.constant 0.000000e+00 : f32
      %109 = vector.broadcast %cst_29 : f32 to vector<1x128xf32>
      %110 = arith.cmpf oge, %108, %109 : vector<1x128xf32>
      %111 = arith.extui %110 : vector<1x128xi1> to vector<1x128xi32>
      %112 = arith.sitofp %111 : vector<1x128xi32> to vector<1x128xf32>
      %cst_30 = arith.constant dense<0.000000e+00> : vector<1xf32>
      %113 = vector.multi_reduction <add>, %112, %cst_30 [1] : vector<1x128xf32> to vector<1xf32>
      %114 = vector.shape_cast %113 : vector<1xf32> to vector<1x1xf32>
      %115 = vector.broadcast %108 : vector<1x128xf32> to vector<8x128xf32>
      %116 = arith.cmpf oeq, %68, %115 : vector<8x128xf32>
      %117 = vector.broadcast %110 : vector<1x128xi1> to vector<8x128xi1>
      %118 = arith.andi %116, %117 : vector<8x128xi1>
      %119 = arith.extui %118 : vector<8x128xi1> to vector<8x128xi32>
      %120 = arith.sitofp %119 : vector<8x128xi32> to vector<8x128xf32>
      %121 = tpu.transpose %18, [1, 0] : vector<8x4xf32> -> vector<4x8xf32>
      %122 = tpu.concatenate %121, %20 in 0 : vector<4x8xf32>, vector<1x8xf32> -> vector<5x8xf32>
      %cst_31 = arith.constant dense<0.000000e+00> : vector<5x128xf32>
      %123 = tpu.matmul %122, %120, %cst_31 {dimension_numbers = #tpu.dot_dimension_numbers<[1], [0], [0], [1], [0, 0, 1, 1], [], []>} : vector<5x8xf32>, vector<8x128xf32>, vector<5x128xf32> -> vector<5x128xf32>
      %124 = vector.extract_strided_slice %123 {offsets = [0, 0], sizes = [2, 128], strides = [1, 1]} : vector<5x128xf32> to vector<2x128xf32>
      %125 = vector.extract_strided_slice %123 {offsets = [2, 0], sizes = [2, 128], strides = [1, 1]} : vector<5x128xf32> to vector<2x128xf32>
      %126 = vector.extract_strided_slice %123 {offsets = [4, 0], sizes = [1, 128], strides = [1, 1]} : vector<5x128xf32> to vector<1x128xf32>
      %127 = vector.extract_strided_slice %10 {offsets = [0, 0], sizes = [2, 128], strides = [1, 1]} : vector<4x128xf32> to vector<2x128xf32>
      %cst_32 = arith.constant 5.000000e-01 : f32
      %128 = vector.broadcast %cst_32 : f32 to vector<2x128xf32>
      %129 = arith.mulf %128, %31 : vector<2x128xf32>
      %130 = arith.addf %127, %129 : vector<2x128xf32>
      %131 = vector.extract_strided_slice %13 {offsets = [0, 0], sizes = [2, 128], strides = [1, 1]} : vector<4x128xf32> to vector<2x128xf32>
      %132 = vector.extract_strided_slice %13 {offsets = [2, 0], sizes = [2, 128], strides = [1, 1]} : vector<4x128xf32> to vector<2x128xf32>
      %cst_33 = arith.constant 4.13516665 : f32
      %133 = vector.broadcast %cst_33 : f32 to vector<2x128xf32>
      %134 = arith.minimumf %132, %133 : vector<2x128xf32>
      %135 = arith.mulf %131, %31 : vector<2x128xf32>
      %136 = arith.addf %135, %130 : vector<2x128xf32>
      %137 = math.exp %134 : vector<2x128xf32>
      %138 = arith.mulf %137, %31 : vector<2x128xf32>
      %cst_34 = arith.constant 5.000000e-01 : f32
      %139 = vector.broadcast %cst_34 : f32 to vector<2x128xf32>
      %140 = arith.mulf %139, %138 : vector<2x128xf32>
      %141 = arith.subf %136, %140 : vector<2x128xf32>
      %cst_35 = arith.constant 5.000000e-01 : f32
      %142 = vector.broadcast %cst_35 : f32 to vector<2x128xf32>
      %143 = arith.mulf %142, %138 : vector<2x128xf32>
      %144 = arith.addf %136, %143 : vector<2x128xf32>
      %cst_36 = arith.constant 5.000000e-01 : f32
      %145 = vector.broadcast %cst_36 : f32 to vector<2x128xf32>
      %146 = arith.mulf %145, %144 : vector<2x128xf32>
      %147 = arith.subf %141, %146 : vector<2x128xf32>
      %cst_37 = arith.constant 5.000000e-01 : f32
      %148 = vector.broadcast %cst_37 : f32 to vector<2x128xf32>
      %149 = arith.mulf %148, %144 : vector<2x128xf32>
      %150 = arith.addf %141, %149 : vector<2x128xf32>
      %cst_38 = arith.constant 5.000000e-01 : f32
      %151 = vector.broadcast %cst_38 : f32 to vector<2x128xf32>
      %152 = arith.mulf %151, %125 : vector<2x128xf32>
      %153 = arith.subf %124, %152 : vector<2x128xf32>
      %cst_39 = arith.constant 5.000000e-01 : f32
      %154 = vector.broadcast %cst_39 : f32 to vector<2x128xf32>
      %155 = arith.mulf %154, %125 : vector<2x128xf32>
      %156 = arith.addf %124, %155 : vector<2x128xf32>
      %157 = arith.maximumf %147, %153 : vector<2x128xf32>
      %158 = arith.minimumf %150, %156 : vector<2x128xf32>
      %159 = vector.extract_strided_slice %157 {offsets = [0, 0], sizes = [1, 128], strides = [1, 1]} : vector<2x128xf32> to vector<1x128xf32>
      %160 = vector.extract_strided_slice %158 {offsets = [0, 0], sizes = [1, 128], strides = [1, 1]} : vector<2x128xf32> to vector<1x128xf32>
      %161 = arith.cmpf olt, %159, %160 : vector<1x128xf32>
      %162 = vector.extract_strided_slice %157 {offsets = [1, 0], sizes = [1, 128], strides = [1, 1]} : vector<2x128xf32> to vector<1x128xf32>
      %163 = vector.extract_strided_slice %158 {offsets = [1, 0], sizes = [1, 128], strides = [1, 1]} : vector<2x128xf32> to vector<1x128xf32>
      %164 = arith.cmpf olt, %162, %163 : vector<1x128xf32>
      %165 = arith.andi %161, %164 : vector<1x128xi1>
      %166 = arith.extui %165 : vector<1x128xi1> to vector<1x128xi32>
      %167 = arith.sitofp %166 : vector<1x128xi32> to vector<1x128xf32>
      %168 = arith.subf %158, %157 : vector<2x128xf32>
      %169 = vector.extract_strided_slice %168 {offsets = [0, 0], sizes = [1, 128], strides = [1, 1]} : vector<2x128xf32> to vector<1x128xf32>
      %170 = vector.extract_strided_slice %168 {offsets = [1, 0], sizes = [1, 128], strides = [1, 1]} : vector<2x128xf32> to vector<1x128xf32>
      %171 = arith.mulf %169, %170 : vector<1x128xf32>
      %172 = arith.mulf %171, %167 : vector<1x128xf32>
      %173 = vector.extract_strided_slice %144 {offsets = [0, 0], sizes = [1, 128], strides = [1, 1]} : vector<2x128xf32> to vector<1x128xf32>
      %174 = vector.extract_strided_slice %144 {offsets = [1, 0], sizes = [1, 128], strides = [1, 1]} : vector<2x128xf32> to vector<1x128xf32>
      %175 = arith.mulf %173, %174 : vector<1x128xf32>
      %176 = vector.extract_strided_slice %125 {offsets = [0, 0], sizes = [1, 128], strides = [1, 1]} : vector<2x128xf32> to vector<1x128xf32>
      %177 = vector.extract_strided_slice %125 {offsets = [1, 0], sizes = [1, 128], strides = [1, 1]} : vector<2x128xf32> to vector<1x128xf32>
      %178 = arith.mulf %176, %177 : vector<1x128xf32>
      %179 = arith.addf %175, %178 : vector<1x128xf32>
      %180 = arith.subf %179, %172 : vector<1x128xf32>
      %cst_40 = arith.constant 1.000000e-16 : f32
      %181 = vector.broadcast %cst_40 : f32 to vector<1x128xf32>
      %182 = arith.addf %180, %181 : vector<1x128xf32>
      %183 = tpu.reciprocal %182 {approx = true} : vector<1x128xf32> -> vector<1x128xf32>
      %184 = arith.mulf %172, %183 : vector<1x128xf32>
      %185 = arith.minimumf %147, %153 : vector<2x128xf32>
      %186 = arith.maximumf %150, %156 : vector<2x128xf32>
      %187 = arith.subf %186, %185 : vector<2x128xf32>
      %188 = vector.extract_strided_slice %187 {offsets = [0, 0], sizes = [1, 128], strides = [1, 1]} : vector<2x128xf32> to vector<1x128xf32>
      %189 = vector.extract_strided_slice %187 {offsets = [1, 0], sizes = [1, 128], strides = [1, 1]} : vector<2x128xf32> to vector<1x128xf32>
      %190 = arith.mulf %188, %189 : vector<1x128xf32>
      %191 = arith.subf %190, %180 : vector<1x128xf32>
      %cst_41 = arith.constant 1.000000e-16 : f32
      %192 = vector.broadcast %cst_41 : f32 to vector<1x128xf32>
      %193 = arith.maximumf %190, %192 : vector<1x128xf32>
      %194 = tpu.reciprocal %193 {approx = true} : vector<1x128xf32> -> vector<1x128xf32>
      %195 = arith.mulf %191, %194 : vector<1x128xf32>
      %196 = arith.subf %184, %195 : vector<1x128xf32>
      %cst_42 = arith.constant -1.000000e+00 : f32
      %cst_43 = arith.constant 1.000000e+00 : f32
      %197 = vector.broadcast %cst_42 : f32 to vector<1x128xf32>
      %198 = arith.maximumf %197, %196 : vector<1x128xf32>
      %199 = vector.broadcast %cst_43 : f32 to vector<1x128xf32>
      %200 = arith.minimumf %199, %198 : vector<1x128xf32>
      %cst_44 = arith.constant 1.000000e+00 : f32
      %201 = vector.broadcast %cst_44 : f32 to vector<1x128xf32>
      %202 = arith.subf %201, %200 : vector<1x128xf32>
      %cst_45 = arith.constant 0.000000e+00 : f32
      %203 = vector.broadcast %cst_45 : f32 to vector<1x128xf32>
      %204 = arith.select %110, %202, %203 : vector<1x128xi1>, vector<1x128xf32>
      %cst_46 = arith.constant dense<0.000000e+00> : vector<1xf32>
      %205 = vector.multi_reduction <add>, %204, %cst_46 [1] : vector<1x128xf32> to vector<1xf32>
      %206 = vector.shape_cast %205 : vector<1xf32> to vector<1x1xf32>
      %cst_47 = arith.constant 7.000000e+00 : f32
      %207 = vector.broadcast %cst_47 : f32 to vector<1x128xf32>
      %208 = arith.select %110, %126, %207 : vector<1x128xi1>, vector<1x128xf32>
      %209 = tpu.iota {dimensions = array<i32: 0>} : vector<8x128xi32>
      %210 = arith.sitofp %209 : vector<8x128xi32> to vector<8x128xf32>
      %cst_48 = arith.constant dense<0xFF800000> : vector<128xf32>
      %211 = vector.multi_reduction <maximumf>, %16, %cst_48 [0] : vector<8x128xf32> to vector<128xf32>
      %212 = vector.shape_cast %211 : vector<128xf32> to vector<1x128xf32>
      %213 = vector.broadcast %212 : vector<1x128xf32> to vector<8x128xf32>
      %214 = arith.subf %16, %213 : vector<8x128xf32>
      %215 = math.exp %214 : vector<8x128xf32>
      %cst_49 = arith.constant dense<0.000000e+00> : vector<128xf32>
      %216 = vector.multi_reduction <add>, %215, %cst_49 [0] : vector<8x128xf32> to vector<128xf32>
      %217 = vector.shape_cast %216 : vector<128xf32> to vector<1x128xf32>
      %218 = math.log %217 : vector<1x128xf32>
      %219 = arith.addf %212, %218 : vector<1x128xf32>
      %220 = vector.broadcast %208 : vector<1x128xf32> to vector<8x128xf32>
      %221 = arith.cmpf oeq, %210, %220 : vector<8x128xf32>
      %cst_50 = arith.constant 0.000000e+00 : f32
      %222 = vector.broadcast %cst_50 : f32 to vector<8x128xf32>
      %223 = arith.select %221, %16, %222 : vector<8x128xi1>, vector<8x128xf32>
      %cst_51 = arith.constant dense<0.000000e+00> : vector<128xf32>
      %224 = vector.multi_reduction <add>, %223, %cst_51 [0] : vector<8x128xf32> to vector<128xf32>
      %225 = vector.shape_cast %224 : vector<128xf32> to vector<1x128xf32>
      %226 = arith.subf %219, %225 : vector<1x128xf32>
      %cst_52 = arith.constant 7.000000e+00 : f32
      %227 = vector.broadcast %cst_52 : f32 to vector<1x128xf32>
      %228 = arith.cmpf olt, %208, %227 : vector<1x128xf32>
      %229 = arith.extui %228 : vector<1x128xi1> to vector<1x128xi32>
      %230 = arith.sitofp %229 : vector<1x128xi32> to vector<1x128xf32>
      %cst_53 = arith.constant dense<0.000000e+00> : vector<1xf32>
      %231 = vector.multi_reduction <add>, %230, %cst_53 [1] : vector<1x128xf32> to vector<1xf32>
      %232 = vector.shape_cast %231 : vector<1xf32> to vector<1x1xf32>
      %cst_54 = arith.constant 0.000000e+00 : f32
      %233 = vector.broadcast %cst_54 : f32 to vector<1x128xf32>
      %234 = arith.select %228, %226, %233 : vector<1x128xi1>, vector<1x128xf32>
      %cst_55 = arith.constant dense<0.000000e+00> : vector<1xf32>
      %235 = vector.multi_reduction <add>, %234, %cst_55 [1] : vector<1x128xf32> to vector<1xf32>
      %236 = vector.shape_cast %235 : vector<1xf32> to vector<1x1xf32>
      %cst_56 = arith.constant 1.280000e+02 : f32
      %237 = vector.broadcast %cst_56 : f32 to vector<1x1xf32>
      %238 = arith.subf %237, %232 : vector<1x1xf32>
      %cst_57 = arith.constant 3.000000e+00 : f32
      %239 = vector.broadcast %cst_57 : f32 to vector<1x1xf32>
      %240 = arith.mulf %239, %232 : vector<1x1xf32>
      %cst_58 = arith.constant 1.280000e+02 : f32
      %241 = vector.broadcast %cst_58 : f32 to vector<1x1xf32>
      %242 = arith.minimumf %240, %241 : vector<1x1xf32>
      %243 = arith.minimumf %242, %238 : vector<1x1xf32>
      %244 = arith.subf %242, %238 : vector<1x1xf32>
      %cst_59 = arith.constant 0.000000e+00 : f32
      %245 = vector.broadcast %cst_59 : f32 to vector<1x1xf32>
      %246 = arith.maximumf %244, %245 : vector<1x1xf32>
      %cst_60 = arith.constant -1.000000e+00 : f32
      %247 = vector.broadcast %cst_60 : f32 to vector<1x128xf32>
      %248 = arith.select %228, %247, %226 : vector<1x128xi1>, vector<1x128xf32>
      %249 = tpu.bitcast %248 : vector<1x128xf32> -> vector<1x128xi32>
      %c-1_i32 = arith.constant -1 : i32
      %250 = vector.broadcast %c-1_i32 : i32 to vector<1x1xi32>
      %c2139095040_i32 = arith.constant 2139095040 : i32
      %251 = vector.broadcast %c2139095040_i32 : i32 to vector<1x1xi32>
      %c0_i32_61 = arith.constant 0 : i32
      %252 = arith.subi %251, %250 : vector<1x1xi32>
      %c1_i32 = arith.constant 1 : i32
      %253 = vector.broadcast %c1_i32 : i32 to vector<1x1xi32>
      %254 = arith.shrsi %252, %253 : vector<1x1xi32>
      %255 = arith.addi %250, %254 : vector<1x1xi32>
      %256 = vector.broadcast %255 : vector<1x1xi32> to vector<1x128xi32>
      %257 = arith.cmpi sgt, %249, %256 : vector<1x128xi32>
      %258 = arith.extui %257 : vector<1x128xi1> to vector<1x128xi32>
      %259 = arith.sitofp %258 : vector<1x128xi32> to vector<1x128xf32>
      %cst_62 = arith.constant dense<0.000000e+00> : vector<1xf32>
      %260 = vector.multi_reduction <add>, %259, %cst_62 [1] : vector<1x128xf32> to vector<1xf32>
      %261 = vector.shape_cast %260 : vector<1xf32> to vector<1x1xf32>
      %262 = arith.cmpf oge, %261, %243 : vector<1x1xf32>
      %263 = arith.select %262, %255, %250 : vector<1x1xi1>, vector<1x1xi32>
      %264 = arith.select %262, %251, %255 : vector<1x1xi1>, vector<1x1xi32>
      %c1_i32_63 = arith.constant 1 : i32
      %265 = arith.subi %264, %263 : vector<1x1xi32>
      %c1_i32_64 = arith.constant 1 : i32
      %266 = vector.broadcast %c1_i32_64 : i32 to vector<1x1xi32>
      %267 = arith.shrsi %265, %266 : vector<1x1xi32>
      %268 = arith.addi %263, %267 : vector<1x1xi32>
      %269 = vector.broadcast %268 : vector<1x1xi32> to vector<1x128xi32>
      %270 = arith.cmpi sgt, %249, %269 : vector<1x128xi32>
      %271 = arith.extui %270 : vector<1x128xi1> to vector<1x128xi32>
      %272 = arith.sitofp %271 : vector<1x128xi32> to vector<1x128xf32>
      %cst_65 = arith.constant dense<0.000000e+00> : vector<1xf32>
      %273 = vector.multi_reduction <add>, %272, %cst_65 [1] : vector<1x128xf32> to vector<1xf32>
      %274 = vector.shape_cast %273 : vector<1xf32> to vector<1x1xf32>
      %275 = arith.cmpf oge, %274, %243 : vector<1x1xf32>
      %276 = arith.select %275, %268, %263 : vector<1x1xi1>, vector<1x1xi32>
      %277 = arith.select %275, %264, %268 : vector<1x1xi1>, vector<1x1xi32>
      %c2_i32 = arith.constant 2 : i32
      %278 = arith.subi %277, %276 : vector<1x1xi32>
      %c1_i32_66 = arith.constant 1 : i32
      %279 = vector.broadcast %c1_i32_66 : i32 to vector<1x1xi32>
      %280 = arith.shrsi %278, %279 : vector<1x1xi32>
      %281 = arith.addi %276, %280 : vector<1x1xi32>
      %282 = vector.broadcast %281 : vector<1x1xi32> to vector<1x128xi32>
      %283 = arith.cmpi sgt, %249, %282 : vector<1x128xi32>
      %284 = arith.extui %283 : vector<1x128xi1> to vector<1x128xi32>
      %285 = arith.sitofp %284 : vector<1x128xi32> to vector<1x128xf32>
      %cst_67 = arith.constant dense<0.000000e+00> : vector<1xf32>
      %286 = vector.multi_reduction <add>, %285, %cst_67 [1] : vector<1x128xf32> to vector<1xf32>
      %287 = vector.shape_cast %286 : vector<1xf32> to vector<1x1xf32>
      %288 = arith.cmpf oge, %287, %243 : vector<1x1xf32>
      %289 = arith.select %288, %281, %276 : vector<1x1xi1>, vector<1x1xi32>
      %290 = arith.select %288, %277, %281 : vector<1x1xi1>, vector<1x1xi32>
      %c3_i32 = arith.constant 3 : i32
      %291 = arith.subi %290, %289 : vector<1x1xi32>
      %c1_i32_68 = arith.constant 1 : i32
      %292 = vector.broadcast %c1_i32_68 : i32 to vector<1x1xi32>
      %293 = arith.shrsi %291, %292 : vector<1x1xi32>
      %294 = arith.addi %289, %293 : vector<1x1xi32>
      %295 = vector.broadcast %294 : vector<1x1xi32> to vector<1x128xi32>
      %296 = arith.cmpi sgt, %249, %295 : vector<1x128xi32>
      %297 = arith.extui %296 : vector<1x128xi1> to vector<1x128xi32>
      %298 = arith.sitofp %297 : vector<1x128xi32> to vector<1x128xf32>
      %cst_69 = arith.constant dense<0.000000e+00> : vector<1xf32>
      %299 = vector.multi_reduction <add>, %298, %cst_69 [1] : vector<1x128xf32> to vector<1xf32>
      %300 = vector.shape_cast %299 : vector<1xf32> to vector<1x1xf32>
      %301 = arith.cmpf oge, %300, %243 : vector<1x1xf32>
      %302 = arith.select %301, %294, %289 : vector<1x1xi1>, vector<1x1xi32>
      %303 = arith.select %301, %290, %294 : vector<1x1xi1>, vector<1x1xi32>
      %c4_i32 = arith.constant 4 : i32
      %304 = arith.subi %303, %302 : vector<1x1xi32>
      %c1_i32_70 = arith.constant 1 : i32
      %305 = vector.broadcast %c1_i32_70 : i32 to vector<1x1xi32>
      %306 = arith.shrsi %304, %305 : vector<1x1xi32>
      %307 = arith.addi %302, %306 : vector<1x1xi32>
      %308 = vector.broadcast %307 : vector<1x1xi32> to vector<1x128xi32>
      %309 = arith.cmpi sgt, %249, %308 : vector<1x128xi32>
      %310 = arith.extui %309 : vector<1x128xi1> to vector<1x128xi32>
      %311 = arith.sitofp %310 : vector<1x128xi32> to vector<1x128xf32>
      %cst_71 = arith.constant dense<0.000000e+00> : vector<1xf32>
      %312 = vector.multi_reduction <add>, %311, %cst_71 [1] : vector<1x128xf32> to vector<1xf32>
      %313 = vector.shape_cast %312 : vector<1xf32> to vector<1x1xf32>
      %314 = arith.cmpf oge, %313, %243 : vector<1x1xf32>
      %315 = arith.select %314, %307, %302 : vector<1x1xi1>, vector<1x1xi32>
      %316 = arith.select %314, %303, %307 : vector<1x1xi1>, vector<1x1xi32>
      %c5_i32 = arith.constant 5 : i32
      %317 = arith.subi %316, %315 : vector<1x1xi32>
      %c1_i32_72 = arith.constant 1 : i32
      %318 = vector.broadcast %c1_i32_72 : i32 to vector<1x1xi32>
      %319 = arith.shrsi %317, %318 : vector<1x1xi32>
      %320 = arith.addi %315, %319 : vector<1x1xi32>
      %321 = vector.broadcast %320 : vector<1x1xi32> to vector<1x128xi32>
      %322 = arith.cmpi sgt, %249, %321 : vector<1x128xi32>
      %323 = arith.extui %322 : vector<1x128xi1> to vector<1x128xi32>
      %324 = arith.sitofp %323 : vector<1x128xi32> to vector<1x128xf32>
      %cst_73 = arith.constant dense<0.000000e+00> : vector<1xf32>
      %325 = vector.multi_reduction <add>, %324, %cst_73 [1] : vector<1x128xf32> to vector<1xf32>
      %326 = vector.shape_cast %325 : vector<1xf32> to vector<1x1xf32>
      %327 = arith.cmpf oge, %326, %243 : vector<1x1xf32>
      %328 = arith.select %327, %320, %315 : vector<1x1xi1>, vector<1x1xi32>
      %329 = arith.select %327, %316, %320 : vector<1x1xi1>, vector<1x1xi32>
      %c6_i32 = arith.constant 6 : i32
      %330 = arith.subi %329, %328 : vector<1x1xi32>
      %c1_i32_74 = arith.constant 1 : i32
      %331 = vector.broadcast %c1_i32_74 : i32 to vector<1x1xi32>
      %332 = arith.shrsi %330, %331 : vector<1x1xi32>
      %333 = arith.addi %328, %332 : vector<1x1xi32>
      %334 = vector.broadcast %333 : vector<1x1xi32> to vector<1x128xi32>
      %335 = arith.cmpi sgt, %249, %334 : vector<1x128xi32>
      %336 = arith.extui %335 : vector<1x128xi1> to vector<1x128xi32>
      %337 = arith.sitofp %336 : vector<1x128xi32> to vector<1x128xf32>
      %cst_75 = arith.constant dense<0.000000e+00> : vector<1xf32>
      %338 = vector.multi_reduction <add>, %337, %cst_75 [1] : vector<1x128xf32> to vector<1xf32>
      %339 = vector.shape_cast %338 : vector<1xf32> to vector<1x1xf32>
      %340 = arith.cmpf oge, %339, %243 : vector<1x1xf32>
      %341 = arith.select %340, %333, %328 : vector<1x1xi1>, vector<1x1xi32>
      %342 = arith.select %340, %329, %333 : vector<1x1xi1>, vector<1x1xi32>
      %c7_i32 = arith.constant 7 : i32
      %343 = arith.subi %342, %341 : vector<1x1xi32>
      %c1_i32_76 = arith.constant 1 : i32
      %344 = vector.broadcast %c1_i32_76 : i32 to vector<1x1xi32>
      %345 = arith.shrsi %343, %344 : vector<1x1xi32>
      %346 = arith.addi %341, %345 : vector<1x1xi32>
      %347 = vector.broadcast %346 : vector<1x1xi32> to vector<1x128xi32>
      %348 = arith.cmpi sgt, %249, %347 : vector<1x128xi32>
      %349 = arith.extui %348 : vector<1x128xi1> to vector<1x128xi32>
      %350 = arith.sitofp %349 : vector<1x128xi32> to vector<1x128xf32>
      %cst_77 = arith.constant dense<0.000000e+00> : vector<1xf32>
      %351 = vector.multi_reduction <add>, %350, %cst_77 [1] : vector<1x128xf32> to vector<1xf32>
      %352 = vector.shape_cast %351 : vector<1xf32> to vector<1x1xf32>
      %353 = arith.cmpf oge, %352, %243 : vector<1x1xf32>
      %354 = arith.select %353, %346, %341 : vector<1x1xi1>, vector<1x1xi32>
      %355 = arith.select %353, %342, %346 : vector<1x1xi1>, vector<1x1xi32>
      %c8_i32 = arith.constant 8 : i32
      %356 = arith.subi %355, %354 : vector<1x1xi32>
      %c1_i32_78 = arith.constant 1 : i32
      %357 = vector.broadcast %c1_i32_78 : i32 to vector<1x1xi32>
      %358 = arith.shrsi %356, %357 : vector<1x1xi32>
      %359 = arith.addi %354, %358 : vector<1x1xi32>
      %360 = vector.broadcast %359 : vector<1x1xi32> to vector<1x128xi32>
      %361 = arith.cmpi sgt, %249, %360 : vector<1x128xi32>
      %362 = arith.extui %361 : vector<1x128xi1> to vector<1x128xi32>
      %363 = arith.sitofp %362 : vector<1x128xi32> to vector<1x128xf32>
      %cst_79 = arith.constant dense<0.000000e+00> : vector<1xf32>
      %364 = vector.multi_reduction <add>, %363, %cst_79 [1] : vector<1x128xf32> to vector<1xf32>
      %365 = vector.shape_cast %364 : vector<1xf32> to vector<1x1xf32>
      %366 = arith.cmpf oge, %365, %243 : vector<1x1xf32>
      %367 = arith.select %366, %359, %354 : vector<1x1xi1>, vector<1x1xi32>
      %368 = arith.select %366, %355, %359 : vector<1x1xi1>, vector<1x1xi32>
      %c9_i32 = arith.constant 9 : i32
      %369 = arith.subi %368, %367 : vector<1x1xi32>
      %c1_i32_80 = arith.constant 1 : i32
      %370 = vector.broadcast %c1_i32_80 : i32 to vector<1x1xi32>
      %371 = arith.shrsi %369, %370 : vector<1x1xi32>
      %372 = arith.addi %367, %371 : vector<1x1xi32>
      %373 = vector.broadcast %372 : vector<1x1xi32> to vector<1x128xi32>
      %374 = arith.cmpi sgt, %249, %373 : vector<1x128xi32>
      %375 = arith.extui %374 : vector<1x128xi1> to vector<1x128xi32>
      %376 = arith.sitofp %375 : vector<1x128xi32> to vector<1x128xf32>
      %cst_81 = arith.constant dense<0.000000e+00> : vector<1xf32>
      %377 = vector.multi_reduction <add>, %376, %cst_81 [1] : vector<1x128xf32> to vector<1xf32>
      %378 = vector.shape_cast %377 : vector<1xf32> to vector<1x1xf32>
      %379 = arith.cmpf oge, %378, %243 : vector<1x1xf32>
      %380 = arith.select %379, %372, %367 : vector<1x1xi1>, vector<1x1xi32>
      %381 = arith.select %379, %368, %372 : vector<1x1xi1>, vector<1x1xi32>
      %c10_i32 = arith.constant 10 : i32
      %382 = arith.subi %381, %380 : vector<1x1xi32>
      %c1_i32_82 = arith.constant 1 : i32
      %383 = vector.broadcast %c1_i32_82 : i32 to vector<1x1xi32>
      %384 = arith.shrsi %382, %383 : vector<1x1xi32>
      %385 = arith.addi %380, %384 : vector<1x1xi32>
      %386 = vector.broadcast %385 : vector<1x1xi32> to vector<1x128xi32>
      %387 = arith.cmpi sgt, %249, %386 : vector<1x128xi32>
      %388 = arith.extui %387 : vector<1x128xi1> to vector<1x128xi32>
      %389 = arith.sitofp %388 : vector<1x128xi32> to vector<1x128xf32>
      %cst_83 = arith.constant dense<0.000000e+00> : vector<1xf32>
      %390 = vector.multi_reduction <add>, %389, %cst_83 [1] : vector<1x128xf32> to vector<1xf32>
      %391 = vector.shape_cast %390 : vector<1xf32> to vector<1x1xf32>
      %392 = arith.cmpf oge, %391, %243 : vector<1x1xf32>
      %393 = arith.select %392, %385, %380 : vector<1x1xi1>, vector<1x1xi32>
      %394 = arith.select %392, %381, %385 : vector<1x1xi1>, vector<1x1xi32>
      %c11_i32 = arith.constant 11 : i32
      %395 = arith.subi %394, %393 : vector<1x1xi32>
      %c1_i32_84 = arith.constant 1 : i32
      %396 = vector.broadcast %c1_i32_84 : i32 to vector<1x1xi32>
      %397 = arith.shrsi %395, %396 : vector<1x1xi32>
      %398 = arith.addi %393, %397 : vector<1x1xi32>
      %399 = vector.broadcast %398 : vector<1x1xi32> to vector<1x128xi32>
      %400 = arith.cmpi sgt, %249, %399 : vector<1x128xi32>
      %401 = arith.extui %400 : vector<1x128xi1> to vector<1x128xi32>
      %402 = arith.sitofp %401 : vector<1x128xi32> to vector<1x128xf32>
      %cst_85 = arith.constant dense<0.000000e+00> : vector<1xf32>
      %403 = vector.multi_reduction <add>, %402, %cst_85 [1] : vector<1x128xf32> to vector<1xf32>
      %404 = vector.shape_cast %403 : vector<1xf32> to vector<1x1xf32>
      %405 = arith.cmpf oge, %404, %243 : vector<1x1xf32>
      %406 = arith.select %405, %398, %393 : vector<1x1xi1>, vector<1x1xi32>
      %407 = arith.select %405, %394, %398 : vector<1x1xi1>, vector<1x1xi32>
      %c12_i32 = arith.constant 12 : i32
      %408 = arith.subi %407, %406 : vector<1x1xi32>
      %c1_i32_86 = arith.constant 1 : i32
      %409 = vector.broadcast %c1_i32_86 : i32 to vector<1x1xi32>
      %410 = arith.shrsi %408, %409 : vector<1x1xi32>
      %411 = arith.addi %406, %410 : vector<1x1xi32>
      %412 = vector.broadcast %411 : vector<1x1xi32> to vector<1x128xi32>
      %413 = arith.cmpi sgt, %249, %412 : vector<1x128xi32>
      %414 = arith.extui %413 : vector<1x128xi1> to vector<1x128xi32>
      %415 = arith.sitofp %414 : vector<1x128xi32> to vector<1x128xf32>
      %cst_87 = arith.constant dense<0.000000e+00> : vector<1xf32>
      %416 = vector.multi_reduction <add>, %415, %cst_87 [1] : vector<1x128xf32> to vector<1xf32>
      %417 = vector.shape_cast %416 : vector<1xf32> to vector<1x1xf32>
      %418 = arith.cmpf oge, %417, %243 : vector<1x1xf32>
      %419 = arith.select %418, %411, %406 : vector<1x1xi1>, vector<1x1xi32>
      %420 = arith.select %418, %407, %411 : vector<1x1xi1>, vector<1x1xi32>
      %c13_i32 = arith.constant 13 : i32
      %421 = arith.subi %420, %419 : vector<1x1xi32>
      %c1_i32_88 = arith.constant 1 : i32
      %422 = vector.broadcast %c1_i32_88 : i32 to vector<1x1xi32>
      %423 = arith.shrsi %421, %422 : vector<1x1xi32>
      %424 = arith.addi %419, %423 : vector<1x1xi32>
      %425 = vector.broadcast %424 : vector<1x1xi32> to vector<1x128xi32>
      %426 = arith.cmpi sgt, %249, %425 : vector<1x128xi32>
      %427 = arith.extui %426 : vector<1x128xi1> to vector<1x128xi32>
      %428 = arith.sitofp %427 : vector<1x128xi32> to vector<1x128xf32>
      %cst_89 = arith.constant dense<0.000000e+00> : vector<1xf32>
      %429 = vector.multi_reduction <add>, %428, %cst_89 [1] : vector<1x128xf32> to vector<1xf32>
      %430 = vector.shape_cast %429 : vector<1xf32> to vector<1x1xf32>
      %431 = arith.cmpf oge, %430, %243 : vector<1x1xf32>
      %432 = arith.select %431, %424, %419 : vector<1x1xi1>, vector<1x1xi32>
      %433 = arith.select %431, %420, %424 : vector<1x1xi1>, vector<1x1xi32>
      %c14_i32 = arith.constant 14 : i32
      %434 = arith.subi %433, %432 : vector<1x1xi32>
      %c1_i32_90 = arith.constant 1 : i32
      %435 = vector.broadcast %c1_i32_90 : i32 to vector<1x1xi32>
      %436 = arith.shrsi %434, %435 : vector<1x1xi32>
      %437 = arith.addi %432, %436 : vector<1x1xi32>
      %438 = vector.broadcast %437 : vector<1x1xi32> to vector<1x128xi32>
      %439 = arith.cmpi sgt, %249, %438 : vector<1x128xi32>
      %440 = arith.extui %439 : vector<1x128xi1> to vector<1x128xi32>
      %441 = arith.sitofp %440 : vector<1x128xi32> to vector<1x128xf32>
      %cst_91 = arith.constant dense<0.000000e+00> : vector<1xf32>
      %442 = vector.multi_reduction <add>, %441, %cst_91 [1] : vector<1x128xf32> to vector<1xf32>
      %443 = vector.shape_cast %442 : vector<1xf32> to vector<1x1xf32>
      %444 = arith.cmpf oge, %443, %243 : vector<1x1xf32>
      %445 = arith.select %444, %437, %432 : vector<1x1xi1>, vector<1x1xi32>
      %446 = arith.select %444, %433, %437 : vector<1x1xi1>, vector<1x1xi32>
      %c15_i32 = arith.constant 15 : i32
      %447 = arith.subi %446, %445 : vector<1x1xi32>
      %c1_i32_92 = arith.constant 1 : i32
      %448 = vector.broadcast %c1_i32_92 : i32 to vector<1x1xi32>
      %449 = arith.shrsi %447, %448 : vector<1x1xi32>
      %450 = arith.addi %445, %449 : vector<1x1xi32>
      %451 = vector.broadcast %450 : vector<1x1xi32> to vector<1x128xi32>
      %452 = arith.cmpi sgt, %249, %451 : vector<1x128xi32>
      %453 = arith.extui %452 : vector<1x128xi1> to vector<1x128xi32>
      %454 = arith.sitofp %453 : vector<1x128xi32> to vector<1x128xf32>
      %cst_93 = arith.constant dense<0.000000e+00> : vector<1xf32>
      %455 = vector.multi_reduction <add>, %454, %cst_93 [1] : vector<1x128xf32> to vector<1xf32>
      %456 = vector.shape_cast %455 : vector<1xf32> to vector<1x1xf32>
      %457 = arith.cmpf oge, %456, %243 : vector<1x1xf32>
      %458 = arith.select %457, %450, %445 : vector<1x1xi1>, vector<1x1xi32>
      %459 = arith.select %457, %446, %450 : vector<1x1xi1>, vector<1x1xi32>
      %c16_i32 = arith.constant 16 : i32
      %460 = arith.subi %459, %458 : vector<1x1xi32>
      %c1_i32_94 = arith.constant 1 : i32
      %461 = vector.broadcast %c1_i32_94 : i32 to vector<1x1xi32>
      %462 = arith.shrsi %460, %461 : vector<1x1xi32>
      %463 = arith.addi %458, %462 : vector<1x1xi32>
      %464 = vector.broadcast %463 : vector<1x1xi32> to vector<1x128xi32>
      %465 = arith.cmpi sgt, %249, %464 : vector<1x128xi32>
      %466 = arith.extui %465 : vector<1x128xi1> to vector<1x128xi32>
      %467 = arith.sitofp %466 : vector<1x128xi32> to vector<1x128xf32>
      %cst_95 = arith.constant dense<0.000000e+00> : vector<1xf32>
      %468 = vector.multi_reduction <add>, %467, %cst_95 [1] : vector<1x128xf32> to vector<1xf32>
      %469 = vector.shape_cast %468 : vector<1xf32> to vector<1x1xf32>
      %470 = arith.cmpf oge, %469, %243 : vector<1x1xf32>
      %471 = arith.select %470, %463, %458 : vector<1x1xi1>, vector<1x1xi32>
      %472 = arith.select %470, %459, %463 : vector<1x1xi1>, vector<1x1xi32>
      %c17_i32 = arith.constant 17 : i32
      %473 = arith.subi %472, %471 : vector<1x1xi32>
      %c1_i32_96 = arith.constant 1 : i32
      %474 = vector.broadcast %c1_i32_96 : i32 to vector<1x1xi32>
      %475 = arith.shrsi %473, %474 : vector<1x1xi32>
      %476 = arith.addi %471, %475 : vector<1x1xi32>
      %477 = vector.broadcast %476 : vector<1x1xi32> to vector<1x128xi32>
      %478 = arith.cmpi sgt, %249, %477 : vector<1x128xi32>
      %479 = arith.extui %478 : vector<1x128xi1> to vector<1x128xi32>
      %480 = arith.sitofp %479 : vector<1x128xi32> to vector<1x128xf32>
      %cst_97 = arith.constant dense<0.000000e+00> : vector<1xf32>
      %481 = vector.multi_reduction <add>, %480, %cst_97 [1] : vector<1x128xf32> to vector<1xf32>
      %482 = vector.shape_cast %481 : vector<1xf32> to vector<1x1xf32>
      %483 = arith.cmpf oge, %482, %243 : vector<1x1xf32>
      %484 = arith.select %483, %476, %471 : vector<1x1xi1>, vector<1x1xi32>
      %485 = arith.select %483, %472, %476 : vector<1x1xi1>, vector<1x1xi32>
      %c18_i32 = arith.constant 18 : i32
      %486 = arith.subi %485, %484 : vector<1x1xi32>
      %c1_i32_98 = arith.constant 1 : i32
      %487 = vector.broadcast %c1_i32_98 : i32 to vector<1x1xi32>
      %488 = arith.shrsi %486, %487 : vector<1x1xi32>
      %489 = arith.addi %484, %488 : vector<1x1xi32>
      %490 = vector.broadcast %489 : vector<1x1xi32> to vector<1x128xi32>
      %491 = arith.cmpi sgt, %249, %490 : vector<1x128xi32>
      %492 = arith.extui %491 : vector<1x128xi1> to vector<1x128xi32>
      %493 = arith.sitofp %492 : vector<1x128xi32> to vector<1x128xf32>
      %cst_99 = arith.constant dense<0.000000e+00> : vector<1xf32>
      %494 = vector.multi_reduction <add>, %493, %cst_99 [1] : vector<1x128xf32> to vector<1xf32>
      %495 = vector.shape_cast %494 : vector<1xf32> to vector<1x1xf32>
      %496 = arith.cmpf oge, %495, %243 : vector<1x1xf32>
      %497 = arith.select %496, %489, %484 : vector<1x1xi1>, vector<1x1xi32>
      %498 = arith.select %496, %485, %489 : vector<1x1xi1>, vector<1x1xi32>
      %c19_i32 = arith.constant 19 : i32
      %499 = arith.subi %498, %497 : vector<1x1xi32>
      %c1_i32_100 = arith.constant 1 : i32
      %500 = vector.broadcast %c1_i32_100 : i32 to vector<1x1xi32>
      %501 = arith.shrsi %499, %500 : vector<1x1xi32>
      %502 = arith.addi %497, %501 : vector<1x1xi32>
      %503 = vector.broadcast %502 : vector<1x1xi32> to vector<1x128xi32>
      %504 = arith.cmpi sgt, %249, %503 : vector<1x128xi32>
      %505 = arith.extui %504 : vector<1x128xi1> to vector<1x128xi32>
      %506 = arith.sitofp %505 : vector<1x128xi32> to vector<1x128xf32>
      %cst_101 = arith.constant dense<0.000000e+00> : vector<1xf32>
      %507 = vector.multi_reduction <add>, %506, %cst_101 [1] : vector<1x128xf32> to vector<1xf32>
      %508 = vector.shape_cast %507 : vector<1xf32> to vector<1x1xf32>
      %509 = arith.cmpf oge, %508, %243 : vector<1x1xf32>
      %510 = arith.select %509, %502, %497 : vector<1x1xi1>, vector<1x1xi32>
      %511 = arith.select %509, %498, %502 : vector<1x1xi1>, vector<1x1xi32>
      %c20_i32 = arith.constant 20 : i32
      %512 = arith.subi %511, %510 : vector<1x1xi32>
      %c1_i32_102 = arith.constant 1 : i32
      %513 = vector.broadcast %c1_i32_102 : i32 to vector<1x1xi32>
      %514 = arith.shrsi %512, %513 : vector<1x1xi32>
      %515 = arith.addi %510, %514 : vector<1x1xi32>
      %516 = vector.broadcast %515 : vector<1x1xi32> to vector<1x128xi32>
      %517 = arith.cmpi sgt, %249, %516 : vector<1x128xi32>
      %518 = arith.extui %517 : vector<1x128xi1> to vector<1x128xi32>
      %519 = arith.sitofp %518 : vector<1x128xi32> to vector<1x128xf32>
      %cst_103 = arith.constant dense<0.000000e+00> : vector<1xf32>
      %520 = vector.multi_reduction <add>, %519, %cst_103 [1] : vector<1x128xf32> to vector<1xf32>
      %521 = vector.shape_cast %520 : vector<1xf32> to vector<1x1xf32>
      %522 = arith.cmpf oge, %521, %243 : vector<1x1xf32>
      %523 = arith.select %522, %515, %510 : vector<1x1xi1>, vector<1x1xi32>
      %524 = arith.select %522, %511, %515 : vector<1x1xi1>, vector<1x1xi32>
      %c21_i32 = arith.constant 21 : i32
      %525 = arith.subi %524, %523 : vector<1x1xi32>
      %c1_i32_104 = arith.constant 1 : i32
      %526 = vector.broadcast %c1_i32_104 : i32 to vector<1x1xi32>
      %527 = arith.shrsi %525, %526 : vector<1x1xi32>
      %528 = arith.addi %523, %527 : vector<1x1xi32>
      %529 = vector.broadcast %528 : vector<1x1xi32> to vector<1x128xi32>
      %530 = arith.cmpi sgt, %249, %529 : vector<1x128xi32>
      %531 = arith.extui %530 : vector<1x128xi1> to vector<1x128xi32>
      %532 = arith.sitofp %531 : vector<1x128xi32> to vector<1x128xf32>
      %cst_105 = arith.constant dense<0.000000e+00> : vector<1xf32>
      %533 = vector.multi_reduction <add>, %532, %cst_105 [1] : vector<1x128xf32> to vector<1xf32>
      %534 = vector.shape_cast %533 : vector<1xf32> to vector<1x1xf32>
      %535 = arith.cmpf oge, %534, %243 : vector<1x1xf32>
      %536 = arith.select %535, %528, %523 : vector<1x1xi1>, vector<1x1xi32>
      %537 = arith.select %535, %524, %528 : vector<1x1xi1>, vector<1x1xi32>
      %c22_i32 = arith.constant 22 : i32
      %538 = arith.subi %537, %536 : vector<1x1xi32>
      %c1_i32_106 = arith.constant 1 : i32
      %539 = vector.broadcast %c1_i32_106 : i32 to vector<1x1xi32>
      %540 = arith.shrsi %538, %539 : vector<1x1xi32>
      %541 = arith.addi %536, %540 : vector<1x1xi32>
      %542 = vector.broadcast %541 : vector<1x1xi32> to vector<1x128xi32>
      %543 = arith.cmpi sgt, %249, %542 : vector<1x128xi32>
      %544 = arith.extui %543 : vector<1x128xi1> to vector<1x128xi32>
      %545 = arith.sitofp %544 : vector<1x128xi32> to vector<1x128xf32>
      %cst_107 = arith.constant dense<0.000000e+00> : vector<1xf32>
      %546 = vector.multi_reduction <add>, %545, %cst_107 [1] : vector<1x128xf32> to vector<1xf32>
      %547 = vector.shape_cast %546 : vector<1xf32> to vector<1x1xf32>
      %548 = arith.cmpf oge, %547, %243 : vector<1x1xf32>
      %549 = arith.select %548, %541, %536 : vector<1x1xi1>, vector<1x1xi32>
      %550 = arith.select %548, %537, %541 : vector<1x1xi1>, vector<1x1xi32>
      %c23_i32 = arith.constant 23 : i32
      %551 = arith.subi %550, %549 : vector<1x1xi32>
      %c1_i32_108 = arith.constant 1 : i32
      %552 = vector.broadcast %c1_i32_108 : i32 to vector<1x1xi32>
      %553 = arith.shrsi %551, %552 : vector<1x1xi32>
      %554 = arith.addi %549, %553 : vector<1x1xi32>
      %555 = vector.broadcast %554 : vector<1x1xi32> to vector<1x128xi32>
      %556 = arith.cmpi sgt, %249, %555 : vector<1x128xi32>
      %557 = arith.extui %556 : vector<1x128xi1> to vector<1x128xi32>
      %558 = arith.sitofp %557 : vector<1x128xi32> to vector<1x128xf32>
      %cst_109 = arith.constant dense<0.000000e+00> : vector<1xf32>
      %559 = vector.multi_reduction <add>, %558, %cst_109 [1] : vector<1x128xf32> to vector<1xf32>
      %560 = vector.shape_cast %559 : vector<1xf32> to vector<1x1xf32>
      %561 = arith.cmpf oge, %560, %243 : vector<1x1xf32>
      %562 = arith.select %561, %554, %549 : vector<1x1xi1>, vector<1x1xi32>
      %563 = arith.select %561, %550, %554 : vector<1x1xi1>, vector<1x1xi32>
      %c24_i32 = arith.constant 24 : i32
      %564 = arith.subi %563, %562 : vector<1x1xi32>
      %c1_i32_110 = arith.constant 1 : i32
      %565 = vector.broadcast %c1_i32_110 : i32 to vector<1x1xi32>
      %566 = arith.shrsi %564, %565 : vector<1x1xi32>
      %567 = arith.addi %562, %566 : vector<1x1xi32>
      %568 = vector.broadcast %567 : vector<1x1xi32> to vector<1x128xi32>
      %569 = arith.cmpi sgt, %249, %568 : vector<1x128xi32>
      %570 = arith.extui %569 : vector<1x128xi1> to vector<1x128xi32>
      %571 = arith.sitofp %570 : vector<1x128xi32> to vector<1x128xf32>
      %cst_111 = arith.constant dense<0.000000e+00> : vector<1xf32>
      %572 = vector.multi_reduction <add>, %571, %cst_111 [1] : vector<1x128xf32> to vector<1xf32>
      %573 = vector.shape_cast %572 : vector<1xf32> to vector<1x1xf32>
      %574 = arith.cmpf oge, %573, %243 : vector<1x1xf32>
      %575 = arith.select %574, %567, %562 : vector<1x1xi1>, vector<1x1xi32>
      %576 = arith.select %574, %563, %567 : vector<1x1xi1>, vector<1x1xi32>
      %c25_i32 = arith.constant 25 : i32
      %577 = arith.subi %576, %575 : vector<1x1xi32>
      %c1_i32_112 = arith.constant 1 : i32
      %578 = vector.broadcast %c1_i32_112 : i32 to vector<1x1xi32>
      %579 = arith.shrsi %577, %578 : vector<1x1xi32>
      %580 = arith.addi %575, %579 : vector<1x1xi32>
      %581 = vector.broadcast %580 : vector<1x1xi32> to vector<1x128xi32>
      %582 = arith.cmpi sgt, %249, %581 : vector<1x128xi32>
      %583 = arith.extui %582 : vector<1x128xi1> to vector<1x128xi32>
      %584 = arith.sitofp %583 : vector<1x128xi32> to vector<1x128xf32>
      %cst_113 = arith.constant dense<0.000000e+00> : vector<1xf32>
      %585 = vector.multi_reduction <add>, %584, %cst_113 [1] : vector<1x128xf32> to vector<1xf32>
      %586 = vector.shape_cast %585 : vector<1xf32> to vector<1x1xf32>
      %587 = arith.cmpf oge, %586, %243 : vector<1x1xf32>
      %588 = arith.select %587, %580, %575 : vector<1x1xi1>, vector<1x1xi32>
      %589 = arith.select %587, %576, %580 : vector<1x1xi1>, vector<1x1xi32>
      %c26_i32 = arith.constant 26 : i32
      %590 = arith.subi %589, %588 : vector<1x1xi32>
      %c1_i32_114 = arith.constant 1 : i32
      %591 = vector.broadcast %c1_i32_114 : i32 to vector<1x1xi32>
      %592 = arith.shrsi %590, %591 : vector<1x1xi32>
      %593 = arith.addi %588, %592 : vector<1x1xi32>
      %594 = vector.broadcast %593 : vector<1x1xi32> to vector<1x128xi32>
      %595 = arith.cmpi sgt, %249, %594 : vector<1x128xi32>
      %596 = arith.extui %595 : vector<1x128xi1> to vector<1x128xi32>
      %597 = arith.sitofp %596 : vector<1x128xi32> to vector<1x128xf32>
      %cst_115 = arith.constant dense<0.000000e+00> : vector<1xf32>
      %598 = vector.multi_reduction <add>, %597, %cst_115 [1] : vector<1x128xf32> to vector<1xf32>
      %599 = vector.shape_cast %598 : vector<1xf32> to vector<1x1xf32>
      %600 = arith.cmpf oge, %599, %243 : vector<1x1xf32>
      %601 = arith.select %600, %593, %588 : vector<1x1xi1>, vector<1x1xi32>
      %602 = arith.select %600, %589, %593 : vector<1x1xi1>, vector<1x1xi32>
      %c27_i32 = arith.constant 27 : i32
      %603 = arith.subi %602, %601 : vector<1x1xi32>
      %c1_i32_116 = arith.constant 1 : i32
      %604 = vector.broadcast %c1_i32_116 : i32 to vector<1x1xi32>
      %605 = arith.shrsi %603, %604 : vector<1x1xi32>
      %606 = arith.addi %601, %605 : vector<1x1xi32>
      %607 = vector.broadcast %606 : vector<1x1xi32> to vector<1x128xi32>
      %608 = arith.cmpi sgt, %249, %607 : vector<1x128xi32>
      %609 = arith.extui %608 : vector<1x128xi1> to vector<1x128xi32>
      %610 = arith.sitofp %609 : vector<1x128xi32> to vector<1x128xf32>
      %cst_117 = arith.constant dense<0.000000e+00> : vector<1xf32>
      %611 = vector.multi_reduction <add>, %610, %cst_117 [1] : vector<1x128xf32> to vector<1xf32>
      %612 = vector.shape_cast %611 : vector<1xf32> to vector<1x1xf32>
      %613 = arith.cmpf oge, %612, %243 : vector<1x1xf32>
      %614 = arith.select %613, %606, %601 : vector<1x1xi1>, vector<1x1xi32>
      %615 = arith.select %613, %602, %606 : vector<1x1xi1>, vector<1x1xi32>
      %c28_i32 = arith.constant 28 : i32
      %616 = arith.subi %615, %614 : vector<1x1xi32>
      %c1_i32_118 = arith.constant 1 : i32
      %617 = vector.broadcast %c1_i32_118 : i32 to vector<1x1xi32>
      %618 = arith.shrsi %616, %617 : vector<1x1xi32>
      %619 = arith.addi %614, %618 : vector<1x1xi32>
      %620 = vector.broadcast %619 : vector<1x1xi32> to vector<1x128xi32>
      %621 = arith.cmpi sgt, %249, %620 : vector<1x128xi32>
      %622 = arith.extui %621 : vector<1x128xi1> to vector<1x128xi32>
      %623 = arith.sitofp %622 : vector<1x128xi32> to vector<1x128xf32>
      %cst_119 = arith.constant dense<0.000000e+00> : vector<1xf32>
      %624 = vector.multi_reduction <add>, %623, %cst_119 [1] : vector<1x128xf32> to vector<1xf32>
      %625 = vector.shape_cast %624 : vector<1xf32> to vector<1x1xf32>
      %626 = arith.cmpf oge, %625, %243 : vector<1x1xf32>
      %627 = arith.select %626, %619, %614 : vector<1x1xi1>, vector<1x1xi32>
      %628 = arith.select %626, %615, %619 : vector<1x1xi1>, vector<1x1xi32>
      %c29_i32 = arith.constant 29 : i32
      %629 = arith.subi %628, %627 : vector<1x1xi32>
      %c1_i32_120 = arith.constant 1 : i32
      %630 = vector.broadcast %c1_i32_120 : i32 to vector<1x1xi32>
      %631 = arith.shrsi %629, %630 : vector<1x1xi32>
      %632 = arith.addi %627, %631 : vector<1x1xi32>
      %633 = vector.broadcast %632 : vector<1x1xi32> to vector<1x128xi32>
      %634 = arith.cmpi sgt, %249, %633 : vector<1x128xi32>
      %635 = arith.extui %634 : vector<1x128xi1> to vector<1x128xi32>
      %636 = arith.sitofp %635 : vector<1x128xi32> to vector<1x128xf32>
      %cst_121 = arith.constant dense<0.000000e+00> : vector<1xf32>
      %637 = vector.multi_reduction <add>, %636, %cst_121 [1] : vector<1x128xf32> to vector<1xf32>
      %638 = vector.shape_cast %637 : vector<1xf32> to vector<1x1xf32>
      %639 = arith.cmpf oge, %638, %243 : vector<1x1xf32>
      %640 = arith.select %639, %632, %627 : vector<1x1xi1>, vector<1x1xi32>
      %641 = arith.select %639, %628, %632 : vector<1x1xi1>, vector<1x1xi32>
      %c30_i32 = arith.constant 30 : i32
      %642 = arith.subi %641, %640 : vector<1x1xi32>
      %c1_i32_122 = arith.constant 1 : i32
      %643 = vector.broadcast %c1_i32_122 : i32 to vector<1x1xi32>
      %644 = arith.shrsi %642, %643 : vector<1x1xi32>
      %645 = arith.addi %640, %644 : vector<1x1xi32>
      %646 = vector.broadcast %645 : vector<1x1xi32> to vector<1x128xi32>
      %647 = arith.cmpi sgt, %249, %646 : vector<1x128xi32>
      %648 = arith.extui %647 : vector<1x128xi1> to vector<1x128xi32>
      %649 = arith.sitofp %648 : vector<1x128xi32> to vector<1x128xf32>
      %cst_123 = arith.constant dense<0.000000e+00> : vector<1xf32>
      %650 = vector.multi_reduction <add>, %649, %cst_123 [1] : vector<1x128xf32> to vector<1xf32>
      %651 = vector.shape_cast %650 : vector<1xf32> to vector<1x1xf32>
      %652 = arith.cmpf oge, %651, %243 : vector<1x1xf32>
      %653 = arith.select %652, %645, %640 : vector<1x1xi1>, vector<1x1xi32>
      %654 = arith.select %652, %641, %645 : vector<1x1xi1>, vector<1x1xi32>
      %655 = tpu.bitcast %654 : vector<1x1xi32> -> vector<1x1xf32>
      %656 = vector.broadcast %654 : vector<1x1xi32> to vector<1x128xi32>
      %657 = arith.cmpi sgt, %249, %656 : vector<1x128xi32>
      %658 = arith.extui %657 : vector<1x128xi1> to vector<1x128xi32>
      %659 = arith.sitofp %658 : vector<1x128xi32> to vector<1x128xf32>
      %cst_124 = arith.constant dense<0.000000e+00> : vector<1xf32>
      %660 = vector.multi_reduction <add>, %659, %cst_124 [1] : vector<1x128xf32> to vector<1xf32>
      %661 = vector.shape_cast %660 : vector<1xf32> to vector<1x1xf32>
      %662 = arith.subf %243, %661 : vector<1x1xf32>
      %cst_125 = arith.constant 0.000000e+00 : f32
      %663 = vector.broadcast %cst_125 : f32 to vector<1x1xf32>
      %664 = arith.maximumf %662, %663 : vector<1x1xf32>
      %cst_126 = arith.constant 0.000000e+00 : f32
      %665 = vector.broadcast %cst_126 : f32 to vector<1x128xf32>
      %666 = arith.select %657, %226, %665 : vector<1x128xi1>, vector<1x128xf32>
      %cst_127 = arith.constant dense<0.000000e+00> : vector<1xf32>
      %667 = vector.multi_reduction <add>, %666, %cst_127 [1] : vector<1x128xf32> to vector<1xf32>
      %668 = vector.shape_cast %667 : vector<1xf32> to vector<1x1xf32>
      %cst_128 = arith.constant 5.000000e-01 : f32
      %669 = vector.broadcast %cst_128 : f32 to vector<1x1xf32>
      %670 = arith.cmpf ogt, %243, %669 : vector<1x1xf32>
      %cst_129 = arith.constant 0.000000e+00 : f32
      %671 = vector.broadcast %cst_129 : f32 to vector<1x1xf32>
      %672 = arith.cmpf ogt, %664, %671 : vector<1x1xf32>
      %673 = arith.mulf %664, %655 : vector<1x1xf32>
      %cst_130 = arith.constant 0.000000e+00 : f32
      %674 = vector.broadcast %cst_130 : f32 to vector<1x1xf32>
      %675 = arith.select %672, %673, %674 : vector<1x1xi1>, vector<1x1xf32>
      %676 = arith.addf %668, %675 : vector<1x1xf32>
      %cst_131 = arith.constant 0.000000e+00 : f32
      %677 = vector.broadcast %cst_131 : f32 to vector<1x1xf32>
      %678 = arith.select %670, %676, %677 : vector<1x1xi1>, vector<1x1xf32>
      %679 = tpu.iota {dimensions = array<i32: 1>} : vector<1x128xi32>
      %680 = arith.sitofp %679 : vector<1x128xi32> to vector<1x128xf32>
      %681 = arith.extui %228 : vector<1x128xi1> to vector<1x128xi32>
      %682 = arith.sitofp %681 : vector<1x128xi32> to vector<1x128xf32>
      %cst_132 = arith.constant 0.000000e+00 : f32
      %683 = vector.broadcast %cst_132 : f32 to vector<1x1xf32>
      %cst_133 = arith.constant 1.280000e+02 : f32
      %684 = vector.broadcast %cst_133 : f32 to vector<1x1xf32>
      %c0_i32_134 = arith.constant 0 : i32
      %685 = arith.addf %683, %684 : vector<1x1xf32>
      %cst_135 = arith.constant 5.000000e-01 : f32
      %686 = vector.broadcast %cst_135 : f32 to vector<1x1xf32>
      %687 = arith.mulf %686, %685 : vector<1x1xf32>
      %688 = math.floor %687 : vector<1x1xf32>
      %689 = vector.broadcast %688 : vector<1x1xf32> to vector<1x128xf32>
      %690 = arith.cmpf olt, %680, %689 : vector<1x128xf32>
      %cst_136 = arith.constant 0.000000e+00 : f32
      %691 = vector.broadcast %cst_136 : f32 to vector<1x128xf32>
      %692 = arith.select %690, %682, %691 : vector<1x128xi1>, vector<1x128xf32>
      %cst_137 = arith.constant dense<0.000000e+00> : vector<1xf32>
      %693 = vector.multi_reduction <add>, %692, %cst_137 [1] : vector<1x128xf32> to vector<1xf32>
      %694 = vector.shape_cast %693 : vector<1xf32> to vector<1x1xf32>
      %695 = arith.cmpf oge, %694, %246 : vector<1x1xf32>
      %cst_138 = arith.constant 1.000000e+00 : f32
      %696 = vector.broadcast %cst_138 : f32 to vector<1x1xf32>
      %697 = arith.addf %688, %696 : vector<1x1xf32>
      %698 = arith.select %695, %683, %697 : vector<1x1xi1>, vector<1x1xf32>
      %699 = arith.select %695, %688, %684 : vector<1x1xi1>, vector<1x1xf32>
      %c1_i32_139 = arith.constant 1 : i32
      %700 = arith.addf %698, %699 : vector<1x1xf32>
      %cst_140 = arith.constant 5.000000e-01 : f32
      %701 = vector.broadcast %cst_140 : f32 to vector<1x1xf32>
      %702 = arith.mulf %701, %700 : vector<1x1xf32>
      %703 = math.floor %702 : vector<1x1xf32>
      %704 = vector.broadcast %703 : vector<1x1xf32> to vector<1x128xf32>
      %705 = arith.cmpf olt, %680, %704 : vector<1x128xf32>
      %cst_141 = arith.constant 0.000000e+00 : f32
      %706 = vector.broadcast %cst_141 : f32 to vector<1x128xf32>
      %707 = arith.select %705, %682, %706 : vector<1x128xi1>, vector<1x128xf32>
      %cst_142 = arith.constant dense<0.000000e+00> : vector<1xf32>
      %708 = vector.multi_reduction <add>, %707, %cst_142 [1] : vector<1x128xf32> to vector<1xf32>
      %709 = vector.shape_cast %708 : vector<1xf32> to vector<1x1xf32>
      %710 = arith.cmpf oge, %709, %246 : vector<1x1xf32>
      %cst_143 = arith.constant 1.000000e+00 : f32
      %711 = vector.broadcast %cst_143 : f32 to vector<1x1xf32>
      %712 = arith.addf %703, %711 : vector<1x1xf32>
      %713 = arith.select %710, %698, %712 : vector<1x1xi1>, vector<1x1xf32>
      %714 = arith.select %710, %703, %699 : vector<1x1xi1>, vector<1x1xf32>
      %c2_i32_144 = arith.constant 2 : i32
      %715 = arith.addf %713, %714 : vector<1x1xf32>
      %cst_145 = arith.constant 5.000000e-01 : f32
      %716 = vector.broadcast %cst_145 : f32 to vector<1x1xf32>
      %717 = arith.mulf %716, %715 : vector<1x1xf32>
      %718 = math.floor %717 : vector<1x1xf32>
      %719 = vector.broadcast %718 : vector<1x1xf32> to vector<1x128xf32>
      %720 = arith.cmpf olt, %680, %719 : vector<1x128xf32>
      %cst_146 = arith.constant 0.000000e+00 : f32
      %721 = vector.broadcast %cst_146 : f32 to vector<1x128xf32>
      %722 = arith.select %720, %682, %721 : vector<1x128xi1>, vector<1x128xf32>
      %cst_147 = arith.constant dense<0.000000e+00> : vector<1xf32>
      %723 = vector.multi_reduction <add>, %722, %cst_147 [1] : vector<1x128xf32> to vector<1xf32>
      %724 = vector.shape_cast %723 : vector<1xf32> to vector<1x1xf32>
      %725 = arith.cmpf oge, %724, %246 : vector<1x1xf32>
      %cst_148 = arith.constant 1.000000e+00 : f32
      %726 = vector.broadcast %cst_148 : f32 to vector<1x1xf32>
      %727 = arith.addf %718, %726 : vector<1x1xf32>
      %728 = arith.select %725, %713, %727 : vector<1x1xi1>, vector<1x1xf32>
      %729 = arith.select %725, %718, %714 : vector<1x1xi1>, vector<1x1xf32>
      %c3_i32_149 = arith.constant 3 : i32
      %730 = arith.addf %728, %729 : vector<1x1xf32>
      %cst_150 = arith.constant 5.000000e-01 : f32
      %731 = vector.broadcast %cst_150 : f32 to vector<1x1xf32>
      %732 = arith.mulf %731, %730 : vector<1x1xf32>
      %733 = math.floor %732 : vector<1x1xf32>
      %734 = vector.broadcast %733 : vector<1x1xf32> to vector<1x128xf32>
      %735 = arith.cmpf olt, %680, %734 : vector<1x128xf32>
      %cst_151 = arith.constant 0.000000e+00 : f32
      %736 = vector.broadcast %cst_151 : f32 to vector<1x128xf32>
      %737 = arith.select %735, %682, %736 : vector<1x128xi1>, vector<1x128xf32>
      %cst_152 = arith.constant dense<0.000000e+00> : vector<1xf32>
      %738 = vector.multi_reduction <add>, %737, %cst_152 [1] : vector<1x128xf32> to vector<1xf32>
      %739 = vector.shape_cast %738 : vector<1xf32> to vector<1x1xf32>
      %740 = arith.cmpf oge, %739, %246 : vector<1x1xf32>
      %cst_153 = arith.constant 1.000000e+00 : f32
      %741 = vector.broadcast %cst_153 : f32 to vector<1x1xf32>
      %742 = arith.addf %733, %741 : vector<1x1xf32>
      %743 = arith.select %740, %728, %742 : vector<1x1xi1>, vector<1x1xf32>
      %744 = arith.select %740, %733, %729 : vector<1x1xi1>, vector<1x1xf32>
      %c4_i32_154 = arith.constant 4 : i32
      %745 = arith.addf %743, %744 : vector<1x1xf32>
      %cst_155 = arith.constant 5.000000e-01 : f32
      %746 = vector.broadcast %cst_155 : f32 to vector<1x1xf32>
      %747 = arith.mulf %746, %745 : vector<1x1xf32>
      %748 = math.floor %747 : vector<1x1xf32>
      %749 = vector.broadcast %748 : vector<1x1xf32> to vector<1x128xf32>
      %750 = arith.cmpf olt, %680, %749 : vector<1x128xf32>
      %cst_156 = arith.constant 0.000000e+00 : f32
      %751 = vector.broadcast %cst_156 : f32 to vector<1x128xf32>
      %752 = arith.select %750, %682, %751 : vector<1x128xi1>, vector<1x128xf32>
      %cst_157 = arith.constant dense<0.000000e+00> : vector<1xf32>
      %753 = vector.multi_reduction <add>, %752, %cst_157 [1] : vector<1x128xf32> to vector<1xf32>
      %754 = vector.shape_cast %753 : vector<1xf32> to vector<1x1xf32>
      %755 = arith.cmpf oge, %754, %246 : vector<1x1xf32>
      %cst_158 = arith.constant 1.000000e+00 : f32
      %756 = vector.broadcast %cst_158 : f32 to vector<1x1xf32>
      %757 = arith.addf %748, %756 : vector<1x1xf32>
      %758 = arith.select %755, %743, %757 : vector<1x1xi1>, vector<1x1xf32>
      %759 = arith.select %755, %748, %744 : vector<1x1xi1>, vector<1x1xf32>
      %c5_i32_159 = arith.constant 5 : i32
      %760 = arith.addf %758, %759 : vector<1x1xf32>
      %cst_160 = arith.constant 5.000000e-01 : f32
      %761 = vector.broadcast %cst_160 : f32 to vector<1x1xf32>
      %762 = arith.mulf %761, %760 : vector<1x1xf32>
      %763 = math.floor %762 : vector<1x1xf32>
      %764 = vector.broadcast %763 : vector<1x1xf32> to vector<1x128xf32>
      %765 = arith.cmpf olt, %680, %764 : vector<1x128xf32>
      %cst_161 = arith.constant 0.000000e+00 : f32
      %766 = vector.broadcast %cst_161 : f32 to vector<1x128xf32>
      %767 = arith.select %765, %682, %766 : vector<1x128xi1>, vector<1x128xf32>
      %cst_162 = arith.constant dense<0.000000e+00> : vector<1xf32>
      %768 = vector.multi_reduction <add>, %767, %cst_162 [1] : vector<1x128xf32> to vector<1xf32>
      %769 = vector.shape_cast %768 : vector<1xf32> to vector<1x1xf32>
      %770 = arith.cmpf oge, %769, %246 : vector<1x1xf32>
      %cst_163 = arith.constant 1.000000e+00 : f32
      %771 = vector.broadcast %cst_163 : f32 to vector<1x1xf32>
      %772 = arith.addf %763, %771 : vector<1x1xf32>
      %773 = arith.select %770, %758, %772 : vector<1x1xi1>, vector<1x1xf32>
      %774 = arith.select %770, %763, %759 : vector<1x1xi1>, vector<1x1xf32>
      %c6_i32_164 = arith.constant 6 : i32
      %775 = arith.addf %773, %774 : vector<1x1xf32>
      %cst_165 = arith.constant 5.000000e-01 : f32
      %776 = vector.broadcast %cst_165 : f32 to vector<1x1xf32>
      %777 = arith.mulf %776, %775 : vector<1x1xf32>
      %778 = math.floor %777 : vector<1x1xf32>
      %779 = vector.broadcast %778 : vector<1x1xf32> to vector<1x128xf32>
      %780 = arith.cmpf olt, %680, %779 : vector<1x128xf32>
      %cst_166 = arith.constant 0.000000e+00 : f32
      %781 = vector.broadcast %cst_166 : f32 to vector<1x128xf32>
      %782 = arith.select %780, %682, %781 : vector<1x128xi1>, vector<1x128xf32>
      %cst_167 = arith.constant dense<0.000000e+00> : vector<1xf32>
      %783 = vector.multi_reduction <add>, %782, %cst_167 [1] : vector<1x128xf32> to vector<1xf32>
      %784 = vector.shape_cast %783 : vector<1xf32> to vector<1x1xf32>
      %785 = arith.cmpf oge, %784, %246 : vector<1x1xf32>
      %cst_168 = arith.constant 1.000000e+00 : f32
      %786 = vector.broadcast %cst_168 : f32 to vector<1x1xf32>
      %787 = arith.addf %778, %786 : vector<1x1xf32>
      %788 = arith.select %785, %773, %787 : vector<1x1xi1>, vector<1x1xf32>
      %789 = arith.select %785, %778, %774 : vector<1x1xi1>, vector<1x1xf32>
      %c7_i32_169 = arith.constant 7 : i32
      %790 = arith.addf %788, %789 : vector<1x1xf32>
      %cst_170 = arith.constant 5.000000e-01 : f32
      %791 = vector.broadcast %cst_170 : f32 to vector<1x1xf32>
      %792 = arith.mulf %791, %790 : vector<1x1xf32>
      %793 = math.floor %792 : vector<1x1xf32>
      %794 = vector.broadcast %793 : vector<1x1xf32> to vector<1x128xf32>
      %795 = arith.cmpf olt, %680, %794 : vector<1x128xf32>
      %cst_171 = arith.constant 0.000000e+00 : f32
      %796 = vector.broadcast %cst_171 : f32 to vector<1x128xf32>
      %797 = arith.select %795, %682, %796 : vector<1x128xi1>, vector<1x128xf32>
      %cst_172 = arith.constant dense<0.000000e+00> : vector<1xf32>
      %798 = vector.multi_reduction <add>, %797, %cst_172 [1] : vector<1x128xf32> to vector<1xf32>
      %799 = vector.shape_cast %798 : vector<1xf32> to vector<1x1xf32>
      %800 = arith.cmpf oge, %799, %246 : vector<1x1xf32>
      %cst_173 = arith.constant 1.000000e+00 : f32
      %801 = vector.broadcast %cst_173 : f32 to vector<1x1xf32>
      %802 = arith.addf %793, %801 : vector<1x1xf32>
      %803 = arith.select %800, %788, %802 : vector<1x1xi1>, vector<1x1xf32>
      %804 = arith.select %800, %793, %789 : vector<1x1xi1>, vector<1x1xf32>
      %c8_i32_174 = arith.constant 8 : i32
      %805 = arith.addf %803, %804 : vector<1x1xf32>
      %cst_175 = arith.constant 5.000000e-01 : f32
      %806 = vector.broadcast %cst_175 : f32 to vector<1x1xf32>
      %807 = arith.mulf %806, %805 : vector<1x1xf32>
      %808 = math.floor %807 : vector<1x1xf32>
      %809 = vector.broadcast %808 : vector<1x1xf32> to vector<1x128xf32>
      %810 = arith.cmpf olt, %680, %809 : vector<1x128xf32>
      %cst_176 = arith.constant 0.000000e+00 : f32
      %811 = vector.broadcast %cst_176 : f32 to vector<1x128xf32>
      %812 = arith.select %810, %682, %811 : vector<1x128xi1>, vector<1x128xf32>
      %cst_177 = arith.constant dense<0.000000e+00> : vector<1xf32>
      %813 = vector.multi_reduction <add>, %812, %cst_177 [1] : vector<1x128xf32> to vector<1xf32>
      %814 = vector.shape_cast %813 : vector<1xf32> to vector<1x1xf32>
      %815 = arith.cmpf oge, %814, %246 : vector<1x1xf32>
      %cst_178 = arith.constant 1.000000e+00 : f32
      %816 = vector.broadcast %cst_178 : f32 to vector<1x1xf32>
      %817 = arith.addf %808, %816 : vector<1x1xf32>
      %818 = arith.select %815, %803, %817 : vector<1x1xi1>, vector<1x1xf32>
      %819 = arith.select %815, %808, %804 : vector<1x1xi1>, vector<1x1xf32>
      %820 = vector.broadcast %819 : vector<1x1xf32> to vector<1x128xf32>
      %821 = arith.cmpf olt, %680, %820 : vector<1x128xf32>
      %822 = arith.andi %228, %821 : vector<1x128xi1>
      %cst_179 = arith.constant 0.000000e+00 : f32
      %823 = vector.broadcast %cst_179 : f32 to vector<1x128xf32>
      %824 = arith.select %822, %226, %823 : vector<1x128xi1>, vector<1x128xf32>
      %cst_180 = arith.constant dense<0.000000e+00> : vector<1xf32>
      %825 = vector.multi_reduction <add>, %824, %cst_180 [1] : vector<1x128xf32> to vector<1xf32>
      %826 = vector.shape_cast %825 : vector<1xf32> to vector<1x1xf32>
      %827 = arith.addf %678, %826 : vector<1x1xf32>
      %828 = tpu.iota {dimensions = array<i32: 1>} : vector<1x4xi32>
      %c0_i32_181 = arith.constant 0 : i32
      %829 = vector.broadcast %c0_i32_181 : i32 to vector<1x4xi32>
      %830 = arith.cmpi eq, %828, %829 : vector<1x4xi32>
      %cst_182 = arith.constant 0.000000e+00 : f32
      %831 = vector.shape_cast %206 : vector<1x1xf32> to vector<1x1xf32>
      %832 = vector.broadcast %831 : vector<1x1xf32> to vector<1x4xf32>
      %833 = vector.broadcast %cst_182 : f32 to vector<1x4xf32>
      %834 = arith.select %830, %832, %833 : vector<1x4xi1>, vector<1x4xf32>
      %c1_i32_183 = arith.constant 1 : i32
      %835 = vector.broadcast %c1_i32_183 : i32 to vector<1x4xi32>
      %836 = arith.cmpi eq, %828, %835 : vector<1x4xi32>
      %cst_184 = arith.constant 0.000000e+00 : f32
      %837 = vector.shape_cast %236 : vector<1x1xf32> to vector<1x1xf32>
      %838 = vector.broadcast %837 : vector<1x1xf32> to vector<1x4xf32>
      %839 = vector.broadcast %cst_184 : f32 to vector<1x4xf32>
      %840 = arith.select %836, %838, %839 : vector<1x4xi1>, vector<1x4xf32>
      %841 = arith.addf %834, %840 : vector<1x4xf32>
      %c2_i32_185 = arith.constant 2 : i32
      %842 = vector.broadcast %c2_i32_185 : i32 to vector<1x4xi32>
      %843 = arith.cmpi eq, %828, %842 : vector<1x4xi32>
      %cst_186 = arith.constant 0.000000e+00 : f32
      %844 = vector.shape_cast %827 : vector<1x1xf32> to vector<1x1xf32>
      %845 = vector.broadcast %844 : vector<1x1xf32> to vector<1x4xf32>
      %846 = vector.broadcast %cst_186 : f32 to vector<1x4xf32>
      %847 = arith.select %843, %845, %846 : vector<1x4xi1>, vector<1x4xf32>
      %848 = arith.addf %841, %847 : vector<1x4xf32>
      %c3_i32_187 = arith.constant 3 : i32
      %849 = vector.broadcast %c3_i32_187 : i32 to vector<1x4xi32>
      %850 = arith.cmpi eq, %828, %849 : vector<1x4xi32>
      %cst_188 = arith.constant 0.000000e+00 : f32
      %851 = vector.shape_cast %114 : vector<1x1xf32> to vector<1x1xf32>
      %852 = vector.broadcast %851 : vector<1x1xf32> to vector<1x4xf32>
      %853 = vector.broadcast %cst_188 : f32 to vector<1x4xf32>
      %854 = arith.select %850, %852, %853 : vector<1x4xi1>, vector<1x4xf32>
      %855 = arith.addf %848, %854 : vector<1x4xf32>
      %856 = vector.shape_cast %855 : vector<1x4xf32> to vector<1x1x4xf32>
      %c0_189 = arith.constant 0 : index
      %c0_190 = arith.constant 0 : index
      %c0_191 = arith.constant 0 : index
      %857 = vector.load %arg7[%c0_189, %c0_190, %c0_191] : memref<1x1x4xf32, #tpu.memory_space<vmem>>, vector<1x1x4xf32>
      tpu.vector_store %arg7[%c0_189, %c0_190, %c0_191], %856 {strides = array<i32>} : memref<1x1x4xf32, #tpu.memory_space<vmem>>, vector<1x1x4xf32>,
    } else {
    }
    return
  }
  func.func @transform_0(%arg0: i32, %arg1: memref<3xi32, #tpu.memory_space<smem>>) -> (i32, i32, i32) {
    %c0_i32 = arith.constant 0 : i32
    %c0_i32_0 = arith.constant 0 : i32
    %c0_i32_1 = arith.constant 0 : i32
    return %arg0, %c0_i32, %c0_i32_0 : i32, i32, i32
  }
  func.func @transform_1(%arg0: i32, %arg1: memref<3xi32, #tpu.memory_space<smem>>) -> (i32, i32, i32) {
    %c0_i32 = arith.constant 0 : i32
    %c0_i32_0 = arith.constant 0 : i32
    %c0_i32_1 = arith.constant 0 : i32
    return %arg0, %c0_i32, %c0_i32_0 : i32, i32, i32
  }
  func.func @transform_2(%arg0: i32, %arg1: memref<3xi32, #tpu.memory_space<smem>>) -> (i32, i32, i32) {
    %c0_i32 = arith.constant 0 : i32
    %c0_i32_0 = arith.constant 0 : i32
    %c0_i32_1 = arith.constant 0 : i32
    return %arg0, %c0_i32, %c0_i32_0 : i32, i32, i32
  }
  func.func @transform_3(%arg0: i32, %arg1: memref<3xi32, #tpu.memory_space<smem>>) -> (i32, i32, i32) {
    %c0_i32 = arith.constant 0 : i32
    %c0_i32_0 = arith.constant 0 : i32
    %c0_i32_1 = arith.constant 0 : i32
    return %arg0, %c0_i32, %c0_i32_0 : i32, i32, i32
  }
  func.func @transform_4(%arg0: i32, %arg1: memref<3xi32, #tpu.memory_space<smem>>) -> (i32, i32, i32) {
    %c0_i32 = arith.constant 0 : i32
    %c0_i32_0 = arith.constant 0 : i32
    %c0_i32_1 = arith.constant 0 : i32
    return %arg0, %c0_i32, %c0_i32_0 : i32, i32, i32
  }
  func.func @transform_5(%arg0: i32, %arg1: memref<3xi32, #tpu.memory_space<smem>>) -> (i32, i32, i32) {
    %c0_i32 = arith.constant 0 : i32
    %c0_i32_0 = arith.constant 0 : i32
    %c0_i32_1 = arith.constant 0 : i32
    return %arg0, %c0_i32, %c0_i32_0 : i32, i32, i32
  }
}

</mosaic_0001>

<bundles_post_ra>
// kernel: tpu_custom_call.1
= control target key start
LH: loop header
LB: loop body
LE: loop exit
PB: predicated region body
PF: predicated region fallthrough
CT: control target
= control target key end

     0   :  { %s2212_s0 = inlined_call_operand.vmem [shape: s32[3], index: 0, kind: input, shape index: {}]   ;;  %s2213_s1 = inlined_call_operand.vmem [shape: f32[3,128,8], index: 1, kind: input, shape index: {}]   ;;  %s2214_s2 = inlined_call_operand.vmem [shape: f32[3,128,4], index: 2, kind: input, shape index: {}]   ;;  %s2215_s3 = inlined_call_operand.vmem [shape: f32[3,128,4], index: 3, kind: input, shape index: {}]   ;;  %s2216_s4 = inlined_call_operand.vmem [shape: f32[3,8,4], index: 4, kind: input, shape index: {}]   ;;  %s2217_s5 = inlined_call_operand.vmem [shape: f32[3,1,8], index: 5, kind: input, shape index: {}]   ;;  %s2218_s6 = inlined_call_operand.hbm [shape: f32[3,1,4], index: 6, kind: output, shape index: {}]  }
   0x1   :  { %2220 = sst [smem:[#allocation10_spill]] %s2213_s1  ;;  %s11_s23 = sshll.u32 %s2212_s0, 4  ;;  %s12_s23 = int_to_ptr.vmem [resolvable:$true] %s11_s23 }
   0x2   :  { %s1598_s24 = scalar_lea.vmem %s12_s23, 16  ;;  %p1603_p1 = scmp.lt.s32.totalorder %s12_s23, %s12_s23 }
   0x3   :  { %p1599_p0 = scmp.ne.s32.totalorder %s12_s23, %s1598_s24  ;;  %p1604_p2 = scmp.lt.s32.totalorder %s1598_s24, %s1598_s24 }
   0x5   :  { %p1605_p3 = por %p1604_p2, %p1603_p1 }
   0x7   :  { %p1606_p4 = pnand %p1605_p3, %p1599_p0 }
   0x9   :  { %1609 = shalt.err (!%p1606_p4)  }
   0xa   :  { %s1674_s25 = smov [#allocation3]  }
   0xb   :  { %14 = dma.vmem_to_smem %s12_s23, 16, %s1674_s25, [#allocation2] }
   0xc   :  { %1652 = dma.done.wait [#allocation2], 16 }
   0xd   :  { %1653 = vsyncadd [#allocation2], 4294967280 }
   0xe   :  { %16 = sfence }
   0xf   :  { %17 = vsyncpa [#allocation5], 0 }
  0x10   :  { %19 = vsyncpa [#allocation5 + $0x1], 0  ;;  %s1728_s26 = smov 0   ;;  %s1730_s27 = smov 0  }
  0x11   :  { %s1732_s0 = smov 0   ;;  %s1734_s28 = smov 0  }
  0x12 LB: > { %2221 = sst [smem:[#allocation8_spill]] %s1668_s0  ;;  %s1749_s29 = sadd.s32 4294967295, %s1672_s28   ;;  %s1672_s28 = sphi %s1734_s28, %s2234_s28   ;;  %s1668_s0 = sphi %s1732_s0, %s2231_s0   ;;  %s1664_s27 = sphi %s1730_s27, %s2233_s27   ;;  %s1660_s26 = sphi %s1728_s26, %s2232_s26  }
  0x13   : > { %s1460_s30 = sadd.s32 4294967294, %s1672_s28   ;;  %s1753_s7 = sadd.s32 1, %s1672_s28  }
  0x14   : > { %s162_s8 = sadd.s32 1, %s1668_s0  ;;  %s159_s9 = ssub.s32 %s1672_s28, %s1753_s7 }
  0x15   : > { %p172_p5 = scmp.ne.s32.totalorder %s1668_s0, %s1664_s27  ;;  %p160_p6 = scmp.eq.s32.totalorder %s159_s9, 0 }
  0x16   : > { %p173_p7 = scmp.eq.s32.totalorder %s1749_s29, 2  ;;  %p178_p8 = scmp.ne.s32.totalorder %s1664_s27, %s1660_s26 }
  0x17   : > { %p179_p9 = scmp.eq.s32.totalorder %s1460_s30, 2  ;;  %p1463_p12 = scmp.ge.s32.totalorder %s1672_s28, 1 }
  0x18   : > { %s1764_s10 = scalar_select %p160_p6, %s1668_s0, %s162_s8  }
  0x19   : > { %p1766_p10 = por %p173_p7, %p172_p5  ;;  %p1770_p11 = por %p179_p9, %p178_p8 }
  0x1a   : > { %2222 = sst [smem:[#allocation9_spill]] %s1764_s10  ;;  %p234_p13 = scmp.lt.s32.totalorder %s1672_s28, 4 }
  0x1c   : > { %p235_p0 = pnand %p1463_p12, %p234_p13 }
  0x1d   : > { %p278_p1 = scmp.lt.s32.totalorder (!%p235_p0), %s1749_s29, 2  ;;  %s1779_s14 = sld [smem:[#allocation3 + %s1749_s29]] (!%p235_p0) }
  0x1e   : > { %238 = sbr.rel (%p235_p0) target bundleno = 5765 (0x1685), region = 40  ;;  %s2225_s1 = sld [smem:[#allocation10_spill]] (!%p235_p0) }
  0x1f   : > { %s2226_s19 = sand.u32 (!%p235_p0), 1, %s1664_s27  }
  0x23   : > { %s1782_s15 = scalar_select %p278_p1, %s1749_s29, 2 }
  0x24   : > { %p1471_p2 = scmp.ne.s32.totalorder %s1779_s14, 0 }
  0x25   : > { %s1517_s16 = sshll.u32 %s1782_s15, 7  ;;  %s1470_s17 = sshll.u32 %s1782_s15, 3 }
  0x26   : > { %s1789_s20 = scalar_lea.vmem %s2225_s1, %s1517_s16  ;;  %s1794_s23 = scalar_lea.vmem %s2214_s2, %s1517_s16 }
  0x27   : > { %s1799_s30 = scalar_lea.vmem %s2215_s3, %s1517_s16  ;;  %s296_s13 = scalar_lea.vmem %s2216_s4, %s1470_s17 }
  0x28   : > { %s299_s18 = scalar_lea.vmem %s2217_s5, %s1782_s15  ;;  %s1810_s1 = scalar_lea.vmem [#allocation4], %s2226_s19 }
  0x29   : > { %304 = sbr.rel (%p1471_p2) target bundleno = 48 (0x30), region = 44 }
  0x2e   : > { %vm305_vm0 = vcmask 24576   ;;  %v1675_v0 = vmov 0.0  }
  0x2f   : > { %306 = vst.msk [vmem:[%s1810_s1] sm:$0x1] %vm305_vm0, %v1675_v0 }
  0x30 PF: > { %p1472_p3 = scmp.le.s32.totalorder %s1779_s14, 0 }
  0x31   : > { %s1676_s16 = smov (!%p1472_p3), 2   ;;  %s1681_s0 = smov (!%p1472_p3), 127  }
  0x32   : > { %310 = sbr.rel (%p1472_p3) target bundleno = 5741 (0x166d), region = 48 }
  0x37   : > { %v1815_v1 = vld [vmem:[%s296_s13] sm:$0xff]  ;;  %v1677_v2 = vmov 0   ;;  %v1678_v3 = vmov 2   ;;  %v1679_v4 = vmov 1   ;;  %v1680_v5 = vmov 3   ;;  %v312_v10 = vld [vmem:[%s1799_s30 + $0x8] sm:$0xff] }
  0x38   : > { %466 = vrot.lane.b32.xlu0 %v1815_v1, %s1676_s16  ;;  %1581 = vset.pattern.permute.xlu1 %v1677_v2  ;;  %v311_v8 = vld [vmem:[%s1799_s30] sm:$0xff]  ;;  %v1682_v9 = vmov 0.0   ;;  %v313_v11 = vld [vmem:[%s1799_s30 + $0x10] sm:$0xff]  ;;  %v314_v12 = vld [vmem:[%s1799_s30 + $0x18] sm:$0xff]  ;;  %v479_v28 = vlaneseq  ;;  %vm1683_vm6 = vmmov 0   ;;  %vm626_vm15 = vcmask 1043456  }
  0x39   : > { %1583 = vset.pattern.permute.xlu0 %v1678_v3  ;;  %476 = vperm.xlu1 %1581, %v1815_v1   ;;  %v315_v13 = vld [vmem:[%s1799_s30 + $0x20] sm:$0xff]  ;;  %v316_v14 = vld [vmem:[%s1799_s30 + $0x28] sm:$0xff]  ;;  %v317_v15 = vld [vmem:[%s1799_s30 + $0x30] sm:$0xff]  ;;  %v540_v60 = vstv %s1779_s14  ;;  %vm628_vm0 = vcmask 64512  }
  0x3a   : > { %1522 = vmatprep.subr.mxu0 %v1682_v9  ;;  %v318_v16 = vld [vmem:[%s1799_s30 + $0x38] sm:$0xff]  ;;  %v319_v17 = vld [vmem:[%s1799_s30 + $0x40] sm:$0xff]  ;;  %v320_v18 = vld [vmem:[%s1799_s30 + $0x48] sm:$0xff]  ;;  %v1841_v30 = vshrl.u32 %v479_v28, 7  ;;  %1524 = vmatprep.mubr.msk.f32.mxu0 %vm1683_vm6, %v1682_v9 }
  0x3b   : > { %v321_v19 = vld [vmem:[%s1799_s30 + $0x50] sm:$0xff]  ;;  %v322_v20 = vld [vmem:[%s1799_s30 + $0x58] sm:$0xff]  ;;  %v323_v21 = vld [vmem:[%s1799_s30 + $0x60] sm:$0xff] }
  0x3c   : > { %494 = vperm.xlu0 %1583, %v1815_v1   ;;  %v324_v22 = vld [vmem:[%s1799_s30 + $0x68] sm:$0xff]  ;;  %v325_v23 = vld [vmem:[%s1799_s30 + $0x70] sm:$0xff]  ;;  %v326_v24 = vld [vmem:[%s1799_s30 + $0x78] sm:$0xff]  ;;  %v481_v32 = vsub.s32 0, %v1841_v30  ;;  %v490_v33 = vsub.s32 1, %v1841_v30  ;;  %v499_v34 = vsub.s32 2, %v1841_v30  ;;  %vm1862_vm4 = vcmp.lt.s32.totalorder %v1841_v30, %v540_v60 }
  0x3d   : > { %1582 = vset.pattern.permute.xlu1 %v1679_v4  ;;  %v508_v35 = vsub.s32 3, %v1841_v30 }
  0x3e   : > { %485 = vperm.xlu1 %1582, %v1815_v1  }
  0x42   : > { %1584 = vset.pattern.permute.xlu1 %v1680_v5 }
  0x43   : > { %503 = vperm.xlu1 %1584, %v1815_v1  }
  0x47   : > { %1585 = vset.pattern.permute.xlu1 %v1678_v3  ;;  %v1868_v3 = vand.u32 127, %v479_v28 }
  0x49   : > { %v1871_v4 = vcvt.s32.f32 %v1868_v3 }
  0xaa   : > { %v467_v6 = vpop.permute.xlu0 %466 }
  0xab   : > { %v469_v7 = vsub.f32 %v1815_v1, %v467_v6 }
  0xad   : > { %471 = vrot.lane.b32.xlu0 %v469_v7, %s1681_s0 }
  0xb4   : > { %v477_v29 = vpop.permute.xlu1 %476 }
  0xb7   : > { %v495_v25 = vpop.permute.xlu0 %494 }
  0xb9   : > { %v486_v31 = vpop.permute.xlu1 %485 }
  0xbe   : > { %v504_v42 = vpop.permute.xlu1 %503 }
  0xcb   : > { %327 = vxpose.xlu0.b32.start [1/16] (narrow) %v311_v8, 8  ;;  %v408_v8 = vld [vmem:[%s1789_s20 + $0x8] sm:$0xff] }
  0xcf   : > { %328 = vxpose.xlu0.b32.cont [2/16] (narrow) %v312_v10, 8  ;;  %v409_v10 = vld [vmem:[%s1789_s20 + $0x10] sm:$0xff] }
  0xd3   : > { %329 = vxpose.xlu0.b32.cont [3/16] (narrow) %v313_v11, 8  ;;  %v410_v11 = vld [vmem:[%s1789_s20 + $0x18] sm:$0xff] }
  0xd7   : > { %330 = vxpose.xlu0.b32.cont [4/16] (narrow) %v314_v12, 8  ;;  %v411_v12 = vld [vmem:[%s1789_s20 + $0x20] sm:$0xff] }
  0xdb   : > { %331 = vxpose.xlu0.b32.cont [5/16] (narrow) %v315_v13, 8  ;;  %v412_v13 = vld [vmem:[%s1789_s20 + $0x28] sm:$0xff] }
  0xdf   : > { %332 = vxpose.xlu0.b32.cont [6/16] (narrow) %v316_v14, 8  ;;  %v413_v14 = vld [vmem:[%s1789_s20 + $0x30] sm:$0xff] }
  0xe3   : > { %333 = vxpose.xlu0.b32.cont [7/16] (narrow) %v317_v15, 8  ;;  %v414_v15 = vld [vmem:[%s1789_s20 + $0x38] sm:$0xff] }
  0xe7   : > { %334 = vxpose.xlu0.b32.cont [8/16] (narrow) %v318_v16, 8  ;;  %v415_v16 = vld [vmem:[%s1789_s20 + $0x40] sm:$0xff] }
  0xeb   : > { %335 = vxpose.xlu0.b32.cont [9/16] (narrow) %v319_v17, 8  ;;  %v416_v17 = vld [vmem:[%s1789_s20 + $0x48] sm:$0xff] }
  0xef   : > { %336 = vxpose.xlu0.b32.cont [10/16] (narrow) %v320_v18, 8  ;;  %v417_v18 = vld [vmem:[%s1789_s20 + $0x50] sm:$0xff] }
  0xf3   : > { %337 = vxpose.xlu0.b32.cont [11/16] (narrow) %v321_v19, 8  ;;  %v418_v19 = vld [vmem:[%s1789_s20 + $0x58] sm:$0xff] }
  0xf7   : > { %338 = vxpose.xlu0.b32.cont [12/16] (narrow) %v322_v20, 8  ;;  %v419_v20 = vld [vmem:[%s1789_s20 + $0x60] sm:$0xff] }
  0xfb   : > { %339 = vxpose.xlu0.b32.cont [13/16] (narrow) %v323_v21, 8  ;;  %v420_v21 = vld [vmem:[%s1789_s20 + $0x68] sm:$0xff] }
  0xff   : > { %340 = vxpose.xlu0.b32.cont [14/16] (narrow) %v324_v22, 8  ;;  %v421_v22 = vld [vmem:[%s1789_s20 + $0x70] sm:$0xff] }
 0x103   : > { %341 = vxpose.xlu0.b32.cont [15/16] (narrow) %v325_v23, 8  ;;  %v422_v23 = vld [vmem:[%s1789_s20 + $0x78] sm:$0xff] }
 0x107   : > { %342 = vxpose.xlu0.b32.end [16/16] (narrow) %v326_v24, 8 }
 0x11f   : > { %v472_v26 = vpop.permute.xlu0 %471 }
 0x120   : > { %v474_v27 = vmul.f32 %v472_v26, %v469_v7  ;;  %v407_v7 = vld [vmem:[%s1789_s20] sm:$0xff] }
 0x121   : > { %423 = vxpose.xlu0.b32.start [1/16] (narrow) %v407_v7, 8 }
 0x122   : > { %526 = vperm.xlu1 %1585, %v474_v27  }
 0x125   : > { %424 = vxpose.xlu0.b32.cont [2/16] (narrow) %v408_v8, 8 }
 0x129   : > { %425 = vxpose.xlu0.b32.cont [3/16] (narrow) %v409_v10, 8 }
 0x12d   : > { %426 = vxpose.xlu0.b32.cont [4/16] (narrow) %v410_v11, 8  ;;  %v802_v11 = vsub.s32 4, %v1841_v30 }
 0x131   : > { %427 = vxpose.xlu0.b32.cont [5/16] (narrow) %v411_v12, 8 }
 0x135   : > { %428 = vxpose.xlu0.b32.cont [6/16] (narrow) %v412_v13, 8 }
 0x139   : > { %429 = vxpose.xlu0.b32.cont [7/16] (narrow) %v413_v14, 8 }
 0x13d   : > { %430 = vxpose.xlu0.b32.cont [8/16] (narrow) %v414_v15, 8 }
 0x141   : > { %431 = vxpose.xlu0.b32.cont [9/16] (narrow) %v415_v16, 8 }
 0x145   : > { %432 = vxpose.xlu0.b32.cont [10/16] (narrow) %v416_v17, 8 }
 0x147   : > { %v1847_v36 = vpop.trf.xlu0 }
 0x148   : > { %v482_v37 = vrot.slane %v1847_v36, %v481_v32  ;;  %v491_v38 = vrot.slane %v1847_v36, %v490_v33  ;;  %v500_v39 = vrot.slane %v1847_v36, %v499_v34  ;;  %v509_v40 = vrot.slane %v1847_v36, %v508_v35 }
 0x149   : > { %v458_v41 = vrot.slane %v1847_v36, 6  ;;  %433 = vxpose.xlu0.b32.cont [11/16] (narrow) %v417_v18, 8 }
 0x14a   : > { %v483_v43 = vmax.f32 %v477_v29, %v482_v37  ;;  %v492_v44 = vmax.f32 %v486_v31, %v491_v38  ;;  %v501_v45 = vmin.f32 %v495_v25, %v500_v39  ;;  %v510_v46 = vmin.f32 %v504_v42, %v509_v40 }
 0x14b   : > { %v1855_v47 = vsub.f32 %v1847_v36, %v458_v41  ;;  %v1893_v29 = vcvt.s32.f32 %v1841_v30 }
 0x14c   : > { %vm511_vm1 = vcmp.lt.f32.partialorder %v483_v43, %v501_v45  ;;  %vm512_vm2 = vcmp.lt.f32.partialorder %v492_v44, %v510_v46  ;;  %v516_v49 = vsub.f32 %v501_v45, %v483_v43  ;;  %v517_v50 = vsub.f32 %v510_v46, %v492_v44 }
 0x14d   : > { %v462_v48 = vrot.slane %v1855_v47, 1  ;;  %vm513_vm3 = vmand %vm511_vm1, %vm512_vm2  ;;  %434 = vxpose.xlu0.b32.cont [12/16] (narrow) %v418_v19, 8  ;;  %vm816_vm1 = vcmask 1044484  }
 0x14e   : > { %v518_v52 = vmul.f32 %v517_v50, %v516_v49  ;;  %v1473_v53 = vsel %vm513_vm3, 1.0, %v1682_v9  ;;  %v1684_v50 = vmov 1.0  }
 0x14f   : > { %v464_v51 = vmul.f32 %v462_v48, %v1855_v47 }
 0x150   : > { %v519_v56 = vmul.f32 %v1473_v53, %v518_v52 }
 0x151   : > { %v523_v54 = vrot.slane %v464_v51, %v499_v34  ;;  %435 = vxpose.xlu0.b32.cont [13/16] (narrow) %v419_v20, 8  ;;  %v1476_v51 = vld [vmem:[%s299_s18] ss:$0 sm:$0xff] }
 0x155   : > { %436 = vxpose.xlu0.b32.cont [14/16] (narrow) %v420_v21, 8 }
 0x159   : > { %437 = vxpose.xlu0.b32.cont [15/16] (narrow) %v421_v22, 8 }
 0x15d   : > { %438 = vxpose.xlu0.b32.end [16/16] (narrow) %v422_v23, 8 }
 0x19d   : > { %v527_v55 = vpop.permute.xlu1 %526 }
 0x19e   : > { %v529_v57 = vadd.f32 %v527_v55, %v523_v54  ;;  %v439_v54 = vpop.trf.xlu0 }
 0x19f   : > { %v782_v55 = vrot.slane %v439_v54, 4 }
 0x1a0   : > { %v530_v58 = vsub.f32 %v529_v57, %v519_v56 }
 0x1a2   : > { %v531_v59 = vmax.f32 %v530_v58, 1e-12 }
 0x1a4   : > { %1586 = vrcp.f32 %v531_v59 }
 0x1b1   : > { %v1587_v61 = vpop.eup %1586 }
 0x1b2   : > { %v533_v63 = vmul.f32 %v1587_v61, %v519_v56  ;;  %v783_v56 = vmax.f32 %v439_v54, %v782_v55 }
 0x1b4   : > { %v544_v0 = vsel %vm1862_vm4, %v533_v63, -1e+30  ;;  %v784_v57 = vrot.slane %v783_v56, 2 }
 0x1b5   : > { %561 = vmax.xlane.f32.xlu1 %v544_v0  ;;  %v545_v24 = vrot.slane %v544_v0, 4 }
 0x1b6   : > { %v785_v58 = vmax.f32 %v783_v56, %v784_v57 }
 0x1b8   : > { %v786_v59 = vrot.slane %v785_v58, 1 }
 0x1ba   : > { %v787_v60 = vmax.f32 %v785_v58, %v786_v59 }
 0x1bc   : > { %v788_v61 = vsub.f32 %v439_v54, %v787_v60 }
 0x1be   : > { %v789_v62 = vmul.f32 1.442695, %v788_v61 }
 0x1c0   : > { %1588 = vpow2.f32 %v789_v62 }
 0x1cd   : > { %v1589_v63 = vpop.eup %1588 }
 0x23e   : > { %v562_v5 = vpop.xlane.xlu1 %561 }
 0x23f   : > { %vm563_vm5 = vcmp.eq.f32.partialorder %v544_v0, %v562_v5 }
 0x240   : > { %v564_v6 = vsel %vm563_vm5, %v1871_v4, 128.0 }
 0x241   : > { %565 = vmin.xlane.f32.xlu1 %v564_v6 }
 0x274   : > { %588 = vxpose.xlu1.b32.start.end [1/1] (short) (narrow) %v1815_v1, 8  ;;  %v546_v1 = vmax.f32 %v544_v0, %v545_v24 }
 0x276   : > { %v547_v25 = vrot.slane %v546_v1, 2 }
 0x278   : > { %v548_v26 = vmax.f32 %v546_v1, %v547_v25 }
 0x27a   : > { %v549_v27 = vrot.slane %v548_v26, 1 }
 0x27c   : > { %v550_v28 = vmax.f32 %v548_v26, %v549_v27 }
 0x27e   : > { %vm551_vm7 = vcmp.eq.f32.partialorder %v544_v0, %v550_v28  ;;  %vm559_vm10 = vcmp.lt.f32.partialorder %v550_v28, 0.45  ;;  %v791_v0 = vrot.slane %v1589_v63, 4 }
 0x27f   : > { %v552_v31 = vsel %vm551_vm7, %v1893_v29, 8.0 }
 0x280   : > { %v553_v32 = vrot.slane %v552_v31, 4  ;;  %v792_v5 = vadd.f32 %v1589_v63, %v791_v0 }
 0x282   : > { %v554_v33 = vmin.f32 %v552_v31, %v553_v32  ;;  %v793_v6 = vrot.slane %v792_v5, 2 }
 0x284   : > { %v555_v35 = vrot.slane %v554_v33, 2  ;;  %v794_v7 = vadd.f32 %v793_v6, %v792_v5 }
 0x286   : > { %v556_v39 = vmin.f32 %v554_v33, %v555_v35  ;;  %v795_v8 = vrot.slane %v794_v7, 1 }
 0x288   : > { %v557_v42 = vrot.slane %v556_v39, 1  ;;  %v796_v10 = vadd.f32 %v795_v8, %v794_v7 }
 0x28a   : > { %v558_v45 = vmin.f32 %v556_v39, %v557_v42  ;;  %1590 = vlog2.f32 %v796_v10  ;;  %v1685_v39 = vmov 4294967295  }
 0x28c   : > { %v560_v48 = vsel %vm559_vm10, -1.0, %v558_v45 }
 0x297   : > { %v1591_v20 = vpop.eup %1590 }
 0x298   : > { %v798_v22 = vmul.f32 0.6931472, %v1591_v20 }
 0x29a   : > { %v799_v1 = vadd.f32 %v798_v22, %v787_v60 }
 0x2ca   : > { %v566_v34 = vpop.xlane.xlu1 %565 }
 0x2cb   : > { %vm567_vm8 = vcmp.eq.f32.partialorder %v1871_v4, %v566_v34 }
 0x2cc   : > { %vm568_vm9 = vmand %vm567_vm8, %vm1862_vm4 }
 0x2cd   : > { %v569_v37 = vsel %vm568_vm9, %v1893_v29, -1.0 }
 0x2ce   : > { %v570_v38 = vrot.slane %v569_v37, 4 }
 0x2d0   : > { %v571_v40 = vmax.f32 %v569_v37, %v570_v38 }
 0x2d2   : > { %v572_v41 = vrot.slane %v571_v40, 2 }
 0x2d4   : > { %v573_v43 = vmax.f32 %v571_v40, %v572_v41  ;;  %v1686_v41 = vmov 1069547519  }
 0x2d6   : > { %v574_v44 = vrot.slane %v573_v43, 1 }
 0x2d8   : > { %v575_v46 = vmax.f32 %v573_v43, %v574_v44 }
 0x2da   : > { %vm576_vm11 = vcmp.ge.f32.partialorder %v575_v46, 0.0 }
 0x2db   : > { %v1900_v49 = vsel %vm576_vm11, %v575_v46, %v560_v48 }
 0x2dc   : > { %vm578_vm12 = vcmp.ge.f32.partialorder %v1900_v49, 0.0  ;;  %vm583_vm13 = vcmp.eq.f32.partialorder %v1893_v29, %v1900_v49 }
 0x2dd   : > { %vm585_vm14 = vmand %vm583_vm13, %vm578_vm12 }
 0x2de   : > { %1523 = vmatpush3.msk.msra.mxu0 %vm585_vm14, %v1684_v50 }
 0x2f0   : > { %v604_v52 = vpop.trf.xlu1 }
 0x2f1   : > { %v627_v53 = vsel %vm626_vm15, %v604_v52, %v1476_v51 }
 0x2f2   : > { %1525 = vmatmul.mubr.msk.f32.vlgmr.msra.gmra.mxu0 %vm628_vm0, %v627_v53 }
 0x3b2   : > { %v1913_v12 = vpop.f32.mrf.mxu0 }
 0x3b3   : > { %v1918_v13 = vsel %vm578_vm12, %v1913_v12, 7.0 }
 0x3b4   : > { %v803_v14 = vrot.slane %v1918_v13, %v802_v11  ;;  %vm813_vm2 = vcmp.lt.f32.partialorder %v1918_v13, 7.0  ;;  %v1526_v15 = vpop.f32.mrf.mxu0 }
 0x3b5   : > { %v1925_v16 = vsel %vm813_vm2, 1.0, %v1682_v9 }
 0x3b6   : > { %vm804_vm3 = vcmp.eq.f32.partialorder %v1893_v29, %v803_v14  ;;  %v817_v30 = vsel %vm816_vm1, %v1925_v16, 0.0 }
 0x3b7   : > { %v805_v17 = vsel %vm804_vm3, %v439_v54, 0.0  ;;  %818 = vadd.xlane.f32.xlu1 %v817_v30 }
 0x3b8   : > { %v806_v18 = vrot.slane %v805_v17, 4 }
 0x3ba   : > { %v807_v19 = vadd.f32 %v806_v18, %v805_v17 }
 0x3bc   : > { %v808_v21 = vrot.slane %v807_v19, 2 }
 0x3be   : > { %v809_v23 = vadd.f32 %v808_v21, %v807_v19 }
 0x3c0   : > { %v810_v24 = vrot.slane %v809_v23, 1 }
 0x3c2   : > { %v811_v25 = vadd.f32 %v810_v24, %v809_v23 }
 0x3c4   : > { %v1930_v26 = vsub.f32 %v799_v1, %v811_v25 }
 0x3c6   : > { %v1935_v27 = vsel %vm813_vm2, -1.0, %v1930_v26 }
 0x3c7   : > { %vm832_vm4 = vcmp.gt.s32.totalorder %v1935_v27, 1069547519 }
 0x3c8   : > { %v1482_v28 = vsel %vm832_vm4, 1.0, %v1682_v9 }
 0x3c9   : > { %v835_v29 = vsel %vm816_vm1, %v1482_v28, 0.0 }
 0x3ca   : > { %836 = vadd.xlane.f32.xlu1 %v835_v29 }
 0x440   : > { %v819_v31 = vpop.xlane.xlu1 %818 }
 0x441   : > { %v825_v32 = vmul.f32 3.0, %v819_v31  ;;  %v824_v33 = vsub.f32 128.0, %v819_v31 }
 0x443   : > { %v826_v34 = vmin.f32 %v825_v32, 128.0 }
 0x445   : > { %v1940_v35 = vsub.f32 %v826_v34, %v824_v33  ;;  %v1942_v37 = vmin.f32 %v826_v34, %v824_v33 }
 0x453   : > { %v837_v38 = vpop.xlane.xlu1 %836 }
 0x454   : > { %vm838_vm5 = vcmp.ge.f32.partialorder %v837_v38, %v1942_v37 }
 0x455   : > { %v839_v40 = vsel %vm838_vm5, 1069547519, %v1685_v39  ;;  %v840_v42 = vsel %vm838_vm5, 2139095040, %v1686_v41 }
 0x456   : > { %v841_v43 = vsub.s32 %v840_v42, %v839_v40 }
 0x458   : > { %v842_v44 = vshra.s32 %v841_v43, 1 }
 0x45a   : > { %v843_v45 = vadd.s32 %v842_v44, %v839_v40 }
 0x45c   : > { %vm844_vm6 = vcmp.gt.s32.totalorder %v1935_v27, %v843_v45 }
 0x45d   : > { %v1483_v46 = vsel %vm844_vm6, 1.0, %v1682_v9 }
 0x45e   : > { %v847_v48 = vsel %vm816_vm1, %v1483_v46, 0.0 }
 0x45f   : > { %848 = vadd.xlane.f32.xlu1 %v847_v48 }
 0x4e8   : > { %v849_v50 = vpop.xlane.xlu1 %848 }
 0x4e9   : > { %vm850_vm7 = vcmp.ge.f32.partialorder %v849_v50, %v1942_v37 }
 0x4ea   : > { %v851_v51 = vsel %vm850_vm7, %v843_v45, %v839_v40  ;;  %v852_v52 = vsel %vm850_vm7, %v840_v42, %v843_v45 }
 0x4eb   : > { %v853_v53 = vsub.s32 %v852_v52, %v851_v51 }
 0x4ed   : > { %v854_v54 = vshra.s32 %v853_v53, 1 }
 0x4ef   : > { %v855_v55 = vadd.s32 %v854_v54, %v851_v51 }
 0x4f1   : > { %vm856_vm8 = vcmp.gt.s32.totalorder %v1935_v27, %v855_v55 }
 0x4f2   : > { %v1484_v56 = vsel %vm856_vm8, 1.0, %v1682_v9 }
 0x4f3   : > { %v859_v57 = vsel %vm816_vm1, %v1484_v56, 0.0 }
 0x4f4   : > { %860 = vadd.xlane.f32.xlu1 %v859_v57 }
 0x57d   : > { %v861_v58 = vpop.xlane.xlu1 %860 }
 0x57e   : > { %vm862_vm9 = vcmp.ge.f32.partialorder %v861_v58, %v1942_v37 }
 0x57f   : > { %v863_v59 = vsel %vm862_vm9, %v855_v55, %v851_v51  ;;  %v864_v60 = vsel %vm862_vm9, %v852_v52, %v855_v55 }
 0x580   : > { %v865_v61 = vsub.s32 %v864_v60, %v863_v59 }
 0x582   : > { %v866_v62 = vshra.s32 %v865_v61, 1 }
 0x584   : > { %v867_v63 = vadd.s32 %v866_v62, %v863_v59 }
 0x586   : > { %vm868_vm10 = vcmp.gt.s32.totalorder %v1935_v27, %v867_v63 }
 0x587   : > { %v1485_v0 = vsel %vm868_vm10, 1.0, %v1682_v9 }
 0x588   : > { %v871_v5 = vsel %vm816_vm1, %v1485_v0, 0.0 }
 0x589   : > { %872 = vadd.xlane.f32.xlu1 %v871_v5 }
 0x612   : > { %v873_v6 = vpop.xlane.xlu1 %872 }
 0x613   : > { %vm874_vm11 = vcmp.ge.f32.partialorder %v873_v6, %v1942_v37 }
 0x614   : > { %v875_v7 = vsel %vm874_vm11, %v867_v63, %v863_v59  ;;  %v876_v8 = vsel %vm874_vm11, %v864_v60, %v867_v63 }
 0x615   : > { %v877_v10 = vsub.s32 %v876_v8, %v875_v7 }
 0x617   : > { %v878_v11 = vshra.s32 %v877_v10, 1 }
 0x619   : > { %v879_v14 = vadd.s32 %v878_v11, %v875_v7 }
 0x61b   : > { %vm880_vm13 = vcmp.gt.s32.totalorder %v1935_v27, %v879_v14 }
 0x61c   : > { %v1486_v15 = vsel %vm880_vm13, 1.0, %v1682_v9 }
 0x61d   : > { %v883_v30 = vsel %vm816_vm1, %v1486_v15, 0.0 }
 0x61e   : > { %884 = vadd.xlane.f32.xlu1 %v883_v30 }
 0x6a7   : > { %v885_v17 = vpop.xlane.xlu1 %884 }
 0x6a8   : > { %vm886_vm14 = vcmp.ge.f32.partialorder %v885_v17, %v1942_v37 }
 0x6a9   : > { %v887_v18 = vsel %vm886_vm14, %v879_v14, %v875_v7  ;;  %v888_v19 = vsel %vm886_vm14, %v876_v8, %v879_v14 }
 0x6aa   : > { %v889_v20 = vsub.s32 %v888_v19, %v887_v18 }
 0x6ac   : > { %v890_v21 = vshra.s32 %v889_v20, 1 }
 0x6ae   : > { %v891_v22 = vadd.s32 %v890_v21, %v887_v18 }
 0x6b0   : > { %vm892_vm15 = vcmp.gt.s32.totalorder %v1935_v27, %v891_v22 }
 0x6b1   : > { %v1487_v23 = vsel %vm892_vm15, 1.0, %v1682_v9 }
 0x6b2   : > { %v895_v24 = vsel %vm816_vm1, %v1487_v23, 0.0 }
 0x6b3   : > { %896 = vadd.xlane.f32.xlu1 %v895_v24 }
 0x73c   : > { %v897_v1 = vpop.xlane.xlu1 %896 }
 0x73d   : > { %vm898_vm0 = vcmp.ge.f32.partialorder %v897_v1, %v1942_v37 }
 0x73e   : > { %v899_v25 = vsel %vm898_vm0, %v891_v22, %v887_v18  ;;  %v900_v28 = vsel %vm898_vm0, %v888_v19, %v891_v22 }
 0x73f   : > { %v901_v29 = vsub.s32 %v900_v28, %v899_v25 }
 0x741   : > { %v902_v31 = vshra.s32 %v901_v29, 1 }
 0x743   : > { %v903_v32 = vadd.s32 %v902_v31, %v899_v25 }
 0x745   : > { %vm904_vm3 = vcmp.gt.s32.totalorder %v1935_v27, %v903_v32 }
 0x746   : > { %v1488_v33 = vsel %vm904_vm3, 1.0, %v1682_v9 }
 0x747   : > { %v907_v34 = vsel %vm816_vm1, %v1488_v33, 0.0 }
 0x748   : > { %908 = vadd.xlane.f32.xlu0 %v907_v34 }
 0x7d1   : > { %v909_v38 = vpop.xlane.xlu0 %908 }
 0x7d2   : > { %vm910_vm4 = vcmp.ge.f32.partialorder %v909_v38, %v1942_v37 }
 0x7d3   : > { %v911_v39 = vsel %vm910_vm4, %v903_v32, %v899_v25  ;;  %v912_v40 = vsel %vm910_vm4, %v900_v28, %v903_v32 }
 0x7d4   : > { %v913_v41 = vsub.s32 %v912_v40, %v911_v39 }
 0x7d6   : > { %v914_v42 = vshra.s32 %v913_v41, 1 }
 0x7d8   : > { %v915_v43 = vadd.s32 %v914_v42, %v911_v39 }
 0x7da   : > { %vm916_vm5 = vcmp.gt.s32.totalorder %v1935_v27, %v915_v43 }
 0x7db   : > { %v1489_v44 = vsel %vm916_vm5, 1.0, %v1682_v9 }
 0x7dc   : > { %v919_v45 = vsel %vm816_vm1, %v1489_v44, 0.0 }
 0x7dd   : > { %920 = vadd.xlane.f32.xlu1 %v919_v45 }
 0x866   : > { %v921_v46 = vpop.xlane.xlu1 %920 }
 0x867   : > { %vm922_vm6 = vcmp.ge.f32.partialorder %v921_v46, %v1942_v37 }
 0x868   : > { %v923_v48 = vsel %vm922_vm6, %v915_v43, %v911_v39  ;;  %v924_v50 = vsel %vm922_vm6, %v912_v40, %v915_v43 }
 0x869   : > { %v925_v51 = vsub.s32 %v924_v50, %v923_v48 }
 0x86b   : > { %v926_v52 = vshra.s32 %v925_v51, 1 }
 0x86d   : > { %v927_v53 = vadd.s32 %v926_v52, %v923_v48 }
 0x86f   : > { %vm928_vm7 = vcmp.gt.s32.totalorder %v1935_v27, %v927_v53 }
 0x870   : > { %v1490_v54 = vsel %vm928_vm7, 1.0, %v1682_v9 }
 0x871   : > { %v931_v55 = vsel %vm816_vm1, %v1490_v54, 0.0 }
 0x872   : > { %932 = vadd.xlane.f32.xlu1 %v931_v55 }
 0x8fb   : > { %v933_v56 = vpop.xlane.xlu1 %932 }
 0x8fc   : > { %vm934_vm8 = vcmp.ge.f32.partialorder %v933_v56, %v1942_v37 }
 0x8fd   : > { %v935_v57 = vsel %vm934_vm8, %v927_v53, %v923_v48  ;;  %v936_v58 = vsel %vm934_vm8, %v924_v50, %v927_v53 }
 0x8fe   : > { %v937_v59 = vsub.s32 %v936_v58, %v935_v57 }
 0x900   : > { %v938_v60 = vshra.s32 %v937_v59, 1 }
 0x902   : > { %v939_v61 = vadd.s32 %v938_v60, %v935_v57 }
 0x904   : > { %vm940_vm9 = vcmp.gt.s32.totalorder %v1935_v27, %v939_v61 }
 0x905   : > { %v1491_v62 = vsel %vm940_vm9, 1.0, %v1682_v9 }
 0x906   : > { %v943_v63 = vsel %vm816_vm1, %v1491_v62, 0.0 }
 0x907   : > { %944 = vadd.xlane.f32.xlu1 %v943_v63 }
 0x990   : > { %v945_v0 = vpop.xlane.xlu1 %944 }
 0x991   : > { %vm946_vm10 = vcmp.ge.f32.partialorder %v945_v0, %v1942_v37 }
 0x992   : > { %v947_v5 = vsel %vm946_vm10, %v939_v61, %v935_v57  ;;  %v948_v6 = vsel %vm946_vm10, %v936_v58, %v939_v61 }
 0x993   : > { %v949_v7 = vsub.s32 %v948_v6, %v947_v5 }
 0x995   : > { %v950_v8 = vshra.s32 %v949_v7, 1 }
 0x997   : > { %v951_v10 = vadd.s32 %v950_v8, %v947_v5 }
 0x999   : > { %vm952_vm11 = vcmp.gt.s32.totalorder %v1935_v27, %v951_v10 }
 0x99a   : > { %v1492_v11 = vsel %vm952_vm11, 1.0, %v1682_v9 }
 0x99b   : > { %v955_v14 = vsel %vm816_vm1, %v1492_v11, 0.0 }
 0x99c   : > { %956 = vadd.xlane.f32.xlu1 %v955_v14 }
 0xa25   : > { %v957_v15 = vpop.xlane.xlu1 %956 }
 0xa26   : > { %vm958_vm13 = vcmp.ge.f32.partialorder %v957_v15, %v1942_v37 }
 0xa27   : > { %v959_v30 = vsel %vm958_vm13, %v951_v10, %v947_v5  ;;  %v960_v17 = vsel %vm958_vm13, %v948_v6, %v951_v10 }
 0xa28   : > { %v961_v18 = vsub.s32 %v960_v17, %v959_v30 }
 0xa2a   : > { %v962_v19 = vshra.s32 %v961_v18, 1 }
 0xa2c   : > { %v963_v20 = vadd.s32 %v962_v19, %v959_v30 }
 0xa2e   : > { %vm964_vm14 = vcmp.gt.s32.totalorder %v1935_v27, %v963_v20 }
 0xa2f   : > { %v1493_v21 = vsel %vm964_vm14, 1.0, %v1682_v9 }
 0xa30   : > { %v967_v22 = vsel %vm816_vm1, %v1493_v21, 0.0 }
 0xa31   : > { %968 = vadd.xlane.f32.xlu1 %v967_v22 }
 0xaba   : > { %v969_v23 = vpop.xlane.xlu1 %968 }
 0xabb   : > { %vm970_vm15 = vcmp.ge.f32.partialorder %v969_v23, %v1942_v37 }
 0xabc   : > { %v971_v24 = vsel %vm970_vm15, %v963_v20, %v959_v30  ;;  %v972_v1 = vsel %vm970_vm15, %v960_v17, %v963_v20 }
 0xabd   : > { %v973_v25 = vsub.s32 %v972_v1, %v971_v24 }
 0xabf   : > { %v974_v28 = vshra.s32 %v973_v25, 1 }
 0xac1   : > { %v975_v29 = vadd.s32 %v974_v28, %v971_v24 }
 0xac3   : > { %vm976_vm0 = vcmp.gt.s32.totalorder %v1935_v27, %v975_v29 }
 0xac4   : > { %v1494_v31 = vsel %vm976_vm0, 1.0, %v1682_v9 }
 0xac5   : > { %v979_v32 = vsel %vm816_vm1, %v1494_v31, 0.0 }
 0xac6   : > { %980 = vadd.xlane.f32.xlu1 %v979_v32 }
 0xb4f   : > { %v981_v33 = vpop.xlane.xlu1 %980 }
 0xb50   : > { %vm982_vm3 = vcmp.ge.f32.partialorder %v981_v33, %v1942_v37 }
 0xb51   : > { %v983_v34 = vsel %vm982_vm3, %v975_v29, %v971_v24  ;;  %v984_v38 = vsel %vm982_vm3, %v972_v1, %v975_v29 }
 0xb52   : > { %v985_v39 = vsub.s32 %v984_v38, %v983_v34 }
 0xb54   : > { %v986_v40 = vshra.s32 %v985_v39, 1 }
 0xb56   : > { %v987_v41 = vadd.s32 %v986_v40, %v983_v34 }
 0xb58   : > { %vm988_vm4 = vcmp.gt.s32.totalorder %v1935_v27, %v987_v41 }
 0xb59   : > { %v1495_v42 = vsel %vm988_vm4, 1.0, %v1682_v9 }
 0xb5a   : > { %v991_v43 = vsel %vm816_vm1, %v1495_v42, 0.0 }
 0xb5b   : > { %992 = vadd.xlane.f32.xlu1 %v991_v43 }
 0xbe4   : > { %v993_v44 = vpop.xlane.xlu1 %992 }
 0xbe5   : > { %vm994_vm5 = vcmp.ge.f32.partialorder %v993_v44, %v1942_v37 }
 0xbe6   : > { %v995_v45 = vsel %vm994_vm5, %v987_v41, %v983_v34  ;;  %v996_v46 = vsel %vm994_vm5, %v984_v38, %v987_v41 }
 0xbe7   : > { %v997_v48 = vsub.s32 %v996_v46, %v995_v45 }
 0xbe9   : > { %v998_v50 = vshra.s32 %v997_v48, 1 }
 0xbeb   : > { %v999_v51 = vadd.s32 %v998_v50, %v995_v45 }
 0xbed   : > { %vm1000_vm6 = vcmp.gt.s32.totalorder %v1935_v27, %v999_v51 }
 0xbee   : > { %v1496_v52 = vsel %vm1000_vm6, 1.0, %v1682_v9 }
 0xbef   : > { %v1003_v53 = vsel %vm816_vm1, %v1496_v52, 0.0 }
 0xbf0   : > { %1004 = vadd.xlane.f32.xlu1 %v1003_v53 }
 0xc79   : > { %v1005_v54 = vpop.xlane.xlu1 %1004 }
 0xc7a   : > { %vm1006_vm7 = vcmp.ge.f32.partialorder %v1005_v54, %v1942_v37 }
 0xc7b   : > { %v1007_v55 = vsel %vm1006_vm7, %v999_v51, %v995_v45  ;;  %v1008_v56 = vsel %vm1006_vm7, %v996_v46, %v999_v51 }
 0xc7c   : > { %v1009_v57 = vsub.s32 %v1008_v56, %v1007_v55 }
 0xc7e   : > { %v1010_v58 = vshra.s32 %v1009_v57, 1 }
 0xc80   : > { %v1011_v59 = vadd.s32 %v1010_v58, %v1007_v55 }
 0xc82   : > { %vm1012_vm8 = vcmp.gt.s32.totalorder %v1935_v27, %v1011_v59 }
 0xc83   : > { %v1497_v60 = vsel %vm1012_vm8, 1.0, %v1682_v9  ;;  %vm1219_vm8 = vcmp.lt.f32.partialorder %v1871_v4, 64.0 }
 0xc84   : > { %v1015_v61 = vsel %vm816_vm1, %v1497_v60, 0.0  ;;  %v1220_v60 = vsel %vm1219_vm8, %v1925_v16, 0.0 }
 0xc85   : > { %1016 = vadd.xlane.f32.xlu1 %v1015_v61  ;;  %v1221_v61 = vsel %vm816_vm1, %v1220_v60, 0.0 }
 0xd0e   : > { %v1017_v62 = vpop.xlane.xlu1 %1016 }
 0xd0f   : > { %vm1018_vm9 = vcmp.ge.f32.partialorder %v1017_v62, %v1942_v37 }
 0xd10   : > { %v1019_v63 = vsel %vm1018_vm9, %v1011_v59, %v1007_v55  ;;  %v1020_v0 = vsel %vm1018_vm9, %v1008_v56, %v1011_v59 }
 0xd11   : > { %v1021_v5 = vsub.s32 %v1020_v0, %v1019_v63 }
 0xd13   : > { %v1022_v6 = vshra.s32 %v1021_v5, 1  ;;  %v2033_v5 = vmax.f32 %v1940_v35, 0.0 }
 0xd15   : > { %v1023_v7 = vadd.s32 %v1022_v6, %v1019_v63 }
 0xd17   : > { %vm1024_vm10 = vcmp.gt.s32.totalorder %v1935_v27, %v1023_v7 }
 0xd18   : > { %v1498_v8 = vsel %vm1024_vm10, 1.0, %v1682_v9 }
 0xd19   : > { %v1027_v10 = vsel %vm816_vm1, %v1498_v8, 0.0 }
 0xd1a   : > { %1028 = vadd.xlane.f32.xlu1 %v1027_v10  ;;  %v1687_v10 = vmov 65.0  }
 0xda3   : > { %v1029_v11 = vpop.xlane.xlu1 %1028 }
 0xda4   : > { %vm1030_vm11 = vcmp.ge.f32.partialorder %v1029_v11, %v1942_v37 }
 0xda5   : > { %v1031_v14 = vsel %vm1030_vm11, %v1023_v7, %v1019_v63  ;;  %v1032_v15 = vsel %vm1030_vm11, %v1020_v0, %v1023_v7 }
 0xda6   : > { %v1033_v30 = vsub.s32 %v1032_v15, %v1031_v14 }
 0xda8   : > { %v1034_v17 = vshra.s32 %v1033_v30, 1 }
 0xdaa   : > { %v1035_v18 = vadd.s32 %v1034_v17, %v1031_v14 }
 0xdac   : > { %vm1036_vm13 = vcmp.gt.s32.totalorder %v1935_v27, %v1035_v18 }
 0xdad   : > { %v1499_v19 = vsel %vm1036_vm13, 1.0, %v1682_v9 }
 0xdae   : > { %v1039_v20 = vsel %vm816_vm1, %v1499_v19, 0.0 }
 0xdaf   : > { %1040 = vadd.xlane.f32.xlu1 %v1039_v20 }
 0xe38   : > { %v1041_v21 = vpop.xlane.xlu1 %1040 }
 0xe39   : > { %vm1042_vm14 = vcmp.ge.f32.partialorder %v1041_v21, %v1942_v37 }
 0xe3a   : > { %v1043_v22 = vsel %vm1042_vm14, %v1035_v18, %v1031_v14  ;;  %v1044_v23 = vsel %vm1042_vm14, %v1032_v15, %v1035_v18  ;;  %v1688_v14 = vmov 128.0  }
 0xe3b   : > { %v1045_v24 = vsub.s32 %v1044_v23, %v1043_v22 }
 0xe3d   : > { %v1046_v1 = vshra.s32 %v1045_v24, 1 }
 0xe3f   : > { %v1047_v25 = vadd.s32 %v1046_v1, %v1043_v22 }
 0xe41   : > { %vm1048_vm15 = vcmp.gt.s32.totalorder %v1935_v27, %v1047_v25 }
 0xe42   : > { %v1500_v28 = vsel %vm1048_vm15, 1.0, %v1682_v9 }
 0xe43   : > { %v1051_v29 = vsel %vm816_vm1, %v1500_v28, 0.0 }
 0xe44   : > { %1052 = vadd.xlane.f32.xlu1 %v1051_v29 }
 0xecd   : > { %v1053_v31 = vpop.xlane.xlu1 %1052 }
 0xece   : > { %vm1054_vm0 = vcmp.ge.f32.partialorder %v1053_v31, %v1942_v37 }
 0xecf   : > { %v1055_v32 = vsel %vm1054_vm0, %v1047_v25, %v1043_v22  ;;  %v1056_v33 = vsel %vm1054_vm0, %v1044_v23, %v1047_v25 }
 0xed0   : > { %v1057_v34 = vsub.s32 %v1056_v33, %v1055_v32 }
 0xed2   : > { %v1058_v38 = vshra.s32 %v1057_v34, 1 }
 0xed4   : > { %v1059_v39 = vadd.s32 %v1058_v38, %v1055_v32 }
 0xed6   : > { %vm1060_vm3 = vcmp.gt.s32.totalorder %v1935_v27, %v1059_v39 }
 0xed7   : > { %v1501_v40 = vsel %vm1060_vm3, 1.0, %v1682_v9 }
 0xed8   : > { %v1063_v41 = vsel %vm816_vm1, %v1501_v40, 0.0 }
 0xed9   : > { %1064 = vadd.xlane.f32.xlu0 %v1063_v41 }
 0xf62   : > { %v1065_v42 = vpop.xlane.xlu0 %1064 }
 0xf63   : > { %vm1066_vm4 = vcmp.ge.f32.partialorder %v1065_v42, %v1942_v37 }
 0xf64   : > { %v1067_v43 = vsel %vm1066_vm4, %v1059_v39, %v1055_v32  ;;  %v1068_v44 = vsel %vm1066_vm4, %v1056_v33, %v1059_v39 }
 0xf65   : > { %v1069_v45 = vsub.s32 %v1068_v44, %v1067_v43 }
 0xf67   : > { %v1070_v46 = vshra.s32 %v1069_v45, 1 }
 0xf69   : > { %v1071_v48 = vadd.s32 %v1070_v46, %v1067_v43 }
 0xf6b   : > { %vm1072_vm5 = vcmp.gt.s32.totalorder %v1935_v27, %v1071_v48 }
 0xf6c   : > { %v1502_v50 = vsel %vm1072_vm5, 1.0, %v1682_v9 }
 0xf6d   : > { %v1075_v51 = vsel %vm816_vm1, %v1502_v50, 0.0 }
 0xf6e   : > { %1076 = vadd.xlane.f32.xlu1 %v1075_v51 }
 0xff7   : > { %v1077_v52 = vpop.xlane.xlu1 %1076 }
 0xff8   : > { %vm1078_vm6 = vcmp.ge.f32.partialorder %v1077_v52, %v1942_v37 }
 0xff9   : > { %v1079_v53 = vsel %vm1078_vm6, %v1071_v48, %v1067_v43  ;;  %v1080_v54 = vsel %vm1078_vm6, %v1068_v44, %v1071_v48 }
 0xffa   : > { %v1081_v55 = vsub.s32 %v1080_v54, %v1079_v53 }
 0xffc   : > { %v1082_v56 = vshra.s32 %v1081_v55, 1 }
 0xffe   : > { %v1083_v57 = vadd.s32 %v1082_v56, %v1079_v53 }
0x1000   : > { %vm1084_vm7 = vcmp.gt.s32.totalorder %v1935_v27, %v1083_v57 }
0x1001   : > { %v1503_v58 = vsel %vm1084_vm7, 1.0, %v1682_v9 }
0x1002   : > { %v1087_v59 = vsel %vm816_vm1, %v1503_v58, 0.0 }
0x1003   : > { %1088 = vadd.xlane.f32.xlu0 %v1087_v59 }
0x1007   : > { %1222 = vadd.xlane.f32.xlu0 %v1221_v61 }
0x108c   : > { %v1089_v62 = vpop.xlane.xlu0 %1088 }
0x108d   : > { %vm1090_vm9 = vcmp.ge.f32.partialorder %v1089_v62, %v1942_v37 }
0x108e   : > { %v1091_v63 = vsel %vm1090_vm9, %v1083_v57, %v1079_v53  ;;  %v1092_v0 = vsel %vm1090_vm9, %v1080_v54, %v1083_v57 }
0x108f   : > { %v1093_v6 = vsub.s32 %v1092_v0, %v1091_v63 }
0x1090   : > { %v1223_v7 = vpop.xlane.xlu0 %1222 }
0x1091   : > { %v1094_v8 = vshra.s32 %v1093_v6, 1  ;;  %vm1224_vm10 = vcmp.ge.f32.partialorder %v1223_v7, %v2033_v5 }
0x1092   : > { %v1225_v11 = vsel %vm1224_vm10, 0.0, %v1687_v10  ;;  %v1226_v15 = vsel %vm1224_vm10, 64.0, %v1688_v14 }
0x1093   : > { %v1095_v30 = vadd.s32 %v1094_v8, %v1091_v63  ;;  %v1227_v17 = vadd.f32 %v1226_v15, %v1225_v11 }
0x1095   : > { %v1228_v18 = vmul.f32 0.5, %v1227_v17  ;;  %vm1096_vm11 = vcmp.gt.s32.totalorder %v1935_v27, %v1095_v30 }
0x1096   : > { %v1504_v19 = vsel %vm1096_vm11, 1.0, %v1682_v9 }
0x1097   : > { %v1229_v20 = vfloor.f32 %v1228_v18  ;;  %v1099_v35 = vsel %vm816_vm1, %v1504_v19, 0.0 }
0x1098   : > { %1100 = vadd.xlane.f32.xlu1 %v1099_v35 }
0x1099   : > { %vm1230_vm13 = vcmp.lt.f32.partialorder %v1871_v4, %v1229_v20  ;;  %v1236_v28 = vadd.f32 1.0, %v1229_v20 }
0x109a   : > { %v1231_v21 = vsel %vm1230_vm13, %v1925_v16, 0.0 }
0x109b   : > { %v1232_v22 = vsel %vm816_vm1, %v1231_v21, 0.0 }
0x109c   : > { %1233 = vadd.xlane.f32.xlu0 %v1232_v22 }
0x1121   : > { %v1101_v23 = vpop.xlane.xlu1 %1100 }
0x1122   : > { %vm1102_vm14 = vcmp.ge.f32.partialorder %v1101_v23, %v1942_v37 }
0x1123   : > { %v1103_v24 = vsel %vm1102_vm14, %v1095_v30, %v1091_v63  ;;  %v1104_v1 = vsel %vm1102_vm14, %v1092_v0, %v1095_v30 }
0x1124   : > { %v1105_v25 = vsub.s32 %v1104_v1, %v1103_v24 }
0x1125   : > { %v1234_v29 = vpop.xlane.xlu0 %1233 }
0x1126   : > { %v1106_v31 = vshra.s32 %v1105_v25, 1  ;;  %vm1235_vm15 = vcmp.ge.f32.partialorder %v1234_v29, %v2033_v5 }
0x1127   : > { %v1237_v32 = vsel %vm1235_vm15, %v1225_v11, %v1236_v28  ;;  %v1238_v33 = vsel %vm1235_vm15, %v1229_v20, %v1226_v15 }
0x1128   : > { %v1107_v34 = vadd.s32 %v1106_v31, %v1103_v24  ;;  %v1239_v38 = vadd.f32 %v1238_v33, %v1237_v32 }
0x112a   : > { %v1240_v39 = vmul.f32 0.5, %v1239_v38  ;;  %vm1108_vm0 = vcmp.gt.s32.totalorder %v1935_v27, %v1107_v34 }
0x112b   : > { %v1505_v40 = vsel %vm1108_vm0, 1.0, %v1682_v9 }
0x112c   : > { %v1241_v41 = vfloor.f32 %v1240_v39  ;;  %v1111_v42 = vsel %vm816_vm1, %v1505_v40, 0.0 }
0x112d   : > { %1112 = vadd.xlane.f32.xlu1 %v1111_v42 }
0x112e   : > { %vm1242_vm3 = vcmp.lt.f32.partialorder %v1871_v4, %v1241_v41  ;;  %v1248_v51 = vadd.f32 1.0, %v1241_v41 }
0x112f   : > { %v1243_v43 = vsel %vm1242_vm3, %v1925_v16, 0.0 }
0x1130   : > { %v1244_v44 = vsel %vm816_vm1, %v1243_v43, 0.0 }
0x1131   : > { %1245 = vadd.xlane.f32.xlu0 %v1244_v44 }
0x11b6   : > { %v1113_v45 = vpop.xlane.xlu1 %1112 }
0x11b7   : > { %vm1114_vm4 = vcmp.ge.f32.partialorder %v1113_v45, %v1942_v37 }
0x11b8   : > { %v1115_v46 = vsel %vm1114_vm4, %v1107_v34, %v1103_v24  ;;  %v1116_v48 = vsel %vm1114_vm4, %v1104_v1, %v1107_v34 }
0x11b9   : > { %v1117_v50 = vsub.s32 %v1116_v48, %v1115_v46 }
0x11ba   : > { %v1246_v52 = vpop.xlane.xlu0 %1245 }
0x11bb   : > { %v1118_v53 = vshra.s32 %v1117_v50, 1  ;;  %vm1247_vm5 = vcmp.ge.f32.partialorder %v1246_v52, %v2033_v5 }
0x11bc   : > { %v1249_v54 = vsel %vm1247_vm5, %v1237_v32, %v1248_v51  ;;  %v1250_v55 = vsel %vm1247_vm5, %v1241_v41, %v1238_v33 }
0x11bd   : > { %v1119_v56 = vadd.s32 %v1118_v53, %v1115_v46  ;;  %v1251_v57 = vadd.f32 %v1250_v55, %v1249_v54 }
0x11bf   : > { %v1252_v58 = vmul.f32 0.5, %v1251_v57  ;;  %vm1120_vm6 = vcmp.gt.s32.totalorder %v1935_v27, %v1119_v56 }
0x11c0   : > { %v1506_v59 = vsel %vm1120_vm6, 1.0, %v1682_v9 }
0x11c1   : > { %v1253_v60 = vfloor.f32 %v1252_v58  ;;  %v1123_v61 = vsel %vm816_vm1, %v1506_v59, 0.0 }
0x11c2   : > { %1124 = vadd.xlane.f32.xlu1 %v1123_v61 }
0x11c3   : > { %vm1254_vm7 = vcmp.lt.f32.partialorder %v1871_v4, %v1253_v60  ;;  %v1260_v10 = vadd.f32 1.0, %v1253_v60 }
0x11c4   : > { %v1255_v62 = vsel %vm1254_vm7, %v1925_v16, 0.0 }
0x11c5   : > { %v1256_v63 = vsel %vm816_vm1, %v1255_v62, 0.0 }
0x11c6   : > { %1257 = vadd.xlane.f32.xlu0 %v1256_v63 }
0x124b   : > { %v1125_v0 = vpop.xlane.xlu1 %1124 }
0x124c   : > { %vm1126_vm8 = vcmp.ge.f32.partialorder %v1125_v0, %v1942_v37 }
0x124d   : > { %v1127_v6 = vsel %vm1126_vm8, %v1119_v56, %v1115_v46  ;;  %v1128_v7 = vsel %vm1126_vm8, %v1116_v48, %v1119_v56 }
0x124e   : > { %v1129_v8 = vsub.s32 %v1128_v7, %v1127_v6 }
0x124f   : > { %v1258_v11 = vpop.xlane.xlu0 %1257 }
0x1250   : > { %v1130_v14 = vshra.s32 %v1129_v8, 1  ;;  %vm1259_vm9 = vcmp.ge.f32.partialorder %v1258_v11, %v2033_v5 }
0x1251   : > { %v1261_v15 = vsel %vm1259_vm9, %v1249_v54, %v1260_v10  ;;  %v1262_v30 = vsel %vm1259_vm9, %v1253_v60, %v1250_v55 }
0x1252   : > { %v1131_v17 = vadd.s32 %v1130_v14, %v1127_v6  ;;  %v1263_v18 = vadd.f32 %v1262_v30, %v1261_v15 }
0x1254   : > { %v1264_v19 = vmul.f32 0.5, %v1263_v18  ;;  %vm1132_vm10 = vcmp.gt.s32.totalorder %v1935_v27, %v1131_v17 }
0x1255   : > { %v1507_v20 = vsel %vm1132_vm10, 1.0, %v1682_v9 }
0x1256   : > { %v1265_v35 = vfloor.f32 %v1264_v19  ;;  %v1135_v21 = vsel %vm816_vm1, %v1507_v20, 0.0 }
0x1257   : > { %1136 = vadd.xlane.f32.xlu1 %v1135_v21 }
0x1258   : > { %vm1266_vm11 = vcmp.lt.f32.partialorder %v1871_v4, %v1265_v35  ;;  %v1272_v29 = vadd.f32 1.0, %v1265_v35 }
0x1259   : > { %v1267_v22 = vsel %vm1266_vm11, %v1925_v16, 0.0 }
0x125a   : > { %v1268_v23 = vsel %vm816_vm1, %v1267_v22, 0.0 }
0x125b   : > { %1269 = vadd.xlane.f32.xlu0 %v1268_v23 }
0x12e0   : > { %v1137_v24 = vpop.xlane.xlu1 %1136 }
0x12e1   : > { %vm1138_vm13 = vcmp.ge.f32.partialorder %v1137_v24, %v1942_v37 }
0x12e2   : > { %v1139_v1 = vsel %vm1138_vm13, %v1131_v17, %v1127_v6  ;;  %v1140_v25 = vsel %vm1138_vm13, %v1128_v7, %v1131_v17 }
0x12e3   : > { %v1141_v28 = vsub.s32 %v1140_v25, %v1139_v1 }
0x12e4   : > { %v1270_v31 = vpop.xlane.xlu0 %1269 }
0x12e5   : > { %v1142_v32 = vshra.s32 %v1141_v28, 1  ;;  %vm1271_vm14 = vcmp.ge.f32.partialorder %v1270_v31, %v2033_v5 }
0x12e6   : > { %v1273_v33 = vsel %vm1271_vm14, %v1261_v15, %v1272_v29  ;;  %v1274_v34 = vsel %vm1271_vm14, %v1265_v35, %v1262_v30 }
0x12e7   : > { %v1143_v38 = vadd.s32 %v1142_v32, %v1139_v1  ;;  %v1275_v39 = vadd.f32 %v1274_v34, %v1273_v33 }
0x12e9   : > { %v1276_v40 = vmul.f32 0.5, %v1275_v39  ;;  %vm1144_vm15 = vcmp.gt.s32.totalorder %v1935_v27, %v1143_v38  ;;  %v360_v39 = vld [vmem:[%s1794_s23 + $0x8] sm:$0xff] }
0x12ea   : > { %v1508_v41 = vsel %vm1144_vm15, 1.0, %v1682_v9 }
0x12eb   : > { %v1277_v42 = vfloor.f32 %v1276_v40  ;;  %v1147_v43 = vsel %vm816_vm1, %v1508_v41, 0.0  ;;  %v361_v40 = vld [vmem:[%s1794_s23 + $0x10] sm:$0xff]  ;;  %v362_v41 = vld [vmem:[%s1794_s23 + $0x18] sm:$0xff] }
0x12ec   : > { %1148 = vadd.xlane.f32.xlu1 %v1147_v43  ;;  %v364_v43 = vld [vmem:[%s1794_s23 + $0x28] sm:$0xff] }
0x12ed   : > { %vm1278_vm0 = vcmp.lt.f32.partialorder %v1871_v4, %v1277_v42  ;;  %v1284_v52 = vadd.f32 1.0, %v1277_v42 }
0x12ee   : > { %v1279_v44 = vsel %vm1278_vm0, %v1925_v16, 0.0 }
0x12ef   : > { %v1280_v45 = vsel %vm816_vm1, %v1279_v44, 0.0  ;;  %v365_v44 = vld [vmem:[%s1794_s23 + $0x30] sm:$0xff] }
0x12f0   : > { %1281 = vadd.xlane.f32.xlu0 %v1280_v45  ;;  %v366_v45 = vld [vmem:[%s1794_s23 + $0x38] sm:$0xff] }
0x1375   : > { %v1149_v46 = vpop.xlane.xlu1 %1148 }
0x1376   : > { %vm1150_vm3 = vcmp.ge.f32.partialorder %v1149_v46, %v1942_v37  ;;  %v367_v46 = vld [vmem:[%s1794_s23 + $0x40] sm:$0xff] }
0x1377   : > { %v1151_v48 = vsel %vm1150_vm3, %v1143_v38, %v1139_v1  ;;  %v1152_v50 = vsel %vm1150_vm3, %v1140_v25, %v1143_v38  ;;  %v359_v38 = vld [vmem:[%s1794_s23] sm:$0xff] }
0x1378   : > { %v1153_v51 = vsub.s32 %v1152_v50, %v1151_v48 }
0x1379   : > { %v1282_v53 = vpop.xlane.xlu0 %1281 }
0x137a   : > { %v1154_v54 = vshra.s32 %v1153_v51, 1  ;;  %vm1283_vm4 = vcmp.ge.f32.partialorder %v1282_v53, %v2033_v5  ;;  %v370_v51 = vld [vmem:[%s1794_s23 + $0x58] sm:$0xff]  ;;  %v372_v53 = vld [vmem:[%s1794_s23 + $0x68] sm:$0xff] }
0x137b   : > { %v1285_v55 = vsel %vm1283_vm4, %v1273_v33, %v1284_v52  ;;  %v1286_v56 = vsel %vm1283_vm4, %v1277_v42, %v1274_v34  ;;  %v363_v42 = vld [vmem:[%s1794_s23 + $0x20] sm:$0xff] }
0x137c   : > { %v1155_v57 = vadd.s32 %v1154_v54, %v1151_v48  ;;  %v1287_v58 = vadd.f32 %v1286_v56, %v1285_v55  ;;  %v371_v52 = vld [vmem:[%s1794_s23 + $0x60] sm:$0xff]  ;;  %v373_v54 = vld [vmem:[%s1794_s23 + $0x70] sm:$0xff] }
0x137e   : > { %v1288_v59 = vmul.f32 0.5, %v1287_v58  ;;  %vm1156_vm5 = vcmp.gt.s32.totalorder %v1935_v27, %v1155_v57 }
0x137f   : > { %v1509_v60 = vsel %vm1156_vm5, 1.0, %v1682_v9 }
0x1380   : > { %v1289_v61 = vfloor.f32 %v1288_v59  ;;  %v1159_v62 = vsel %vm816_vm1, %v1509_v60, 0.0 }
0x1381   : > { %1160 = vadd.xlane.f32.xlu1 %v1159_v62 }
0x1382   : > { %vm1290_vm6 = vcmp.lt.f32.partialorder %v1871_v4, %v1289_v61  ;;  %v1296_v11 = vadd.f32 1.0, %v1289_v61 }
0x1383   : > { %v1291_v63 = vsel %vm1290_vm6, %v1925_v16, 0.0 }
0x1384   : > { %v1292_v0 = vsel %vm816_vm1, %v1291_v63, 0.0 }
0x1385   : > { %1293 = vadd.xlane.f32.xlu0 %v1292_v0 }
0x140a   : > { %v1161_v6 = vpop.xlane.xlu1 %1160 }
0x140b   : > { %vm1162_vm7 = vcmp.ge.f32.partialorder %v1161_v6, %v1942_v37 }
0x140c   : > { %v1163_v7 = vsel %vm1162_vm7, %v1155_v57, %v1151_v48  ;;  %v1164_v8 = vsel %vm1162_vm7, %v1152_v50, %v1155_v57  ;;  %v368_v48 = vld [vmem:[%s1794_s23 + $0x48] sm:$0xff]  ;;  %v369_v50 = vld [vmem:[%s1794_s23 + $0x50] sm:$0xff] }
0x140d   : > { %v1165_v10 = vsub.s32 %v1164_v8, %v1163_v7 }
0x140e   : > { %v1294_v14 = vpop.xlane.xlu0 %1293 }
0x140f   : > { %v1166_v15 = vshra.s32 %v1165_v10, 1  ;;  %vm1295_vm8 = vcmp.ge.f32.partialorder %v1294_v14, %v2033_v5 }
0x1410   : > { %v1297_v30 = vsel %vm1295_vm8, %v1285_v55, %v1296_v11  ;;  %v1298_v17 = vsel %vm1295_vm8, %v1289_v61, %v1286_v56  ;;  %v374_v55 = vld [vmem:[%s1794_s23 + $0x78] sm:$0xff] }
0x1411   : > { %v1167_v18 = vadd.s32 %v1166_v15, %v1163_v7  ;;  %v1299_v19 = vadd.f32 %v1298_v17, %v1297_v30 }
0x1413   : > { %v1300_v20 = vmul.f32 0.5, %v1299_v19  ;;  %vm1168_vm9 = vcmp.gt.s32.totalorder %v1935_v27, %v1167_v18 }
0x1414   : > { %v1510_v35 = vsel %vm1168_vm9, 1.0, %v1682_v9 }
0x1415   : > { %v1301_v21 = vfloor.f32 %v1300_v20  ;;  %v1171_v22 = vsel %vm816_vm1, %v1510_v35, 0.0 }
0x1416   : > { %1172 = vadd.xlane.f32.xlu1 %v1171_v22  ;;  %v702_v22 = vmul.f32 0.5, %v1855_v47 }
0x1417   : > { %vm1302_vm10 = vcmp.lt.f32.partialorder %v1871_v4, %v1301_v21  ;;  %v1308_v57 = vadd.f32 1.0, %v1301_v21 }
0x1418   : > { %v1303_v23 = vsel %vm1302_vm10, %v1925_v16, 0.0 }
0x1419   : > { %v1304_v24 = vsel %vm816_vm1, %v1303_v23, 0.0 }
0x141a   : > { %1305 = vadd.xlane.f32.xlu0 %v1304_v24  ;;  %v708_v24 = vrot.slane %v1855_v47, 2 }
0x149f   : > { %v1173_v1 = vpop.xlane.xlu1 %1172 }
0x14a0   : > { %vm1174_vm11 = vcmp.ge.f32.partialorder %v1173_v1, %v1942_v37 }
0x14a1   : > { %v1175_v25 = vsel %vm1174_vm11, %v1167_v18, %v1163_v7  ;;  %v1176_v28 = vsel %vm1174_vm11, %v1164_v8, %v1167_v18 }
0x14a2   : > { %v1177_v29 = vsub.s32 %v1176_v28, %v1175_v25 }
0x14a3   : > { %v1306_v56 = vpop.xlane.xlu0 %1305 }
0x14a4   : > { %v1178_v31 = vshra.s32 %v1177_v29, 1  ;;  %vm1307_vm14 = vcmp.ge.f32.partialorder %v1306_v56, %v2033_v5 }
0x14a5   : > { %v1309_v58 = vsel %vm1307_vm14, %v1297_v30, %v1308_v57  ;;  %v2111_v59 = vsel %vm1307_vm14, %v1301_v21, %v1298_v17  ;;  %v820_v17 = vsel %vm813_vm2, %v1930_v26, 0.0  ;;  %vm1213_vm14 = vcmp.gt.f32.partialorder %v1942_v37, 0.5 }
0x14a6   : > { %v1179_v32 = vadd.s32 %v1178_v31, %v1175_v25  ;;  %v1311_v60 = vadd.f32 %v2111_v59, %v1309_v58  ;;  %v821_v18 = vsel %vm816_vm1, %v820_v17, 0.0 }
0x14a8   : > { %vm1180_vm13 = vcmp.gt.s32.totalorder %v1935_v27, %v1179_v32  ;;  %v2114_v62 = vmul.f32 0.5, %v1311_v60 }
0x14a9   : > { %v1511_v33 = vsel %vm1180_vm13, 1.0, %v1682_v9  ;;  %vm777_vm13 = vcmask 1040384  }
0x14aa   : > { %v1183_v34 = vsel %vm816_vm1, %v1511_v33, 0.0  ;;  %v1313_v8 = vfloor.f32 %v2114_v62  ;;  %v724_v33 = vmul.f32 0.5, %v1913_v12 }
0x14ab   : > { %1184 = vadd.xlane.f32.xlu1 %v1183_v34 }
0x14ac   : > { %vm1314_vm3 = vcmp.lt.f32.partialorder %v1871_v4, %v1313_v8 }
0x14ad   : > { %v1315_v15 = vsel %vm1314_vm3, %v1925_v16, 0.0  ;;  %v704_v16 = vrot.slane %v702_v22, 2  ;;  %vm1345_vm3 = vcmask 24576  }
0x14ae   : > { %v1316_v30 = vsel %vm816_vm1, %v1315_v15, 0.0 }
0x14de   : > { %375 = vxpose.xlu1.b32.start [1/16] (narrow) %v359_v38, 8  ;;  %v726_v38 = vrot.slane %v724_v33, 2 }
0x14e2   : > { %376 = vxpose.xlu1.b32.cont [2/16] (narrow) %v360_v39, 8 }
0x14e6   : > { %377 = vxpose.xlu1.b32.cont [3/16] (narrow) %v361_v40, 8 }
0x14ea   : > { %378 = vxpose.xlu1.b32.cont [4/16] (narrow) %v362_v41, 8 }
0x14ee   : > { %379 = vxpose.xlu1.b32.cont [5/16] (narrow) %v363_v42, 8  ;;  %v728_v42 = vsub.f32 %v1913_v12, %v726_v38 }
0x14f2   : > { %380 = vxpose.xlu1.b32.cont [6/16] (narrow) %v364_v43, 8  ;;  %v729_v43 = vadd.f32 %v726_v38, %v1913_v12 }
0x14f6   : > { %381 = vxpose.xlu1.b32.cont [7/16] (narrow) %v365_v44, 8 }
0x14fa   : > { %382 = vxpose.xlu1.b32.cont [8/16] (narrow) %v366_v45, 8 }
0x14fe   : > { %383 = vxpose.xlu1.b32.cont [9/16] (narrow) %v367_v46, 8 }
0x1502   : > { %384 = vxpose.xlu1.b32.cont [10/16] (narrow) %v368_v48, 8  ;;  %v750_v48 = vrot.slane %v1913_v12, 1 }
0x1506   : > { %385 = vxpose.xlu1.b32.cont [11/16] (narrow) %v369_v50, 8 }
0x150a   : > { %386 = vxpose.xlu1.b32.cont [12/16] (narrow) %v370_v51, 8 }
0x150e   : > { %387 = vxpose.xlu1.b32.cont [13/16] (narrow) %v371_v52, 8 }
0x1512   : > { %388 = vxpose.xlu1.b32.cont [14/16] (narrow) %v372_v53, 8 }
0x1516   : > { %389 = vxpose.xlu1.b32.cont [15/16] (narrow) %v373_v54, 8  ;;  %v752_v54 = vmul.f32 %v750_v48, %v1913_v12 }
0x1518   : > { %v754_v60 = vrot.slane %v752_v54, 2 }
0x151a   : > { %390 = vxpose.xlu1.b32.end [16/16] (narrow) %v374_v55, 8 }
0x1534   : > { %v1185_v61 = vpop.xlane.xlu1 %1184 }
0x1535   : > { %vm1186_vm15 = vcmp.ge.f32.partialorder %v1185_v61, %v1942_v37 }
0x1536   : > { %v1187_v63 = vsel %vm1186_vm15, %v1179_v32, %v1175_v25  ;;  %v2117_v0 = vsel %vm1186_vm15, %v1176_v28, %v1179_v32  ;;  %v706_v28 = vadd.f32 %v704_v16, %v1847_v36  ;;  %vm1328_vm15 = vcmp.eq.s32.totalorder %v1868_v3, 0 }
0x1537   : > { %v1189_v6 = vsub.s32 %v2117_v0, %v1187_v63 }
0x1539   : > { %v1190_v7 = vshra.s32 %v1189_v6, 1 }
0x153b   : > { %v2121_v10 = vadd.s32 %v1190_v7, %v1187_v63 }
0x153d   : > { %vm1192_vm0 = vcmp.gt.s32.totalorder %v1935_v27, %v2121_v10 }
0x153e   : > { %v1512_v11 = vsel %vm1192_vm0, 1.0, %v1682_v9  ;;  %vm1342_vm0 = vcmp.eq.s32.totalorder %v1868_v3, 3 }
0x153f   : > { %v1195_v14 = vsel %vm816_vm1, %v1512_v11, 0.0 }
0x1540   : > { %1196 = vadd.xlane.f32.xlu0 %v1195_v14 }
0x1544   : > { %1317 = vadd.xlane.f32.xlu0 %v1316_v30 }
0x1548   : > { %822 = vadd.xlane.f32.xlu0 %v821_v18 }
0x155a   : > { %v391_v19 = vpop.trf.xlu1 }
0x155b   : > { %v707_v20 = vmin.f32 %v391_v19, 4.1351666  ;;  %v710_v25 = vmul.f32 %v708_v24, %v391_v19 }
0x155d   : > { %v712_v35 = vmul.f32 1.442695, %v707_v20  ;;  %v711_v31 = vadd.f32 %v710_v25, %v706_v28 }
0x155f   : > { %1592 = vpow2.f32 %v712_v35 }
0x156c   : > { %v1593_v21 = vpop.eup %1592 }
0x156d   : > { %v714_v23 = vmul.f32 %v1593_v21, %v1855_v47 }
0x156f   : > { %v715_v1 = vmul.f32 0.5, %v714_v23 }
0x1571   : > { %v717_v29 = vrot.slane %v715_v1, 2 }
0x1573   : > { %v720_v32 = vadd.f32 %v717_v29, %v711_v31  ;;  %v719_v39 = vsub.f32 %v711_v31, %v717_v29 }
0x1575   : > { %v721_v34 = vmul.f32 0.5, %v720_v32  ;;  %v746_v51 = vrot.slane %v720_v32, 1 }
0x1577   : > { %v722_v40 = vsub.f32 %v719_v39, %v721_v34  ;;  %v723_v41 = vadd.f32 %v721_v34, %v719_v39  ;;  %v748_v57 = vmul.f32 %v746_v51, %v720_v32 }
0x1579   : > { %v730_v44 = vmax.f32 %v722_v40, %v728_v42  ;;  %v731_v47 = vmin.f32 %v723_v41, %v729_v43  ;;  %v761_v52 = vmin.f32 %v722_v40, %v728_v42  ;;  %v762_v53 = vmax.f32 %v723_v41, %v729_v43 }
0x157b   : > { %vm732_vm4 = vcmp.lt.f32.partialorder %v730_v44, %v731_v47  ;;  %v739_v46 = vsub.f32 %v731_v47, %v730_v44  ;;  %v763_v58 = vsub.f32 %v762_v53, %v761_v52 }
0x157c   : > { %v733_v45 = vsel %vm732_vm4, 1, %v1677_v2  ;;  %v756_v2 = vadd.f32 %v754_v60, %v748_v57 }
0x157d   : > { %v734_v36 = vrot.slane %v733_v45, 1  ;;  %v741_v50 = vrot.slane %v739_v46, 1  ;;  %v765_v63 = vrot.slane %v763_v58, 1 }
0x157f   : > { %vm735_vm5 = vcmp.ne.s32.totalorder %v734_v36, 0  ;;  %v743_v55 = vmul.f32 %v741_v50, %v739_v46  ;;  %v767_v7 = vmul.f32 %v765_v63, %v763_v58 }
0x1580   : > { %vm736_vm6 = vmand %vm732_vm4, %vm735_vm5 }
0x1581   : > { %v1479_v56 = vsel %vm736_vm6, 1.0, %v1682_v9  ;;  %v769_v14 = vmax.f32 %v767_v7, 1e-16 }
0x1582   : > { %v744_v61 = vmul.f32 %v1479_v56, %v743_v55 }
0x1584   : > { %v757_v6 = vsub.f32 %v756_v2, %v744_v61 }
0x1586   : > { %v758_v11 = vadd.f32 1e-16, %v757_v6  ;;  %v768_v18 = vsub.f32 %v767_v7, %v757_v6 }
0x1588   : > { %1594 = vrcp.f32 %v758_v11 }
0x1589   : > { %1596 = vrcp.f32 %v769_v14 }
0x1595   : > { %v1595_v15 = vpop.eup %1594 }
0x1596   : > { %v1597_v30 = vpop.eup %1596  ;;  %v760_v17 = vmul.f32 %v1595_v15, %v744_v61 }
0x1597   : > { %v771_v19 = vmul.f32 %v1597_v30, %v768_v18 }
0x1599   : > { %v772_v35 = vsub.f32 %v760_v17, %v771_v19 }
0x159b   : > { %v1480_v1 = vclamps-f32 %v772_v35, 1.0 }
0x15c9   : > { %v1197_v12 = vpop.xlane.xlu0 %1196 }
0x15ca   : > { %vm1198_vm7 = vcmp.ge.f32.partialorder %v1197_v12, %v1942_v37 }
0x15cb   : > { %v1199_v20 = vsel %vm1198_vm7, %v2117_v0, %v2121_v10  ;;  %v775_v0 = vsub.f32 1.0, %v1480_v1 }
0x15cc   : > { %vm1201_vm8 = vcmp.gt.s32.totalorder %v1935_v27, %v1199_v20 }
0x15cd   : > { %v1318_v21 = vpop.xlane.xlu0 %1317  ;;  %v1513_v22 = vsel %vm1201_vm8, 1.0, %v1682_v9  ;;  %v1209_v24 = vsel %vm1201_vm8, %v1930_v26, 0.0 }
0x15ce   : > { %vm1319_vm9 = vcmp.ge.f32.partialorder %v1318_v21, %v2033_v5  ;;  %v1204_v23 = vsel %vm816_vm1, %v1513_v22, 0.0  ;;  %v1210_v27 = vsel %vm816_vm1, %v1209_v24, 0.0 }
0x15cf   : > { %v1320_v16 = vsel %vm1319_vm9, %v1313_v8, %v2111_v59  ;;  %1205 = vadd.xlane.f32.xlu0 %v1204_v23  ;;  %v776_v59 = vsel %vm578_vm12, %v775_v0, 0.0 }
0x15d0   : > { %vm1321_vm10 = vcmp.lt.f32.partialorder %v1871_v4, %v1320_v16  ;;  %v778_v62 = vsel %vm777_vm13, %v776_v59, 0.0  ;;  %v1474_v4 = vsel %vm578_vm12, 1.0, %v1682_v9  ;;  %vm1336_vm12 = vcmp.eq.s32.totalorder %v1868_v3, 2 }
0x15d1   : > { %vm1322_vm11 = vmand %vm813_vm2, %vm1321_vm10  ;;  %v823_v13 = vpop.xlane.xlu0 %822  ;;  %vm1330_vm2 = vcmp.eq.s32.totalorder %v1868_v3, 1 }
0x15d2   : > { %v1323_v5 = vsel %vm1322_vm11, %v1930_v26, 0.0  ;;  %v1331_v34 = vsel %vm1330_vm2, %v823_v13, 0.0 }
0x15d3   : > { %1211 = vadd.xlane.f32.xlu0 %v1210_v27  ;;  %v1324_v10 = vsel %vm816_vm1, %v1323_v5, 0.0  ;;  %v1333_v49 = vrot.slane %v1331_v34, 4 }
0x15d7   : > { %1325 = vadd.xlane.f32.xlu0 %v1324_v10 }
0x15db   : > { %779 = vadd.xlane.f32.xlu0 %v778_v62 }
0x15df   : > { %581 = vadd.xlane.f32.xlu0 %v1474_v4 }
0x1658   : > { %v1206_v8 = vpop.xlane.xlu0 %1205 }
0x1659   : > { %v1207_v25 = vsub.f32 %v1942_v37, %v1206_v8 }
0x165b   : > { %v1208_v26 = vmax.f32 %v1207_v25, 0.0 }
0x165c   : > { %v1212_v28 = vpop.xlane.xlu0 %1211 }
0x165d   : > { %v1215_v29 = vmul.f32 %v1208_v26, %v1199_v20  ;;  %vm1214_vm1 = vcmp.gt.f32.partialorder %v1208_v26, 0.0 }
0x165f   : > { %v1216_v31 = vsel %vm1214_vm1, %v1215_v29, 0.0 }
0x1660   : > { %v1217_v32 = vadd.f32 %v1216_v31, %v1212_v28  ;;  %v1326_v33 = vpop.xlane.xlu0 %1325 }
0x1662   : > { %v1218_v38 = vsel %vm1213_vm14, %v1217_v32, 0.0 }
0x1663   : > { %v1327_v9 = vadd.f32 %v1326_v33, %v1218_v38 }
0x1664   : > { %v780_v39 = vpop.xlane.xlu0 %779 }
0x1665   : > { %v1337_v40 = vsel %vm1336_vm12, %v1327_v9, 0.0  ;;  %v1329_v41 = vsel %vm1328_vm15, %v780_v39, 0.0 }
0x1666   : > { %v1339_v42 = vrot.slane %v1337_v40, 4  ;;  %v1335_v43 = vadd.f32 %v1333_v49, %v1329_v41 }
0x1668   : > { %v1341_v44 = vadd.f32 %v1339_v42, %v1335_v43  ;;  %v582_v47 = vpop.xlane.xlu0 %581 }
0x1669   : > { %v1343_v45 = vsel %vm1342_vm0, %v582_v47, 0.0 }
0x166a   : > { %v1344_v37 = vadd.f32 %v1343_v45, %v1341_v44 }
0x166c   : > { %1346 = vst.msk [vmem:[%s1810_s1] sm:$0x1] %vm1345_vm3, %v1344_v37 }
0x166d PF: > { %s1514_s14 = sshll.u32 %s1749_s29, 4  ;;  %s1360_s21 = sshll.u32 %s1810_s1, 4  ;;  %s1361_s21 = int_to_ptr.vmem [resolvable:$true] %s1360_s21 }
0x166e   : > { %s1358_s20 = scalar_lea.hbm %s2218_s6, %s1514_s14  ;;  %s2229_s22 = sand.u32 1, %s1664_s27  }
0x166f   : > { %s1348_s23 = scalar_lea.sflag [#allocation5], %s2229_s22  ;;  %s1610_s24 = scalar_lea.vmem %s1361_s21, 16 }
0x1670   : > { %p1611_p4 = scmp.ne.s32.totalorder %s1361_s21, %s1610_s24  ;;  %s1689_s25 = smov [#allocation4]  }
0x1671   : > { %s1614_s30 = sshll.u32 %s1689_s25, 4  ;;  %s1615_s30 = int_to_ptr.vmem [resolvable:$false] %s1614_s30 }
0x1672   : > { %p1612_p5 = pnand %p1611_p4, %p1766_p10  ;;  %s1616_s8 = scalar_lea.vmem %s1615_s30, 32 }
0x1673   : > { %p1617_p7 = scmp.lt.s32.totalorder %s1361_s21, %s1615_s30  ;;  %p1618_p8 = scmp.lt.s32.totalorder %s1616_s8, %s1610_s24 }
0x1674   : > { %p1613_p6 = pneg %p1612_p5 }
0x1675   : > { %p1619_p9 = por %p1618_p8, %p1617_p7 }
0x1677   : > { %p1620_p12 = pnand %p1619_p9, %p1613_p6 }
0x1679   : > { %1623 = shalt.err (!%p1620_p12)
}
0x167a   : > { %s1624_s29 = scalar_lea.hbm %s1358_s20, 16  ;;  %s1628_s18 = scalar_lea.hbm %s2218_s6, 48 }
0x167b   : > { %p1625_p13 = scmp.ne.s32.totalorder %s1358_s20, %s1624_s29  ;;  %p1629_p2 = scmp.lt.s32.totalorder %s1358_s20, %s2218_s6 }
0x167c   : > { %p1630_p3 = scmp.lt.s32.totalorder %s1628_s18, %s1624_s29 }
0x167d   : > { %p1626_p0 = pnand %p1625_p13, %p1766_p10 }
0x167e   : > { %p1631_p4 = por %p1630_p3, %p1629_p2 }
0x167f   : > { %p1627_p1 = pneg %p1626_p0 }
0x1681   : > { %p1632_p5 = pnand %p1631_p4, %p1627_p1 }
0x1683   : > { %1635 = shalt.err (!%p1632_p5)
}
0x1684   : > { %1527 = dma.vmem_to_hbm [thread:$0]  (%p1766_p10), %s1361_s21, 16, %s1358_s20, %s1348_s23  }
0x1685 PF: > { %p1533_p6 = scmp.ge.s32.totalorder %s1672_s28, 2  ;;  %s1372_s0 = sand.u32 1, %s1660_s26  }
0x1686   : > { %s1373_s10 = scalar_lea.sflag [#allocation5], %s1372_s0 }
0x1687   : > { %p1530_p7 = pnand %p1533_p6, %p1770_p11 }
0x1689   : > { %p1531_p8 = pneg %p1530_p7 }
0x168b   : > { %1655 = dma.done.wait (%p1531_p8), %s1373_s10, 16  }
0x168c   : > { %1657 = vsyncadd (%p1531_p8), %s1373_s10, 4294967280  ;;  %s2230_s13 = sld [smem:[#allocation8_spill]]  ;;  %p22_p9 = scmp.ge.s32.totalorder %s1753_s7, 5  }
0x168d   : > { %s2231_s0 = sld [smem:[#allocation9_spill]]  ;;  %s2232_s26 = smov %s1664_s27 }
0x168e   : > { %s2234_s28 = smov %s1753_s7  ;;  %24 = sbr.rel (!%p22_p9) target bundleno = 18 (0x12), region = 95 }
0x1692   : > { %s2233_s27 = smov %s2230_s13 }
0x1693   :  { %1377 = vsyncpa [#allocation5], 1 }
0x1694   :  { %1379 = vsyncpa [#allocation5 + $0x1], 1 }

</bundles_post_ra>
